<compile_context>
chip_gen: v7x
topology: tpu7x:2x2x1
jax: 0.10.0
libtpu: 0.0.40
codegen_flags: <defaults>
</compile_context>

<pallas_src>
import functools

import jax
import jax.numpy as jnp
from jax.experimental import pallas as pl
from jax.experimental.pallas import tpu as pltpu


# ---------------------------------------------------------------------------
# Fused tiled matmul kernel: prologue act -> bf16 MXU matmul (f32 acc) ->
# per-column bias -> optional tanh.
# ---------------------------------------------------------------------------
def _mm_kernel(a_ref, b_ref, bias_ref, o_ref, acc_ref, *, prologue, epilogue):
    @pl.when(pl.program_id(2) == 0)
    def _init():
        acc_ref[...] = jnp.zeros_like(acc_ref)

    a = a_ref[...]
    if prologue == "lrelu":            # LeakyReLU(0.2) on the conv input
        a = jnp.where(a >= 0, a, (a.astype(jnp.float32) * 0.2).astype(a.dtype))
    elif prologue == "relu":           # ReLU on the (up)conv input
        a = jnp.maximum(a, 0)

    acc_ref[...] += jnp.dot(a, b_ref[...], preferred_element_type=jnp.float32)

    @pl.when(pl.program_id(2) == pl.num_programs(2) - 1)
    def _finalize():
        y = acc_ref[...] + bias_ref[...]   # folded BN beta / conv bias
        if epilogue == "tanh":
            y = jnp.tanh(y)
        o_ref[...] = y.astype(o_ref.dtype)


def _round_up(x, m):
    return (x + m - 1) // m * m


def _fused_matmul(a, b, bias, *, prologue=None, epilogue=None):
    """a: [M, K], b: [K, Nc] (f32), bias: [Nc] (f32) -> [M, Nc] f32.

    Operands are cast to bf16 for the MXU; accumulation, bias and epilogue run
    in f32.  Output columns are zero-padded to a multiple of 128 (lane-dense
    stores) and sliced back afterwards.
    """
    M, K = a.shape
    K2, Nc = b.shape
    assert K == K2

    # Lane-dense output columns.
    Np = _round_up(Nc, 128)
    tn = min(256, Np)
    Np = _round_up(Np, tn)

    Kp = _round_up(K, 128)
    tk = min(512, Kp)
    Kp = _round_up(Kp, tk)

    tm = 256 if M > 256 else _round_up(M, 8)
    Mp = _round_up(M, tm)

    a_p = jnp.pad(a.astype(jnp.bfloat16), ((0, Mp - M), (0, Kp - K)))
    b_p = jnp.pad(b.astype(jnp.bfloat16), ((0, Kp - K), (0, Np - Nc)))
    bias_p = jnp.pad(bias.astype(jnp.float32), (0, Np - Nc)).reshape(1, Np)

    grid = (Mp // tm, Np // tn, Kp // tk)
    kernel = functools.partial(_mm_kernel, prologue=prologue, epilogue=epilogue)

    out = pl.pallas_call(
        kernel,
        out_shape=jax.ShapeDtypeStruct((Mp, Np), jnp.float32),
        grid=grid,
        in_specs=[
            pl.BlockSpec((tm, tk), lambda i, j, k: (i, k)),
            pl.BlockSpec((tk, tn), lambda i, j, k: (k, j)),
            pl.BlockSpec((1, tn), lambda i, j, k: (0, j)),
        ],
        out_specs=pl.BlockSpec((tm, tn), lambda i, j, k: (i, j)),
        scratch_shapes=[pltpu.VMEM((tm, tn), jnp.float32)],
        compiler_params=pltpu.CompilerParams(
            dimension_semantics=("parallel", "parallel", "arbitrary"),
            vmem_limit_bytes=32 * 1024 * 1024,
        ),
    )(a_p, b_p, bias_p)
    return out[:M, :Nc]


# ---------------------------------------------------------------------------
# Conv2d(k=4, s=2, p=1)  (bias folded into `bias`, BN scale folded into w)
# ---------------------------------------------------------------------------
def conv4x4_s2(x, w, scale, bias, *, prologue):
    """x: [N,H,W,Cin] ; w: [Cout,Cin,4,4] (PyTorch Conv2d layout)."""
    N, H, W, C = x.shape
    Cout = w.shape[0]
    Ho, Wo = H // 2, W // 2
    xp = jnp.pad(x.astype(jnp.bfloat16), ((0, 0), (1, 1), (1, 1), (0, 0)))
    taps = []
    for ky in range(4):
        for kx in range(4):
            taps.append(xp[:, ky:ky + 2 * Ho:2, kx:kx + 2 * Wo:2, :])
    # reduction ordering (ky, kx, cin)
    patches = jnp.concatenate(taps, axis=-1).reshape(N * Ho * Wo, 16 * C)
    w2 = jnp.transpose(w, (2, 3, 1, 0)).reshape(16 * C, Cout)
    w2 = w2 * scale[None, :]                      # fold BN scale into weights
    out = _fused_matmul(patches, w2, bias, prologue=prologue)
    return out.reshape(N, Ho, Wo, Cout)


# ---------------------------------------------------------------------------
# ConvTranspose2d(k=4, s=2, p=1) via exact sub-pixel (phase) decomposition
# ---------------------------------------------------------------------------
def convT4x4_s2(x, w, scale, bias, *, prologue, epilogue=None):
    """x: [N,H,W,Cin]; w: [Cin,Cout,4,4] (PyTorch ConvTranspose2d layout)."""
    N, H, W, C = x.shape
    Cout = w.shape[1]
    xp = jnp.pad(x.astype(jnp.bfloat16), ((0, 0), (1, 1), (1, 1), (0, 0)))
    wins = []
    for dy in range(2):
        for dx in range(2):
            wins.append(xp[:, dy:dy + H + 1, dx:dx + W + 1, :])
    # reduction ordering (dy, dx, cin); M = N*(H+1)*(W+1), K = 4*Cin
    patches = jnp.concatenate(wins, axis=-1).reshape(N * (H + 1) * (W + 1), 4 * C)

    # Combined weight: Wc[dy,dx,ci, py,px,co] = w[ci,co, 3-py-2*dy, 3-px-2*dx]
    wr = w[:, :, ::-1, ::-1].reshape(C, Cout, 2, 2, 2, 2)   # (ci,co,dy,py,dx,px)
    wc = jnp.transpose(wr, (2, 4, 0, 3, 5, 1))              # (dy,dx,ci,py,px,co)
    wc = wc * scale[None, None, None, None, None, :]        # fold BN scale
    wc = wc.reshape(4 * C, 4 * Cout)
    bias_c = jnp.broadcast_to(bias, (2, 2, Cout)).reshape(4 * Cout)

    r = _fused_matmul(patches, wc, bias_c, prologue=prologue, epilogue=epilogue)
    r = r.reshape(N, H + 1, W + 1, 2, 2, Cout)
    # y[n, 2a+py, 2b+px, co] = r[n, a+py, b+px, py, px, co]
    cols = [
        jnp.stack([r[:, py:py + H, px:px + W, py, px, :] for px in (0, 1)], axis=3)
        for py in (0, 1)
    ]
    y = jnp.stack(cols, axis=2)                 # [N, H, 2, W, 2, Cout]
    return y.reshape(N, 2 * H, 2 * W, Cout)


# ---------------------------------------------------------------------------
# Parameters matching UnetGenerator(input_nc, output_nc, num_downs, ngf,
# norm_layer=BatchNorm2d, use_dropout=False)
# ---------------------------------------------------------------------------
def make_unet_params(key, input_nc, output_nc, num_downs, ngf):
    assert num_downs >= 5
    eps = 1e-5

    # (outer_nc, inner_nc, input_nc, kind) ordered outermost -> innermost
    levels = [(output_nc, ngf, input_nc, "outermost"),
              (ngf, ngf * 2, ngf, "middle"),
              (ngf * 2, ngf * 4, ngf * 2, "middle"),
              (ngf * 4, ngf * 8, ngf * 4, "middle")]
    for _ in range(num_downs - 5):
        levels.append((ngf * 8, ngf * 8, ngf * 8, "middle"))
    levels.append((ngf * 8, ngf * 8, ngf * 8, "innermost"))

    def conv_w(k, shape):
        return 0.02 * jax.random.normal(k, shape, jnp.float32)

    def bn_fold(k, c):
        kg, kb = jax.random.split(k)
        gamma = 1.0 + 0.02 * jax.random.normal(kg, (c,), jnp.float32)
        beta = 0.02 * jax.random.normal(kb, (c,), jnp.float32)
        rmean = jnp.zeros((c,), jnp.float32)   # fresh BatchNorm2d running stats
        rvar = jnp.ones((c,), jnp.float32)
        scale = gamma / jnp.sqrt(rvar + eps)
        return scale, beta - rmean * scale

    params = []
    for outer_nc, inner_nc, in_nc, kind in levels:
        key, k1, k2, k3, k4 = jax.random.split(key, 5)
        # down: [LeakyReLU] -> Conv2d(in_nc -> inner_nc, bias=False) -> [BN]
        down_w = conv_w(k1, (inner_nc, in_nc, 4, 4))
        if kind == "middle":
            down_scale, down_bias = bn_fold(k2, inner_nc)
        else:   # outermost / innermost: no norm, no conv bias
            down_scale = jnp.ones((inner_nc,), jnp.float32)
            down_bias = jnp.zeros((inner_nc,), jnp.float32)
        down_prologue = None if kind == "outermost" else "lrelu"
        # up: ReLU -> ConvTranspose2d -> [BN]  (outermost: bias=True, Tanh)
        up_in = inner_nc if kind == "innermost" else inner_nc * 2
        up_w = conv_w(k3, (up_in, outer_nc, 4, 4))
        if kind == "outermost":
            up_scale = jnp.ones((outer_nc,), jnp.float32)
            up_bias = 0.02 * jax.random.normal(k4, (outer_nc,), jnp.float32)
            up_epilogue = "tanh"
        else:
            up_scale, up_bias = bn_fold(k4, outer_nc)
            up_epilogue = None
        params.append(dict(
            down_w=down_w, down_scale=down_scale, down_bias=down_bias,
            down_prologue=down_prologue,
            up_w=up_w, up_scale=up_scale, up_bias=up_bias,
            up_epilogue=up_epilogue, kind=kind))
    return params


def unet_forward(x_nchw, params):
    """x_nchw: [N, input_nc, H, W] -> [N, output_nc, H, W]."""
    x = jnp.transpose(x_nchw, (0, 2, 3, 1)).astype(jnp.float32)   # NCHW -> NHWC

    # Encoder (outermost -> innermost); skips[i] = output of down_i.
    skips = []
    h = x
    for lvl in params:
        h = conv4x4_s2(h, lvl["down_w"], lvl["down_scale"], lvl["down_bias"],
                       prologue=lvl["down_prologue"])
        skips.append(h)

    # Decoder with skip connections: up_i input = cat([down_i, up_{i+1}]).
    L = len(params) - 1
    u = convT4x4_s2(skips[L], params[L]["up_w"], params[L]["up_scale"],
                    params[L]["up_bias"], prologue="relu",
                    epilogue=params[L]["up_epilogue"])
    for i in range(L - 1, -1, -1):
        lvl = params[i]
        cat = jnp.concatenate([skips[i], u], axis=-1)
        u = convT4x4_s2(cat, lvl["up_w"], lvl["up_scale"], lvl["up_bias"],
                        prologue="relu", epilogue=lvl["up_epilogue"])

    return jnp.transpose(u, (0, 3, 1, 2))                          # NHWC -> NCHW


if __name__ == "__main__":
    key = jax.random.PRNGKey(0)
    k_in, k_par = jax.random.split(key)

    # Small shapes: batch=2, 3->3 channels, 32x32 image, num_downs=5, ngf=8.
    N, input_nc, output_nc, H, W = 2, 3, 3, 32, 32
    num_downs, ngf = 5, 8          # H == 2**num_downs -> innermost map is 1x1

    x = jax.random.normal(k_in, (N, input_nc, H, W), jnp.float32)
    params = make_unet_params(k_par, input_nc, output_nc, num_downs, ngf)

    fwd = jax.jit(lambda inp: unet_forward(inp, params))
    out = jax.block_until_ready(fwd(x))

    assert out.shape == (N, output_nc, H, W), out.shape
    assert bool(jnp.all(jnp.isfinite(out)))
    assert bool(jnp.all(jnp.abs(out) <= 1.0 + 1e-6))   # Tanh output range
    print("KERNEL_OK")
</pallas_src>

<mosaic_0001>
module attributes {stable_mosaic.version = 11 : i64} {
  func.func @_mm_kernel(%arg0: i32, %arg1: i32, %arg2: i32, %arg3: memref<256x128xbf16, #tpu.memory_space<vmem>>, %arg4: memref<128x128xbf16, #tpu.memory_space<vmem>>, %arg5: memref<1x128xf32, #tpu.memory_space<vmem>>, %arg6: memref<256x128xf32, #tpu.memory_space<vmem>>, %arg7: memref<256x128xf32, #tpu.memory_space<vmem>>) attributes {dimension_semantics = [#tpu.dimension_semantics<parallel>, #tpu.dimension_semantics<parallel>, #tpu.dimension_semantics<arbitrary>], iteration_bounds = array<i64: 2, 1, 1>, scalar_prefetch = 0 : i64, scratch_operands = 1 : i64, tpu.core_type = #tpu.core_type<tc>, window_params = [{transform_indices = @transform_0, window_bounds = array<i64: 256, 128>}, {transform_indices = @transform_1, window_bounds = array<i64: 128, 128>}, {transform_indices = @transform_2, window_bounds = array<i64: 1, 128>}, {transform_indices = @transform_3, window_bounds = array<i64: 256, 128>}]} {
    %c0_i32 = arith.constant 0 : i32
    %0 = arith.cmpi eq, %arg2, %c0_i32 : i32
    %1 = arith.extui %0 : i1 to i32
    %c0_i32_0 = arith.constant 0 : i32
    %2 = arith.cmpi ne, %1, %c0_i32_0 : i32
    scf.if %2 {
      %cst_10 = arith.constant 0.000000e+00 : f32
      %12 = vector.broadcast %cst_10 : f32 to vector<256x128xf32>
      %c0_11 = arith.constant 0 : index
      %c0_12 = arith.constant 0 : index
      %13 = vector.load %arg7[%c0_11, %c0_12] : memref<256x128xf32, #tpu.memory_space<vmem>>, vector<256x128xf32>
      tpu.vector_store %arg7[%c0_11, %c0_12], %12 {strides = array<i32>} : memref<256x128xf32, #tpu.memory_space<vmem>>, vector<256x128xf32>,
    } else {
    }
    %c0 = arith.constant 0 : index
    %c0_1 = arith.constant 0 : index
    %3 = vector.load %arg3[%c0, %c0_1] : memref<256x128xbf16, #tpu.memory_space<vmem>>, vector<256x128xbf16>
    %c0_2 = arith.constant 0 : index
    %c0_3 = arith.constant 0 : index
    %4 = vector.load %arg7[%c0_2, %c0_3] : memref<256x128xf32, #tpu.memory_space<vmem>>, vector<256x128xf32>
    %c0_4 = arith.constant 0 : index
    %c0_5 = arith.constant 0 : index
    %5 = vector.load %arg4[%c0_4, %c0_5] : memref<128x128xbf16, #tpu.memory_space<vmem>>, vector<128x128xbf16>
    %cst = arith.constant dense<0.000000e+00> : vector<256x128xf32>
    %6 = tpu.matmul %3, %5, %cst {dimension_numbers = #tpu.dot_dimension_numbers<[1], [0], [0], [1], [0, 0, 1, 1], [], []>} : vector<256x128xbf16>, vector<128x128xbf16>, vector<256x128xf32> -> vector<256x128xf32>
    %7 = arith.addf %4, %6 : vector<256x128xf32>
    %c0_6 = arith.constant 0 : index
    %c0_7 = arith.constant 0 : index
    %8 = vector.load %arg7[%c0_6, %c0_7] : memref<256x128xf32, #tpu.memory_space<vmem>>, vector<256x128xf32>
    tpu.vector_store %arg7[%c0_6, %c0_7], %7 {strides = array<i32>} : memref<256x128xf32, #tpu.memory_space<vmem>>, vector<256x128xf32>,
    %c0_i32_8 = arith.constant 0 : i32
    %9 = arith.cmpi eq, %arg2, %c0_i32_8 : i32
    %10 = arith.extui %9 : i1 to i32
    %c0_i32_9 = arith.constant 0 : i32
    %11 = arith.cmpi ne, %10, %c0_i32_9 : i32
    scf.if %11 {
      %c0_10 = arith.constant 0 : index
      %c0_11 = arith.constant 0 : index
      %12 = vector.load %arg7[%c0_10, %c0_11] : memref<256x128xf32, #tpu.memory_space<vmem>>, vector<256x128xf32>
      %c0_12 = arith.constant 0 : index
      %c0_13 = arith.constant 0 : index
      %13 = vector.load %arg5[%c0_12, %c0_13] : memref<1x128xf32, #tpu.memory_space<vmem>>, vector<1x128xf32>
      %14 = vector.broadcast %13 : vector<1x128xf32> to vector<256x128xf32>
      %15 = arith.addf %12, %14 : vector<256x128xf32>
      %c0_14 = arith.constant 0 : index
      %c0_15 = arith.constant 0 : index
      %16 = vector.load %arg6[%c0_14, %c0_15] : memref<256x128xf32, #tpu.memory_space<vmem>>, vector<256x128xf32>
      tpu.vector_store %arg6[%c0_14, %c0_15], %15 {strides = array<i32>} : memref<256x128xf32, #tpu.memory_space<vmem>>, vector<256x128xf32>,
    } else {
    }
    return
  }
  func.func @transform_0(%arg0: i32, %arg1: i32, %arg2: i32) -> (i32, i32) {
    %c0_i32 = arith.constant 0 : i32
    return %arg0, %arg2 : i32, i32
  }
  func.func @transform_1(%arg0: i32, %arg1: i32, %arg2: i32) -> (i32, i32) {
    %c0_i32 = arith.constant 0 : i32
    return %arg2, %arg1 : i32, i32
  }
  func.func @transform_2(%arg0: i32, %arg1: i32, %arg2: i32) -> (i32, i32) {
    %c0_i32 = arith.constant 0 : i32
    %c0_i32_0 = arith.constant 0 : i32
    return %c0_i32, %arg1 : i32, i32
  }
  func.func @transform_3(%arg0: i32, %arg1: i32, %arg2: i32) -> (i32, i32) {
    %c0_i32 = arith.constant 0 : i32
    return %arg0, %arg1 : i32, i32
  }
}

module attributes {stable_mosaic.version = 11 : i64} {
  func.func @_mm_kernel(%arg0: i32, %arg1: i32, %arg2: i32, %arg3: memref<128x128xbf16, #tpu.memory_space<vmem>>, %arg4: memref<128x128xbf16, #tpu.memory_space<vmem>>, %arg5: memref<1x128xf32, #tpu.memory_space<vmem>>, %arg6: memref<128x128xf32, #tpu.memory_space<vmem>>, %arg7: memref<128x128xf32, #tpu.memory_space<vmem>>) attributes {dimension_semantics = [#tpu.dimension_semantics<parallel>, #tpu.dimension_semantics<parallel>, #tpu.dimension_semantics<arbitrary>], iteration_bounds = array<i64: 1, 1, 1>, scalar_prefetch = 0 : i64, scratch_operands = 1 : i64, tpu.core_type = #tpu.core_type<tc>, window_params = [{transform_indices = @transform_0, window_bounds = array<i64: 128, 128>}, {transform_indices = @transform_1, window_bounds = array<i64: 128, 128>}, {transform_indices = @transform_2, window_bounds = array<i64: 1, 128>}, {transform_indices = @transform_3, window_bounds = array<i64: 128, 128>}]} {
    %c0_i32 = arith.constant 0 : i32
    %0 = arith.cmpi eq, %arg2, %c0_i32 : i32
    %1 = arith.extui %0 : i1 to i32
    %c0_i32_0 = arith.constant 0 : i32
    %2 = arith.cmpi ne, %1, %c0_i32_0 : i32
    scf.if %2 {
      %cst_12 = arith.constant 0.000000e+00 : f32
      %19 = vector.broadcast %cst_12 : f32 to vector<128x128xf32>
      %c0_13 = arith.constant 0 : index
      %c0_14 = arith.constant 0 : index
      %20 = vector.load %arg7[%c0_13, %c0_14] : memref<128x128xf32, #tpu.memory_space<vmem>>, vector<128x128xf32>
      tpu.vector_store %arg7[%c0_13, %c0_14], %19 {strides = array<i32>} : memref<128x128xf32, #tpu.memory_space<vmem>>, vector<128x128xf32>,
    } else {
    }
    %c0 = arith.constant 0 : index
    %c0_1 = arith.constant 0 : index
    %3 = vector.load %arg3[%c0, %c0_1] : memref<128x128xbf16, #tpu.memory_space<vmem>>, vector<128x128xbf16>
    %cst = arith.constant 0.000000e+00 : bf16
    %4 = vector.broadcast %cst : bf16 to vector<128x128xbf16>
    %5 = arith.cmpf oge, %3, %4 : vector<128x128xbf16>
    %6 = arith.extf %3 : vector<128x128xbf16> to vector<128x128xf32>
    %cst_2 = arith.constant 2.000000e-01 : f32
    %7 = vector.broadcast %cst_2 : f32 to vector<128x128xf32>
    %8 = arith.mulf %6, %7 : vector<128x128xf32>
    %9 = arith.truncf %8 : vector<128x128xf32> to vector<128x128xbf16>
    %10 = arith.select %5, %3, %9 : vector<128x128xi1>, vector<128x128xbf16>
    %c0_3 = arith.constant 0 : index
    %c0_4 = arith.constant 0 : index
    %11 = vector.load %arg7[%c0_3, %c0_4] : memref<128x128xf32, #tpu.memory_space<vmem>>, vector<128x128xf32>
    %c0_5 = arith.constant 0 : index
    %c0_6 = arith.constant 0 : index
    %12 = vector.load %arg4[%c0_5, %c0_6] : memref<128x128xbf16, #tpu.memory_space<vmem>>, vector<128x128xbf16>
    %cst_7 = arith.constant dense<0.000000e+00> : vector<128x128xf32>
    %13 = tpu.matmul %10, %12, %cst_7 {dimension_numbers = #tpu.dot_dimension_numbers<[1], [0], [0], [1], [0, 0, 1, 1], [], []>} : vector<128x128xbf16>, vector<128x128xbf16>, vector<128x128xf32> -> vector<128x128xf32>
    %14 = arith.addf %11, %13 : vector<128x128xf32>
    %c0_8 = arith.constant 0 : index
    %c0_9 = arith.constant 0 : index
    %15 = vector.load %arg7[%c0_8, %c0_9] : memref<128x128xf32, #tpu.memory_space<vmem>>, vector<128x128xf32>
    tpu.vector_store %arg7[%c0_8, %c0_9], %14 {strides = array<i32>} : memref<128x128xf32, #tpu.memory_space<vmem>>, vector<128x128xf32>,
    %c0_i32_10 = arith.constant 0 : i32
    %16 = arith.cmpi eq, %arg2, %c0_i32_10 : i32
    %17 = arith.extui %16 : i1 to i32
    %c0_i32_11 = arith.constant 0 : i32
    %18 = arith.cmpi ne, %17, %c0_i32_11 : i32
    scf.if %18 {
      %c0_12 = arith.constant 0 : index
      %c0_13 = arith.constant 0 : index
      %19 = vector.load %arg7[%c0_12, %c0_13] : memref<128x128xf32, #tpu.memory_space<vmem>>, vector<128x128xf32>
      %c0_14 = arith.constant 0 : index
      %c0_15 = arith.constant 0 : index
      %20 = vector.load %arg5[%c0_14, %c0_15] : memref<1x128xf32, #tpu.memory_space<vmem>>, vector<1x128xf32>
      %21 = vector.broadcast %20 : vector<1x128xf32> to vector<128x128xf32>
      %22 = arith.addf %19, %21 : vector<128x128xf32>
      %c0_16 = arith.constant 0 : index
      %c0_17 = arith.constant 0 : index
      %23 = vector.load %arg6[%c0_16, %c0_17] : memref<128x128xf32, #tpu.memory_space<vmem>>, vector<128x128xf32>
      tpu.vector_store %arg6[%c0_16, %c0_17], %22 {strides = array<i32>} : memref<128x128xf32, #tpu.memory_space<vmem>>, vector<128x128xf32>,
    } else {
    }
    return
  }
  func.func @transform_0(%arg0: i32, %arg1: i32, %arg2: i32) -> (i32, i32) {
    %c0_i32 = arith.constant 0 : i32
    return %arg0, %arg2 : i32, i32
  }
  func.func @transform_1(%arg0: i32, %arg1: i32, %arg2: i32) -> (i32, i32) {
    %c0_i32 = arith.constant 0 : i32
    return %arg2, %arg1 : i32, i32
  }
  func.func @transform_2(%arg0: i32, %arg1: i32, %arg2: i32) -> (i32, i32) {
    %c0_i32 = arith.constant 0 : i32
    %c0_i32_0 = arith.constant 0 : i32
    return %c0_i32, %arg1 : i32, i32
  }
  func.func @transform_3(%arg0: i32, %arg1: i32, %arg2: i32) -> (i32, i32) {
    %c0_i32 = arith.constant 0 : i32
    return %arg0, %arg1 : i32, i32
  }
}

module attributes {stable_mosaic.version = 11 : i64} {
  func.func @_mm_kernel(%arg0: i32, %arg1: i32, %arg2: i32, %arg3: memref<32x256xbf16, #tpu.memory_space<vmem>>, %arg4: memref<256x128xbf16, #tpu.memory_space<vmem>>, %arg5: memref<1x128xf32, #tpu.memory_space<vmem>>, %arg6: memref<32x128xf32, #tpu.memory_space<vmem>>, %arg7: memref<32x128xf32, #tpu.memory_space<vmem>>) attributes {dimension_semantics = [#tpu.dimension_semantics<parallel>, #tpu.dimension_semantics<parallel>, #tpu.dimension_semantics<arbitrary>], iteration_bounds = array<i64: 1, 1, 1>, scalar_prefetch = 0 : i64, scratch_operands = 1 : i64, tpu.core_type = #tpu.core_type<tc>, window_params = [{transform_indices = @transform_0, window_bounds = array<i64: 32, 256>}, {transform_indices = @transform_1, window_bounds = array<i64: 256, 128>}, {transform_indices = @transform_2, window_bounds = array<i64: 1, 128>}, {transform_indices = @transform_3, window_bounds = array<i64: 32, 128>}]} {
    %c0_i32 = arith.constant 0 : i32
    %0 = arith.cmpi eq, %arg2, %c0_i32 : i32
    %1 = arith.extui %0 : i1 to i32
    %c0_i32_0 = arith.constant 0 : i32
    %2 = arith.cmpi ne, %1, %c0_i32_0 : i32
    scf.if %2 {
      %cst_12 = arith.constant 0.000000e+00 : f32
      %19 = vector.broadcast %cst_12 : f32 to vector<32x128xf32>
      %c0_13 = arith.constant 0 : index
      %c0_14 = arith.constant 0 : index
      %20 = vector.load %arg7[%c0_13, %c0_14] : memref<32x128xf32, #tpu.memory_space<vmem>>, vector<32x128xf32>
      tpu.vector_store %arg7[%c0_13, %c0_14], %19 {strides = array<i32>} : memref<32x128xf32, #tpu.memory_space<vmem>>, vector<32x128xf32>,
    } else {
    }
    %c0 = arith.constant 0 : index
    %c0_1 = arith.constant 0 : index
    %3 = vector.load %arg3[%c0, %c0_1] : memref<32x256xbf16, #tpu.memory_space<vmem>>, vector<32x256xbf16>
    %cst = arith.constant 0.000000e+00 : bf16
    %4 = vector.broadcast %cst : bf16 to vector<32x256xbf16>
    %5 = arith.cmpf oge, %3, %4 : vector<32x256xbf16>
    %6 = arith.extf %3 : vector<32x256xbf16> to vector<32x256xf32>
    %cst_2 = arith.constant 2.000000e-01 : f32
    %7 = vector.broadcast %cst_2 : f32 to vector<32x256xf32>
    %8 = arith.mulf %6, %7 : vector<32x256xf32>
    %9 = arith.truncf %8 : vector<32x256xf32> to vector<32x256xbf16>
    %10 = arith.select %5, %3, %9 : vector<32x256xi1>, vector<32x256xbf16>
    %c0_3 = arith.constant 0 : index
    %c0_4 = arith.constant 0 : index
    %11 = vector.load %arg7[%c0_3, %c0_4] : memref<32x128xf32, #tpu.memory_space<vmem>>, vector<32x128xf32>
    %c0_5 = arith.constant 0 : index
    %c0_6 = arith.constant 0 : index
    %12 = vector.load %arg4[%c0_5, %c0_6] : memref<256x128xbf16, #tpu.memory_space<vmem>>, vector<256x128xbf16>
    %cst_7 = arith.constant dense<0.000000e+00> : vector<32x128xf32>
    %13 = tpu.matmul %10, %12, %cst_7 {dimension_numbers = #tpu.dot_dimension_numbers<[1], [0], [0], [1], [0, 0, 1, 1], [], []>} : vector<32x256xbf16>, vector<256x128xbf16>, vector<32x128xf32> -> vector<32x128xf32>
    %14 = arith.addf %11, %13 : vector<32x128xf32>
    %c0_8 = arith.constant 0 : index
    %c0_9 = arith.constant 0 : index
    %15 = vector.load %arg7[%c0_8, %c0_9] : memref<32x128xf32, #tpu.memory_space<vmem>>, vector<32x128xf32>
    tpu.vector_store %arg7[%c0_8, %c0_9], %14 {strides = array<i32>} : memref<32x128xf32, #tpu.memory_space<vmem>>, vector<32x128xf32>,
    %c0_i32_10 = arith.constant 0 : i32
    %16 = arith.cmpi eq, %arg2, %c0_i32_10 : i32
    %17 = arith.extui %16 : i1 to i32
    %c0_i32_11 = arith.constant 0 : i32
    %18 = arith.cmpi ne, %17, %c0_i32_11 : i32
    scf.if %18 {
      %c0_12 = arith.constant 0 : index
      %c0_13 = arith.constant 0 : index
      %19 = vector.load %arg7[%c0_12, %c0_13] : memref<32x128xf32, #tpu.memory_space<vmem>>, vector<32x128xf32>
      %c0_14 = arith.constant 0 : index
      %c0_15 = arith.constant 0 : index
      %20 = vector.load %arg5[%c0_14, %c0_15] : memref<1x128xf32, #tpu.memory_space<vmem>>, vector<1x128xf32>
      %21 = vector.broadcast %20 : vector<1x128xf32> to vector<32x128xf32>
      %22 = arith.addf %19, %21 : vector<32x128xf32>
      %c0_16 = arith.constant 0 : index
      %c0_17 = arith.constant 0 : index
      %23 = vector.load %arg6[%c0_16, %c0_17] : memref<32x128xf32, #tpu.memory_space<vmem>>, vector<32x128xf32>
      tpu.vector_store %arg6[%c0_16, %c0_17], %22 {strides = array<i32>} : memref<32x128xf32, #tpu.memory_space<vmem>>, vector<32x128xf32>,
    } else {
    }
    return
  }
  func.func @transform_0(%arg0: i32, %arg1: i32, %arg2: i32) -> (i32, i32) {
    %c0_i32 = arith.constant 0 : i32
    return %arg0, %arg2 : i32, i32
  }
  func.func @transform_1(%arg0: i32, %arg1: i32, %arg2: i32) -> (i32, i32) {
    %c0_i32 = arith.constant 0 : i32
    return %arg2, %arg1 : i32, i32
  }
  func.func @transform_2(%arg0: i32, %arg1: i32, %arg2: i32) -> (i32, i32) {
    %c0_i32 = arith.constant 0 : i32
    %c0_i32_0 = arith.constant 0 : i32
    return %c0_i32, %arg1 : i32, i32
  }
  func.func @transform_3(%arg0: i32, %arg1: i32, %arg2: i32) -> (i32, i32) {
    %c0_i32 = arith.constant 0 : i32
    return %arg0, %arg1 : i32, i32
  }
}

module attributes {stable_mosaic.version = 11 : i64} {
  func.func @_mm_kernel(%arg0: i32, %arg1: i32, %arg2: i32, %arg3: memref<8x512xbf16, #tpu.memory_space<vmem>>, %arg4: memref<512x128xbf16, #tpu.memory_space<vmem>>, %arg5: memref<1x128xf32, #tpu.memory_space<vmem>>, %arg6: memref<8x128xf32, #tpu.memory_space<vmem>>, %arg7: memref<8x128xf32, #tpu.memory_space<vmem>>) attributes {dimension_semantics = [#tpu.dimension_semantics<parallel>, #tpu.dimension_semantics<parallel>, #tpu.dimension_semantics<arbitrary>], iteration_bounds = array<i64: 1, 1, 1>, scalar_prefetch = 0 : i64, scratch_operands = 1 : i64, tpu.core_type = #tpu.core_type<tc>, window_params = [{transform_indices = @transform_0, window_bounds = array<i64: 8, 512>}, {transform_indices = @transform_1, window_bounds = array<i64: 512, 128>}, {transform_indices = @transform_2, window_bounds = array<i64: 1, 128>}, {transform_indices = @transform_3, window_bounds = array<i64: 8, 128>}]} {
    %c0_i32 = arith.constant 0 : i32
    %0 = arith.cmpi eq, %arg2, %c0_i32 : i32
    %1 = arith.extui %0 : i1 to i32
    %c0_i32_0 = arith.constant 0 : i32
    %2 = arith.cmpi ne, %1, %c0_i32_0 : i32
    scf.if %2 {
      %cst_12 = arith.constant 0.000000e+00 : f32
      %19 = vector.broadcast %cst_12 : f32 to vector<8x128xf32>
      %c0_13 = arith.constant 0 : index
      %c0_14 = arith.constant 0 : index
      %20 = vector.load %arg7[%c0_13, %c0_14] : memref<8x128xf32, #tpu.memory_space<vmem>>, vector<8x128xf32>
      tpu.vector_store %arg7[%c0_13, %c0_14], %19 {strides = array<i32>} : memref<8x128xf32, #tpu.memory_space<vmem>>, vector<8x128xf32>,
    } else {
    }
    %c0 = arith.constant 0 : index
    %c0_1 = arith.constant 0 : index
    %3 = vector.load %arg3[%c0, %c0_1] : memref<8x512xbf16, #tpu.memory_space<vmem>>, vector<8x512xbf16>
    %cst = arith.constant 0.000000e+00 : bf16
    %4 = vector.broadcast %cst : bf16 to vector<8x512xbf16>
    %5 = arith.cmpf oge, %3, %4 : vector<8x512xbf16>
    %6 = arith.extf %3 : vector<8x512xbf16> to vector<8x512xf32>
    %cst_2 = arith.constant 2.000000e-01 : f32
    %7 = vector.broadcast %cst_2 : f32 to vector<8x512xf32>
    %8 = arith.mulf %6, %7 : vector<8x512xf32>
    %9 = arith.truncf %8 : vector<8x512xf32> to vector<8x512xbf16>
    %10 = arith.select %5, %3, %9 : vector<8x512xi1>, vector<8x512xbf16>
    %c0_3 = arith.constant 0 : index
    %c0_4 = arith.constant 0 : index
    %11 = vector.load %arg7[%c0_3, %c0_4] : memref<8x128xf32, #tpu.memory_space<vmem>>, vector<8x128xf32>
    %c0_5 = arith.constant 0 : index
    %c0_6 = arith.constant 0 : index
    %12 = vector.load %arg4[%c0_5, %c0_6] : memref<512x128xbf16, #tpu.memory_space<vmem>>, vector<512x128xbf16>
    %cst_7 = arith.constant dense<0.000000e+00> : vector<8x128xf32>
    %13 = tpu.matmul %10, %12, %cst_7 {dimension_numbers = #tpu.dot_dimension_numbers<[1], [0], [0], [1], [0, 0, 1, 1], [], []>} : vector<8x512xbf16>, vector<512x128xbf16>, vector<8x128xf32> -> vector<8x128xf32>
    %14 = arith.addf %11, %13 : vector<8x128xf32>
    %c0_8 = arith.constant 0 : index
    %c0_9 = arith.constant 0 : index
    %15 = vector.load %arg7[%c0_8, %c0_9] : memref<8x128xf32, #tpu.memory_space<vmem>>, vector<8x128xf32>
    tpu.vector_store %arg7[%c0_8, %c0_9], %14 {strides = array<i32>} : memref<8x128xf32, #tpu.memory_space<vmem>>, vector<8x128xf32>,
    %c0_i32_10 = arith.constant 0 : i32
    %16 = arith.cmpi eq, %arg2, %c0_i32_10 : i32
    %17 = arith.extui %16 : i1 to i32
    %c0_i32_11 = arith.constant 0 : i32
    %18 = arith.cmpi ne, %17, %c0_i32_11 : i32
    scf.if %18 {
      %c0_12 = arith.constant 0 : index
      %c0_13 = arith.constant 0 : index
      %19 = vector.load %arg7[%c0_12, %c0_13] : memref<8x128xf32, #tpu.memory_space<vmem>>, vector<8x128xf32>
      %c0_14 = arith.constant 0 : index
      %c0_15 = arith.constant 0 : index
      %20 = vector.load %arg5[%c0_14, %c0_15] : memref<1x128xf32, #tpu.memory_space<vmem>>, vector<1x128xf32>
      %21 = vector.broadcast %20 : vector<1x128xf32> to vector<8x128xf32>
      %22 = arith.addf %19, %21 : vector<8x128xf32>
      %c0_16 = arith.constant 0 : index
      %c0_17 = arith.constant 0 : index
      %23 = vector.load %arg6[%c0_16, %c0_17] : memref<8x128xf32, #tpu.memory_space<vmem>>, vector<8x128xf32>
      tpu.vector_store %arg6[%c0_16, %c0_17], %22 {strides = array<i32>} : memref<8x128xf32, #tpu.memory_space<vmem>>, vector<8x128xf32>,
    } else {
    }
    return
  }
  func.func @transform_0(%arg0: i32, %arg1: i32, %arg2: i32) -> (i32, i32) {
    %c0_i32 = arith.constant 0 : i32
    return %arg0, %arg2 : i32, i32
  }
  func.func @transform_1(%arg0: i32, %arg1: i32, %arg2: i32) -> (i32, i32) {
    %c0_i32 = arith.constant 0 : i32
    return %arg2, %arg1 : i32, i32
  }
  func.func @transform_2(%arg0: i32, %arg1: i32, %arg2: i32) -> (i32, i32) {
    %c0_i32 = arith.constant 0 : i32
    %c0_i32_0 = arith.constant 0 : i32
    return %c0_i32, %arg1 : i32, i32
  }
  func.func @transform_3(%arg0: i32, %arg1: i32, %arg2: i32) -> (i32, i32) {
    %c0_i32 = arith.constant 0 : i32
    return %arg0, %arg1 : i32, i32
  }
}

module attributes {stable_mosaic.version = 11 : i64} {
  func.func @_mm_kernel(%arg0: i32, %arg1: i32, %arg2: i32, %arg3: memref<8x512xbf16, #tpu.memory_space<vmem>>, %arg4: memref<512x128xbf16, #tpu.memory_space<vmem>>, %arg5: memref<1x128xf32, #tpu.memory_space<vmem>>, %arg6: memref<8x128xf32, #tpu.memory_space<vmem>>, %arg7: memref<8x128xf32, #tpu.memory_space<vmem>>) attributes {dimension_semantics = [#tpu.dimension_semantics<parallel>, #tpu.dimension_semantics<parallel>, #tpu.dimension_semantics<arbitrary>], iteration_bounds = array<i64: 1, 1, 2>, scalar_prefetch = 0 : i64, scratch_operands = 1 : i64, tpu.core_type = #tpu.core_type<tc>, window_params = [{transform_indices = @transform_0, window_bounds = array<i64: 8, 512>}, {transform_indices = @transform_1, window_bounds = array<i64: 512, 128>}, {transform_indices = @transform_2, window_bounds = array<i64: 1, 128>}, {transform_indices = @transform_3, window_bounds = array<i64: 8, 128>}]} {
    %c0_i32 = arith.constant 0 : i32
    %0 = arith.cmpi eq, %arg2, %c0_i32 : i32
    %1 = arith.extui %0 : i1 to i32
    %c0_i32_0 = arith.constant 0 : i32
    %2 = arith.cmpi ne, %1, %c0_i32_0 : i32
    scf.if %2 {
      %cst_11 = arith.constant 0.000000e+00 : f32
      %19 = vector.broadcast %cst_11 : f32 to vector<8x128xf32>
      %c0_12 = arith.constant 0 : index
      %c0_13 = arith.constant 0 : index
      %20 = vector.load %arg7[%c0_12, %c0_13] : memref<8x128xf32, #tpu.memory_space<vmem>>, vector<8x128xf32>
      tpu.vector_store %arg7[%c0_12, %c0_13], %19 {strides = array<i32>} : memref<8x128xf32, #tpu.memory_space<vmem>>, vector<8x128xf32>,
    } else {
    }
    %c0 = arith.constant 0 : index
    %c0_1 = arith.constant 0 : index
    %3 = vector.load %arg3[%c0, %c0_1] : memref<8x512xbf16, #tpu.memory_space<vmem>>, vector<8x512xbf16>
    %cst = arith.constant 0.000000e+00 : bf16
    %4 = vector.broadcast %cst : bf16 to vector<8x512xbf16>
    %5 = arith.cmpf oge, %3, %4 : vector<8x512xbf16>
    %6 = arith.extf %3 : vector<8x512xbf16> to vector<8x512xf32>
    %cst_2 = arith.constant 2.000000e-01 : f32
    %7 = vector.broadcast %cst_2 : f32 to vector<8x512xf32>
    %8 = arith.mulf %6, %7 : vector<8x512xf32>
    %9 = arith.truncf %8 : vector<8x512xf32> to vector<8x512xbf16>
    %10 = arith.select %5, %3, %9 : vector<8x512xi1>, vector<8x512xbf16>
    %c0_3 = arith.constant 0 : index
    %c0_4 = arith.constant 0 : index
    %11 = vector.load %arg7[%c0_3, %c0_4] : memref<8x128xf32, #tpu.memory_space<vmem>>, vector<8x128xf32>
    %c0_5 = arith.constant 0 : index
    %c0_6 = arith.constant 0 : index
    %12 = vector.load %arg4[%c0_5, %c0_6] : memref<512x128xbf16, #tpu.memory_space<vmem>>, vector<512x128xbf16>
    %cst_7 = arith.constant dense<0.000000e+00> : vector<8x128xf32>
    %13 = tpu.matmul %10, %12, %cst_7 {dimension_numbers = #tpu.dot_dimension_numbers<[1], [0], [0], [1], [0, 0, 1, 1], [], []>} : vector<8x512xbf16>, vector<512x128xbf16>, vector<8x128xf32> -> vector<8x128xf32>
    %14 = arith.addf %11, %13 : vector<8x128xf32>
    %c0_8 = arith.constant 0 : index
    %c0_9 = arith.constant 0 : index
    %15 = vector.load %arg7[%c0_8, %c0_9] : memref<8x128xf32, #tpu.memory_space<vmem>>, vector<8x128xf32>
    tpu.vector_store %arg7[%c0_8, %c0_9], %14 {strides = array<i32>} : memref<8x128xf32, #tpu.memory_space<vmem>>, vector<8x128xf32>,
    %c1_i32 = arith.constant 1 : i32
    %16 = arith.cmpi eq, %arg2, %c1_i32 : i32
    %17 = arith.extui %16 : i1 to i32
    %c0_i32_10 = arith.constant 0 : i32
    %18 = arith.cmpi ne, %17, %c0_i32_10 : i32
    scf.if %18 {
      %c0_11 = arith.constant 0 : index
      %c0_12 = arith.constant 0 : index
      %19 = vector.load %arg7[%c0_11, %c0_12] : memref<8x128xf32, #tpu.memory_space<vmem>>, vector<8x128xf32>
      %c0_13 = arith.constant 0 : index
      %c0_14 = arith.constant 0 : index
      %20 = vector.load %arg5[%c0_13, %c0_14] : memref<1x128xf32, #tpu.memory_space<vmem>>, vector<1x128xf32>
      %21 = vector.broadcast %20 : vector<1x128xf32> to vector<8x128xf32>
      %22 = arith.addf %19, %21 : vector<8x128xf32>
      %c0_15 = arith.constant 0 : index
      %c0_16 = arith.constant 0 : index
      %23 = vector.load %arg6[%c0_15, %c0_16] : memref<8x128xf32, #tpu.memory_space<vmem>>, vector<8x128xf32>
      tpu.vector_store %arg6[%c0_15, %c0_16], %22 {strides = array<i32>} : memref<8x128xf32, #tpu.memory_space<vmem>>, vector<8x128xf32>,
    } else {
    }
    return
  }
  func.func @transform_0(%arg0: i32, %arg1: i32, %arg2: i32) -> (i32, i32) {
    %c0_i32 = arith.constant 0 : i32
    return %arg0, %arg2 : i32, i32
  }
  func.func @transform_1(%arg0: i32, %arg1: i32, %arg2: i32) -> (i32, i32) {
    %c0_i32 = arith.constant 0 : i32
    return %arg2, %arg1 : i32, i32
  }
  func.func @transform_2(%arg0: i32, %arg1: i32, %arg2: i32) -> (i32, i32) {
    %c0_i32 = arith.constant 0 : i32
    %c0_i32_0 = arith.constant 0 : i32
    return %c0_i32, %arg1 : i32, i32
  }
  func.func @transform_3(%arg0: i32, %arg1: i32, %arg2: i32) -> (i32, i32) {
    %c0_i32 = arith.constant 0 : i32
    return %arg0, %arg1 : i32, i32
  }
}

module attributes {stable_mosaic.version = 11 : i64} {
  func.func @_mm_kernel(%arg0: i32, %arg1: i32, %arg2: i32, %arg3: memref<8x256xbf16, #tpu.memory_space<vmem>>, %arg4: memref<256x256xbf16, #tpu.memory_space<vmem>>, %arg5: memref<1x256xf32, #tpu.memory_space<vmem>>, %arg6: memref<8x256xf32, #tpu.memory_space<vmem>>, %arg7: memref<8x256xf32, #tpu.memory_space<vmem>>) attributes {dimension_semantics = [#tpu.dimension_semantics<parallel>, #tpu.dimension_semantics<parallel>, #tpu.dimension_semantics<arbitrary>], iteration_bounds = array<i64: 1, 1, 1>, scalar_prefetch = 0 : i64, scratch_operands = 1 : i64, tpu.core_type = #tpu.core_type<tc>, window_params = [{transform_indices = @transform_0, window_bounds = array<i64: 8, 256>}, {transform_indices = @transform_1, window_bounds = array<i64: 256, 256>}, {transform_indices = @transform_2, window_bounds = array<i64: 1, 256>}, {transform_indices = @transform_3, window_bounds = array<i64: 8, 256>}]} {
    %c0_i32 = arith.constant 0 : i32
    %0 = arith.cmpi eq, %arg2, %c0_i32 : i32
    %1 = arith.extui %0 : i1 to i32
    %c0_i32_0 = arith.constant 0 : i32
    %2 = arith.cmpi ne, %1, %c0_i32_0 : i32
    scf.if %2 {
      %cst_11 = arith.constant 0.000000e+00 : f32
      %14 = vector.broadcast %cst_11 : f32 to vector<8x256xf32>
      %c0_12 = arith.constant 0 : index
      %c0_13 = arith.constant 0 : index
      %15 = vector.load %arg7[%c0_12, %c0_13] : memref<8x256xf32, #tpu.memory_space<vmem>>, vector<8x256xf32>
      tpu.vector_store %arg7[%c0_12, %c0_13], %14 {strides = array<i32>} : memref<8x256xf32, #tpu.memory_space<vmem>>, vector<8x256xf32>,
    } else {
    }
    %c0 = arith.constant 0 : index
    %c0_1 = arith.constant 0 : index
    %3 = vector.load %arg3[%c0, %c0_1] : memref<8x256xbf16, #tpu.memory_space<vmem>>, vector<8x256xbf16>
    %cst = arith.constant 0.000000e+00 : bf16
    %4 = vector.broadcast %cst : bf16 to vector<8x256xbf16>
    %5 = arith.maximumf %3, %4 : vector<8x256xbf16>
    %c0_2 = arith.constant 0 : index
    %c0_3 = arith.constant 0 : index
    %6 = vector.load %arg7[%c0_2, %c0_3] : memref<8x256xf32, #tpu.memory_space<vmem>>, vector<8x256xf32>
    %c0_4 = arith.constant 0 : index
    %c0_5 = arith.constant 0 : index
    %7 = vector.load %arg4[%c0_4, %c0_5] : memref<256x256xbf16, #tpu.memory_space<vmem>>, vector<256x256xbf16>
    %cst_6 = arith.constant dense<0.000000e+00> : vector<8x256xf32>
    %8 = tpu.matmul %5, %7, %cst_6 {dimension_numbers = #tpu.dot_dimension_numbers<[1], [0], [0], [1], [0, 0, 1, 1], [], []>} : vector<8x256xbf16>, vector<256x256xbf16>, vector<8x256xf32> -> vector<8x256xf32>
    %9 = arith.addf %6, %8 : vector<8x256xf32>
    %c0_7 = arith.constant 0 : index
    %c0_8 = arith.constant 0 : index
    %10 = vector.load %arg7[%c0_7, %c0_8] : memref<8x256xf32, #tpu.memory_space<vmem>>, vector<8x256xf32>
    tpu.vector_store %arg7[%c0_7, %c0_8], %9 {strides = array<i32>} : memref<8x256xf32, #tpu.memory_space<vmem>>, vector<8x256xf32>,
    %c0_i32_9 = arith.constant 0 : i32
    %11 = arith.cmpi eq, %arg2, %c0_i32_9 : i32
    %12 = arith.extui %11 : i1 to i32
    %c0_i32_10 = arith.constant 0 : i32
    %13 = arith.cmpi ne, %12, %c0_i32_10 : i32
    scf.if %13 {
      %c0_11 = arith.constant 0 : index
      %c0_12 = arith.constant 0 : index
      %14 = vector.load %arg7[%c0_11, %c0_12] : memref<8x256xf32, #tpu.memory_space<vmem>>, vector<8x256xf32>
      %c0_13 = arith.constant 0 : index
      %c0_14 = arith.constant 0 : index
      %15 = vector.load %arg5[%c0_13, %c0_14] : memref<1x256xf32, #tpu.memory_space<vmem>>, vector<1x256xf32>
      %16 = vector.broadcast %15 : vector<1x256xf32> to vector<8x256xf32>
      %17 = arith.addf %14, %16 : vector<8x256xf32>
      %c0_15 = arith.constant 0 : index
      %c0_16 = arith.constant 0 : index
      %18 = vector.load %arg6[%c0_15, %c0_16] : memref<8x256xf32, #tpu.memory_space<vmem>>, vector<8x256xf32>
      tpu.vector_store %arg6[%c0_15, %c0_16], %17 {strides = array<i32>} : memref<8x256xf32, #tpu.memory_space<vmem>>, vector<8x256xf32>,
    } else {
    }
    return
  }
  func.func @transform_0(%arg0: i32, %arg1: i32, %arg2: i32) -> (i32, i32) {
    %c0_i32 = arith.constant 0 : i32
    return %arg0, %arg2 : i32, i32
  }
  func.func @transform_1(%arg0: i32, %arg1: i32, %arg2: i32) -> (i32, i32) {
    %c0_i32 = arith.constant 0 : i32
    return %arg2, %arg1 : i32, i32
  }
  func.func @transform_2(%arg0: i32, %arg1: i32, %arg2: i32) -> (i32, i32) {
    %c0_i32 = arith.constant 0 : i32
    %c0_i32_0 = arith.constant 0 : i32
    return %c0_i32, %arg1 : i32, i32
  }
  func.func @transform_3(%arg0: i32, %arg1: i32, %arg2: i32) -> (i32, i32) {
    %c0_i32 = arith.constant 0 : i32
    return %arg0, %arg1 : i32, i32
  }
}

module attributes {stable_mosaic.version = 11 : i64} {
  func.func @_mm_kernel(%arg0: i32, %arg1: i32, %arg2: i32, %arg3: memref<24x512xbf16, #tpu.memory_space<vmem>>, %arg4: memref<512x128xbf16, #tpu.memory_space<vmem>>, %arg5: memref<1x128xf32, #tpu.memory_space<vmem>>, %arg6: memref<24x128xf32, #tpu.memory_space<vmem>>, %arg7: memref<24x128xf32, #tpu.memory_space<vmem>>) attributes {dimension_semantics = [#tpu.dimension_semantics<parallel>, #tpu.dimension_semantics<parallel>, #tpu.dimension_semantics<arbitrary>], iteration_bounds = array<i64: 1, 1, 1>, scalar_prefetch = 0 : i64, scratch_operands = 1 : i64, tpu.core_type = #tpu.core_type<tc>, window_params = [{transform_indices = @transform_0, window_bounds = array<i64: 24, 512>}, {transform_indices = @transform_1, window_bounds = array<i64: 512, 128>}, {transform_indices = @transform_2, window_bounds = array<i64: 1, 128>}, {transform_indices = @transform_3, window_bounds = array<i64: 24, 128>}]} {
    %c0_i32 = arith.constant 0 : i32
    %0 = arith.cmpi eq, %arg2, %c0_i32 : i32
    %1 = arith.extui %0 : i1 to i32
    %c0_i32_0 = arith.constant 0 : i32
    %2 = arith.cmpi ne, %1, %c0_i32_0 : i32
    scf.if %2 {
      %cst_11 = arith.constant 0.000000e+00 : f32
      %14 = vector.broadcast %cst_11 : f32 to vector<24x128xf32>
      %c0_12 = arith.constant 0 : index
      %c0_13 = arith.constant 0 : index
      %15 = vector.load %arg7[%c0_12, %c0_13] : memref<24x128xf32, #tpu.memory_space<vmem>>, vector<24x128xf32>
      tpu.vector_store %arg7[%c0_12, %c0_13], %14 {strides = array<i32>} : memref<24x128xf32, #tpu.memory_space<vmem>>, vector<24x128xf32>,
    } else {
    }
    %c0 = arith.constant 0 : index
    %c0_1 = arith.constant 0 : index
    %3 = vector.load %arg3[%c0, %c0_1] : memref<24x512xbf16, #tpu.memory_space<vmem>>, vector<24x512xbf16>
    %cst = arith.constant 0.000000e+00 : bf16
    %4 = vector.broadcast %cst : bf16 to vector<24x512xbf16>
    %5 = arith.maximumf %3, %4 : vector<24x512xbf16>
    %c0_2 = arith.constant 0 : index
    %c0_3 = arith.constant 0 : index
    %6 = vector.load %arg7[%c0_2, %c0_3] : memref<24x128xf32, #tpu.memory_space<vmem>>, vector<24x128xf32>
    %c0_4 = arith.constant 0 : index
    %c0_5 = arith.constant 0 : index
    %7 = vector.load %arg4[%c0_4, %c0_5] : memref<512x128xbf16, #tpu.memory_space<vmem>>, vector<512x128xbf16>
    %cst_6 = arith.constant dense<0.000000e+00> : vector<24x128xf32>
    %8 = tpu.matmul %5, %7, %cst_6 {dimension_numbers = #tpu.dot_dimension_numbers<[1], [0], [0], [1], [0, 0, 1, 1], [], []>} : vector<24x512xbf16>, vector<512x128xbf16>, vector<24x128xf32> -> vector<24x128xf32>
    %9 = arith.addf %6, %8 : vector<24x128xf32>
    %c0_7 = arith.constant 0 : index
    %c0_8 = arith.constant 0 : index
    %10 = vector.load %arg7[%c0_7, %c0_8] : memref<24x128xf32, #tpu.memory_space<vmem>>, vector<24x128xf32>
    tpu.vector_store %arg7[%c0_7, %c0_8], %9 {strides = array<i32>} : memref<24x128xf32, #tpu.memory_space<vmem>>, vector<24x128xf32>,
    %c0_i32_9 = arith.constant 0 : i32
    %11 = arith.cmpi eq, %arg2, %c0_i32_9 : i32
    %12 = arith.extui %11 : i1 to i32
    %c0_i32_10 = arith.constant 0 : i32
    %13 = arith.cmpi ne, %12, %c0_i32_10 : i32
    scf.if %13 {
      %c0_11 = arith.constant 0 : index
      %c0_12 = arith.constant 0 : index
      %14 = vector.load %arg7[%c0_11, %c0_12] : memref<24x128xf32, #tpu.memory_space<vmem>>, vector<24x128xf32>
      %c0_13 = arith.constant 0 : index
      %c0_14 = arith.constant 0 : index
      %15 = vector.load %arg5[%c0_13, %c0_14] : memref<1x128xf32, #tpu.memory_space<vmem>>, vector<1x128xf32>
      %16 = vector.broadcast %15 : vector<1x128xf32> to vector<24x128xf32>
      %17 = arith.addf %14, %16 : vector<24x128xf32>
      %c0_15 = arith.constant 0 : index
      %c0_16 = arith.constant 0 : index
      %18 = vector.load %arg6[%c0_15, %c0_16] : memref<24x128xf32, #tpu.memory_space<vmem>>, vector<24x128xf32>
      tpu.vector_store %arg6[%c0_15, %c0_16], %17 {strides = array<i32>} : memref<24x128xf32, #tpu.memory_space<vmem>>, vector<24x128xf32>,
    } else {
    }
    return
  }
  func.func @transform_0(%arg0: i32, %arg1: i32, %arg2: i32) -> (i32, i32) {
    %c0_i32 = arith.constant 0 : i32
    return %arg0, %arg2 : i32, i32
  }
  func.func @transform_1(%arg0: i32, %arg1: i32, %arg2: i32) -> (i32, i32) {
    %c0_i32 = arith.constant 0 : i32
    return %arg2, %arg1 : i32, i32
  }
  func.func @transform_2(%arg0: i32, %arg1: i32, %arg2: i32) -> (i32, i32) {
    %c0_i32 = arith.constant 0 : i32
    %c0_i32_0 = arith.constant 0 : i32
    return %c0_i32, %arg1 : i32, i32
  }
  func.func @transform_3(%arg0: i32, %arg1: i32, %arg2: i32) -> (i32, i32) {
    %c0_i32 = arith.constant 0 : i32
    return %arg0, %arg1 : i32, i32
  }
}

module attributes {stable_mosaic.version = 11 : i64} {
  func.func @_mm_kernel(%arg0: i32, %arg1: i32, %arg2: i32, %arg3: memref<56x256xbf16, #tpu.memory_space<vmem>>, %arg4: memref<256x128xbf16, #tpu.memory_space<vmem>>, %arg5: memref<1x128xf32, #tpu.memory_space<vmem>>, %arg6: memref<56x128xf32, #tpu.memory_space<vmem>>, %arg7: memref<56x128xf32, #tpu.memory_space<vmem>>) attributes {dimension_semantics = [#tpu.dimension_semantics<parallel>, #tpu.dimension_semantics<parallel>, #tpu.dimension_semantics<arbitrary>], iteration_bounds = array<i64: 1, 1, 1>, scalar_prefetch = 0 : i64, scratch_operands = 1 : i64, tpu.core_type = #tpu.core_type<tc>, window_params = [{transform_indices = @transform_0, window_bounds = array<i64: 56, 256>}, {transform_indices = @transform_1, window_bounds = array<i64: 256, 128>}, {transform_indices = @transform_2, window_bounds = array<i64: 1, 128>}, {transform_indices = @transform_3, window_bounds = array<i64: 56, 128>}]} {
    %c0_i32 = arith.constant 0 : i32
    %0 = arith.cmpi eq, %arg2, %c0_i32 : i32
    %1 = arith.extui %0 : i1 to i32
    %c0_i32_0 = arith.constant 0 : i32
    %2 = arith.cmpi ne, %1, %c0_i32_0 : i32
    scf.if %2 {
      %cst_11 = arith.constant 0.000000e+00 : f32
      %14 = vector.broadcast %cst_11 : f32 to vector<56x128xf32>
      %c0_12 = arith.constant 0 : index
      %c0_13 = arith.constant 0 : index
      %15 = vector.load %arg7[%c0_12, %c0_13] : memref<56x128xf32, #tpu.memory_space<vmem>>, vector<56x128xf32>
      tpu.vector_store %arg7[%c0_12, %c0_13], %14 {strides = array<i32>} : memref<56x128xf32, #tpu.memory_space<vmem>>, vector<56x128xf32>,
    } else {
    }
    %c0 = arith.constant 0 : index
    %c0_1 = arith.constant 0 : index
    %3 = vector.load %arg3[%c0, %c0_1] : memref<56x256xbf16, #tpu.memory_space<vmem>>, vector<56x256xbf16>
    %cst = arith.constant 0.000000e+00 : bf16
    %4 = vector.broadcast %cst : bf16 to vector<56x256xbf16>
    %5 = arith.maximumf %3, %4 : vector<56x256xbf16>
    %c0_2 = arith.constant 0 : index
    %c0_3 = arith.constant 0 : index
    %6 = vector.load %arg7[%c0_2, %c0_3] : memref<56x128xf32, #tpu.memory_space<vmem>>, vector<56x128xf32>
    %c0_4 = arith.constant 0 : index
    %c0_5 = arith.constant 0 : index
    %7 = vector.load %arg4[%c0_4, %c0_5] : memref<256x128xbf16, #tpu.memory_space<vmem>>, vector<256x128xbf16>
    %cst_6 = arith.constant dense<0.000000e+00> : vector<56x128xf32>
    %8 = tpu.matmul %5, %7, %cst_6 {dimension_numbers = #tpu.dot_dimension_numbers<[1], [0], [0], [1], [0, 0, 1, 1], [], []>} : vector<56x256xbf16>, vector<256x128xbf16>, vector<56x128xf32> -> vector<56x128xf32>
    %9 = arith.addf %6, %8 : vector<56x128xf32>
    %c0_7 = arith.constant 0 : index
    %c0_8 = arith.constant 0 : index
    %10 = vector.load %arg7[%c0_7, %c0_8] : memref<56x128xf32, #tpu.memory_space<vmem>>, vector<56x128xf32>
    tpu.vector_store %arg7[%c0_7, %c0_8], %9 {strides = array<i32>} : memref<56x128xf32, #tpu.memory_space<vmem>>, vector<56x128xf32>,
    %c0_i32_9 = arith.constant 0 : i32
    %11 = arith.cmpi eq, %arg2, %c0_i32_9 : i32
    %12 = arith.extui %11 : i1 to i32
    %c0_i32_10 = arith.constant 0 : i32
    %13 = arith.cmpi ne, %12, %c0_i32_10 : i32
    scf.if %13 {
      %c0_11 = arith.constant 0 : index
      %c0_12 = arith.constant 0 : index
      %14 = vector.load %arg7[%c0_11, %c0_12] : memref<56x128xf32, #tpu.memory_space<vmem>>, vector<56x128xf32>
      %c0_13 = arith.constant 0 : index
      %c0_14 = arith.constant 0 : index
      %15 = vector.load %arg5[%c0_13, %c0_14] : memref<1x128xf32, #tpu.memory_space<vmem>>, vector<1x128xf32>
      %16 = vector.broadcast %15 : vector<1x128xf32> to vector<56x128xf32>
      %17 = arith.addf %14, %16 : vector<56x128xf32>
      %c0_15 = arith.constant 0 : index
      %c0_16 = arith.constant 0 : index
      %18 = vector.load %arg6[%c0_15, %c0_16] : memref<56x128xf32, #tpu.memory_space<vmem>>, vector<56x128xf32>
      tpu.vector_store %arg6[%c0_15, %c0_16], %17 {strides = array<i32>} : memref<56x128xf32, #tpu.memory_space<vmem>>, vector<56x128xf32>,
    } else {
    }
    return
  }
  func.func @transform_0(%arg0: i32, %arg1: i32, %arg2: i32) -> (i32, i32) {
    %c0_i32 = arith.constant 0 : i32
    return %arg0, %arg2 : i32, i32
  }
  func.func @transform_1(%arg0: i32, %arg1: i32, %arg2: i32) -> (i32, i32) {
    %c0_i32 = arith.constant 0 : i32
    return %arg2, %arg1 : i32, i32
  }
  func.func @transform_2(%arg0: i32, %arg1: i32, %arg2: i32) -> (i32, i32) {
    %c0_i32 = arith.constant 0 : i32
    %c0_i32_0 = arith.constant 0 : i32
    return %c0_i32, %arg1 : i32, i32
  }
  func.func @transform_3(%arg0: i32, %arg1: i32, %arg2: i32) -> (i32, i32) {
    %c0_i32 = arith.constant 0 : i32
    return %arg0, %arg1 : i32, i32
  }
}

module attributes {stable_mosaic.version = 11 : i64} {
  func.func @_mm_kernel(%arg0: i32, %arg1: i32, %arg2: i32, %arg3: memref<168x128xbf16, #tpu.memory_space<vmem>>, %arg4: memref<128x128xbf16, #tpu.memory_space<vmem>>, %arg5: memref<1x128xf32, #tpu.memory_space<vmem>>, %arg6: memref<168x128xf32, #tpu.memory_space<vmem>>, %arg7: memref<168x128xf32, #tpu.memory_space<vmem>>) attributes {dimension_semantics = [#tpu.dimension_semantics<parallel>, #tpu.dimension_semantics<parallel>, #tpu.dimension_semantics<arbitrary>], iteration_bounds = array<i64: 1, 1, 1>, scalar_prefetch = 0 : i64, scratch_operands = 1 : i64, tpu.core_type = #tpu.core_type<tc>, window_params = [{transform_indices = @transform_0, window_bounds = array<i64: 168, 128>}, {transform_indices = @transform_1, window_bounds = array<i64: 128, 128>}, {transform_indices = @transform_2, window_bounds = array<i64: 1, 128>}, {transform_indices = @transform_3, window_bounds = array<i64: 168, 128>}]} {
    %c0_i32 = arith.constant 0 : i32
    %0 = arith.cmpi eq, %arg2, %c0_i32 : i32
    %1 = arith.extui %0 : i1 to i32
    %c0_i32_0 = arith.constant 0 : i32
    %2 = arith.cmpi ne, %1, %c0_i32_0 : i32
    scf.if %2 {
      %cst_11 = arith.constant 0.000000e+00 : f32
      %14 = vector.broadcast %cst_11 : f32 to vector<168x128xf32>
      %c0_12 = arith.constant 0 : index
      %c0_13 = arith.constant 0 : index
      %15 = vector.load %arg7[%c0_12, %c0_13] : memref<168x128xf32, #tpu.memory_space<vmem>>, vector<168x128xf32>
      tpu.vector_store %arg7[%c0_12, %c0_13], %14 {strides = array<i32>} : memref<168x128xf32, #tpu.memory_space<vmem>>, vector<168x128xf32>,
    } else {
    }
    %c0 = arith.constant 0 : index
    %c0_1 = arith.constant 0 : index
    %3 = vector.load %arg3[%c0, %c0_1] : memref<168x128xbf16, #tpu.memory_space<vmem>>, vector<168x128xbf16>
    %cst = arith.constant 0.000000e+00 : bf16
    %4 = vector.broadcast %cst : bf16 to vector<168x128xbf16>
    %5 = arith.maximumf %3, %4 : vector<168x128xbf16>
    %c0_2 = arith.constant 0 : index
    %c0_3 = arith.constant 0 : index
    %6 = vector.load %arg7[%c0_2, %c0_3] : memref<168x128xf32, #tpu.memory_space<vmem>>, vector<168x128xf32>
    %c0_4 = arith.constant 0 : index
    %c0_5 = arith.constant 0 : index
    %7 = vector.load %arg4[%c0_4, %c0_5] : memref<128x128xbf16, #tpu.memory_space<vmem>>, vector<128x128xbf16>
    %cst_6 = arith.constant dense<0.000000e+00> : vector<168x128xf32>
    %8 = tpu.matmul %5, %7, %cst_6 {dimension_numbers = #tpu.dot_dimension_numbers<[1], [0], [0], [1], [0, 0, 1, 1], [], []>} : vector<168x128xbf16>, vector<128x128xbf16>, vector<168x128xf32> -> vector<168x128xf32>
    %9 = arith.addf %6, %8 : vector<168x128xf32>
    %c0_7 = arith.constant 0 : index
    %c0_8 = arith.constant 0 : index
    %10 = vector.load %arg7[%c0_7, %c0_8] : memref<168x128xf32, #tpu.memory_space<vmem>>, vector<168x128xf32>
    tpu.vector_store %arg7[%c0_7, %c0_8], %9 {strides = array<i32>} : memref<168x128xf32, #tpu.memory_space<vmem>>, vector<168x128xf32>,
    %c0_i32_9 = arith.constant 0 : i32
    %11 = arith.cmpi eq, %arg2, %c0_i32_9 : i32
    %12 = arith.extui %11 : i1 to i32
    %c0_i32_10 = arith.constant 0 : i32
    %13 = arith.cmpi ne, %12, %c0_i32_10 : i32
    scf.if %13 {
      %c0_11 = arith.constant 0 : index
      %c0_12 = arith.constant 0 : index
      %14 = vector.load %arg7[%c0_11, %c0_12] : memref<168x128xf32, #tpu.memory_space<vmem>>, vector<168x128xf32>
      %c0_13 = arith.constant 0 : index
      %c0_14 = arith.constant 0 : index
      %15 = vector.load %arg5[%c0_13, %c0_14] : memref<1x128xf32, #tpu.memory_space<vmem>>, vector<1x128xf32>
      %16 = vector.broadcast %15 : vector<1x128xf32> to vector<168x128xf32>
      %17 = arith.addf %14, %16 : vector<168x128xf32>
      %c0_15 = arith.constant 0 : index
      %c0_16 = arith.constant 0 : index
      %18 = vector.load %arg6[%c0_15, %c0_16] : memref<168x128xf32, #tpu.memory_space<vmem>>, vector<168x128xf32>
      tpu.vector_store %arg6[%c0_15, %c0_16], %17 {strides = array<i32>} : memref<168x128xf32, #tpu.memory_space<vmem>>, vector<168x128xf32>,
    } else {
    }
    return
  }
  func.func @transform_0(%arg0: i32, %arg1: i32, %arg2: i32) -> (i32, i32) {
    %c0_i32 = arith.constant 0 : i32
    return %arg0, %arg2 : i32, i32
  }
  func.func @transform_1(%arg0: i32, %arg1: i32, %arg2: i32) -> (i32, i32) {
    %c0_i32 = arith.constant 0 : i32
    return %arg2, %arg1 : i32, i32
  }
  func.func @transform_2(%arg0: i32, %arg1: i32, %arg2: i32) -> (i32, i32) {
    %c0_i32 = arith.constant 0 : i32
    %c0_i32_0 = arith.constant 0 : i32
    return %c0_i32, %arg1 : i32, i32
  }
  func.func @transform_3(%arg0: i32, %arg1: i32, %arg2: i32) -> (i32, i32) {
    %c0_i32 = arith.constant 0 : i32
    return %arg0, %arg1 : i32, i32
  }
}

module attributes {stable_mosaic.version = 11 : i64} {
  func.func @_mm_kernel(%arg0: i32, %arg1: i32, %arg2: i32, %arg3: memref<256x128xbf16, #tpu.memory_space<vmem>>, %arg4: memref<128x128xbf16, #tpu.memory_space<vmem>>, %arg5: memref<1x128xf32, #tpu.memory_space<vmem>>, %arg6: memref<256x128xf32, #tpu.memory_space<vmem>>, %arg7: memref<256x128xf32, #tpu.memory_space<vmem>>) attributes {dimension_semantics = [#tpu.dimension_semantics<parallel>, #tpu.dimension_semantics<parallel>, #tpu.dimension_semantics<arbitrary>], iteration_bounds = array<i64: 3, 1, 1>, scalar_prefetch = 0 : i64, scratch_operands = 1 : i64, tpu.core_type = #tpu.core_type<tc>, window_params = [{transform_indices = @transform_0, window_bounds = array<i64: 256, 128>}, {transform_indices = @transform_1, window_bounds = array<i64: 128, 128>}, {transform_indices = @transform_2, window_bounds = array<i64: 1, 128>}, {transform_indices = @transform_3, window_bounds = array<i64: 256, 128>}]} {
    %c0_i32 = arith.constant 0 : i32
    %0 = arith.cmpi eq, %arg2, %c0_i32 : i32
    %1 = arith.extui %0 : i1 to i32
    %c0_i32_0 = arith.constant 0 : i32
    %2 = arith.cmpi ne, %1, %c0_i32_0 : i32
    scf.if %2 {
      %cst_11 = arith.constant 0.000000e+00 : f32
      %14 = vector.broadcast %cst_11 : f32 to vector<256x128xf32>
      %c0_12 = arith.constant 0 : index
      %c0_13 = arith.constant 0 : index
      %15 = vector.load %arg7[%c0_12, %c0_13] : memref<256x128xf32, #tpu.memory_space<vmem>>, vector<256x128xf32>
      tpu.vector_store %arg7[%c0_12, %c0_13], %14 {strides = array<i32>} : memref<256x128xf32, #tpu.memory_space<vmem>>, vector<256x128xf32>,
    } else {
    }
    %c0 = arith.constant 0 : index
    %c0_1 = arith.constant 0 : index
    %3 = vector.load %arg3[%c0, %c0_1] : memref<256x128xbf16, #tpu.memory_space<vmem>>, vector<256x128xbf16>
    %cst = arith.constant 0.000000e+00 : bf16
    %4 = vector.broadcast %cst : bf16 to vector<256x128xbf16>
    %5 = arith.maximumf %3, %4 : vector<256x128xbf16>
    %c0_2 = arith.constant 0 : index
    %c0_3 = arith.constant 0 : index
    %6 = vector.load %arg7[%c0_2, %c0_3] : memref<256x128xf32, #tpu.memory_space<vmem>>, vector<256x128xf32>
    %c0_4 = arith.constant 0 : index
    %c0_5 = arith.constant 0 : index
    %7 = vector.load %arg4[%c0_4, %c0_5] : memref<128x128xbf16, #tpu.memory_space<vmem>>, vector<128x128xbf16>
    %cst_6 = arith.constant dense<0.000000e+00> : vector<256x128xf32>
    %8 = tpu.matmul %5, %7, %cst_6 {dimension_numbers = #tpu.dot_dimension_numbers<[1], [0], [0], [1], [0, 0, 1, 1], [], []>} : vector<256x128xbf16>, vector<128x128xbf16>, vector<256x128xf32> -> vector<256x128xf32>
    %9 = arith.addf %6, %8 : vector<256x128xf32>
    %c0_7 = arith.constant 0 : index
    %c0_8 = arith.constant 0 : index
    %10 = vector.load %arg7[%c0_7, %c0_8] : memref<256x128xf32, #tpu.memory_space<vmem>>, vector<256x128xf32>
    tpu.vector_store %arg7[%c0_7, %c0_8], %9 {strides = array<i32>} : memref<256x128xf32, #tpu.memory_space<vmem>>, vector<256x128xf32>,
    %c0_i32_9 = arith.constant 0 : i32
    %11 = arith.cmpi eq, %arg2, %c0_i32_9 : i32
    %12 = arith.extui %11 : i1 to i32
    %c0_i32_10 = arith.constant 0 : i32
    %13 = arith.cmpi ne, %12, %c0_i32_10 : i32
    scf.if %13 {
      %c0_11 = arith.constant 0 : index
      %c0_12 = arith.constant 0 : index
      %14 = vector.load %arg7[%c0_11, %c0_12] : memref<256x128xf32, #tpu.memory_space<vmem>>, vector<256x128xf32>
      %c0_13 = arith.constant 0 : index
      %c0_14 = arith.constant 0 : index
      %15 = vector.load %arg5[%c0_13, %c0_14] : memref<1x128xf32, #tpu.memory_space<vmem>>, vector<1x128xf32>
      %16 = vector.broadcast %15 : vector<1x128xf32> to vector<256x128xf32>
      %17 = arith.addf %14, %16 : vector<256x128xf32>
      %18 = math.tanh %17 : vector<256x128xf32>
      %c0_15 = arith.constant 0 : index
      %c0_16 = arith.constant 0 : index
      %19 = vector.load %arg6[%c0_15, %c0_16] : memref<256x128xf32, #tpu.memory_space<vmem>>, vector<256x128xf32>
      tpu.vector_store %arg6[%c0_15, %c0_16], %18 {strides = array<i32>} : memref<256x128xf32, #tpu.memory_space<vmem>>, vector<256x128xf32>,
    } else {
    }
    return
  }
  func.func @transform_0(%arg0: i32, %arg1: i32, %arg2: i32) -> (i32, i32) {
    %c0_i32 = arith.constant 0 : i32
    return %arg0, %arg2 : i32, i32
  }
  func.func @transform_1(%arg0: i32, %arg1: i32, %arg2: i32) -> (i32, i32) {
    %c0_i32 = arith.constant 0 : i32
    return %arg2, %arg1 : i32, i32
  }
  func.func @transform_2(%arg0: i32, %arg1: i32, %arg2: i32) -> (i32, i32) {
    %c0_i32 = arith.constant 0 : i32
    %c0_i32_0 = arith.constant 0 : i32
    return %c0_i32, %arg1 : i32, i32
  }
  func.func @transform_3(%arg0: i32, %arg1: i32, %arg2: i32) -> (i32, i32) {
    %c0_i32 = arith.constant 0 : i32
    return %arg0, %arg1 : i32, i32
  }
}

</mosaic_0001>

<bundles_post_ra>
// kernel: _lambda_.10
= control target key start
LH: loop header
LB: loop body
LE: loop exit
PB: predicated region body
PF: predicated region fallthrough
CT: control target
= control target key end

     0   :  { %s1180_s12 = smov 0   ;;  %s1182_s13 = smov 0   ;;  %s1330_s0 = inlined_call_operand.vmem [shape: bf16[512,128], index: 0, kind: input, shape index: {}]   ;;  %s1331_s1 = inlined_call_operand.vmem [shape: bf16[128,128], index: 1, kind: input, shape index: {}]   ;;  %s1332_s2 = inlined_call_operand.vmem [shape: f32[1,128], index: 2, kind: input, shape index: {}]   ;;  %s1333_s3 = inlined_call_operand.vmem [shape: f32[512,128], index: 3, kind: output, shape index: {}]  }
   0x1   :  { %s1184_s14 = smov 0  }
   0x2 LB: > { %s32_s15 = sadd.s32 1, %s1154_s13  ;;  %p968_p0 = scmp.ge.s32.totalorder %s1158_s14, 1  ;;  %s1158_s14 = sphi %s1184_s14, %s13_s14   ;;  %s1154_s13 = sphi %s1182_s13, %s1335_s13   ;;  %s1150_s12 = sphi %s1180_s12, %s1334_s12  }
   0x3   : > { %p34_p1 = scmp.ge.s32.totalorder %s32_s15, 2  ;;  %p188_p2 = scmp.lt.s32.totalorder %s1158_s14, 3 }
   0x5   : > { %s1337_s15 = smov (%p34_p1, %s32_s15), 0  ;;  %p189_p3 = pnand %p968_p0, %p188_p2 }
   0x6   : > { %v1112_v0 = vld [vmem:[%s1331_s1] sm:$0xff] (!%p189_p3)   ;;  %s969_s18 = sshll.u32 (!%p189_p3), %s1150_s12, 5  ;;  %v1113_v1 = vld [vmem:[%s1331_s1 + $0x8] sm:$0xff] (!%p189_p3)   ;;  %v1114_v2 = vld [vmem:[%s1331_s1 + $0x10] sm:$0xff] (!%p189_p3)  }
   0x7   : > { %192 = sbr.rel (%p189_p3) target bundleno = 281 (0x119), region = 32  ;;  %p230_p4 = scmp.lt.s32.totalorder (!%p189_p3), %s969_s18, 63  ;;  %1024 = vmatprep.subr.bf16.mxu0 (!%p189_p3), %v1112_v0  ;;  %1072 = vmatprep.subr.bf16.mxu1 (!%p189_p3), %v1112_v0  ;;  %v1115_v3 = vld [vmem:[%s1331_s1 + $0x18] sm:$0xff] (!%p189_p3)   ;;  %v1116_v6 = vld [vmem:[%s1331_s1 + $0x20] sm:$0xff] (!%p189_p3)   ;;  %v1117_v7 = vld [vmem:[%s1331_s1 + $0x28] sm:$0xff] (!%p189_p3)  }
   0x8   : > { %1025 = vmatpush3.bf16.msra.mxu0 (!%p189_p3), %v1112_v0  ;;  %1080 = vmatpush3.bf16.msra.mxu1 (!%p189_p3), %v1112_v0  ;;  %v1118_v8 = vld [vmem:[%s1331_s1 + $0x30] sm:$0xff] (!%p189_p3)   ;;  %v1119_v9 = vld [vmem:[%s1331_s1 + $0x38] sm:$0xff] (!%p189_p3)   ;;  %v1250_v24 = vld [vmem:[%s1332_s2] ss:$0 sm:$0xff] (!%p189_p3) }
   0x9   : > { %1026 = vmatprep.subr.bf16.mxu0 (!%p189_p3), %v1113_v1  ;;  %1073 = vmatprep.subr.bf16.mxu1 (!%p189_p3), %v1113_v1 }
   0xc   : > { %1027 = vmatpush3.bf16.msra.mxu0 (!%p189_p3), %v1113_v1  ;;  %1081 = vmatpush3.bf16.msra.mxu1 (!%p189_p3), %v1113_v1 }
   0xd   : > { %1028 = vmatprep.subr.bf16.mxu0 (!%p189_p3), %v1114_v2  ;;  %1074 = vmatprep.subr.bf16.mxu1 (!%p189_p3), %v1114_v2 }
   0xe   : > { %s1339_s18 = smov (!%p230_p4, %s969_s18), 63 }
   0xf   : > { %s970_s23 = sshll.u32 %s1339_s18, 2  ;;  %s972_s10 = sshll.u32 %s1339_s18, 3 }
  0x10   : > { %s1213_s26 = scalar_lea.vmem %s1330_s0, %s970_s23  ;;  %1029 = vmatpush3.bf16.msra.mxu0 %v1114_v2  ;;  %1082 = vmatpush3.bf16.msra.mxu1 %v1114_v2  ;;  %s1255_s19 = scalar_lea.vmem %s1333_s3, %s972_s10 }
  0x11   : > { %v1120_v4 = vld [vmem:[%s1213_s26] sm:$0xff]   ;;  %1030 = vmatprep.subr.bf16.mxu0 %v1115_v3  ;;  %1075 = vmatprep.subr.bf16.mxu1 %v1115_v3  ;;  %v1122_v10 = vld [vmem:[%s1213_s26 + $0x8] sm:$0xff]   ;;  %v1124_v12 = vld [vmem:[%s1213_s26 + $0x10] sm:$0xff]  }
  0x12   : > { %v1121_v5 = vld [vmem:[%s1213_s26 + $0x40] sm:$0xff]   ;;  %1040 = vmatprep.mubr.bf16.mxu0 %v1120_v4  ;;  %v1123_v11 = vld [vmem:[%s1213_s26 + $0x48] sm:$0xff]   ;;  %v1125_v13 = vld [vmem:[%s1213_s26 + $0x50] sm:$0xff]  }
  0x13   : > { %1056 = vmatprep.mubr.bf16.mxu1 %v1121_v5  ;;  %v1126_v14 = vld [vmem:[%s1213_s26 + $0x18] sm:$0xff]   ;;  %v1128_v16 = vld [vmem:[%s1213_s26 + $0x20] sm:$0xff]   ;;  %v1130_v18 = vld [vmem:[%s1213_s26 + $0x28] sm:$0xff]  }
  0x14   : > { %1031 = vmatpush3.bf16.msra.mxu0 %v1115_v3  ;;  %1083 = vmatpush3.bf16.msra.mxu1 %v1115_v3  ;;  %v1127_v15 = vld [vmem:[%s1213_s26 + $0x58] sm:$0xff]   ;;  %v1129_v17 = vld [vmem:[%s1213_s26 + $0x60] sm:$0xff]   ;;  %v1131_v19 = vld [vmem:[%s1213_s26 + $0x68] sm:$0xff]  }
  0x15   : > { %1032 = vmatprep.subr.bf16.mxu0 %v1116_v6  ;;  %1076 = vmatprep.subr.bf16.mxu1 %v1116_v6  ;;  %v1132_v20 = vld [vmem:[%s1213_s26 + $0x30] sm:$0xff]   ;;  %v1134_v22 = vld [vmem:[%s1213_s26 + $0x38] sm:$0xff]  }
  0x16   : > { %v1133_v21 = vld [vmem:[%s1213_s26 + $0x70] sm:$0xff]   ;;  %v1135_v23 = vld [vmem:[%s1213_s26 + $0x78] sm:$0xff]  }
  0x18   : > { %1033 = vmatpush3.bf16.msra.mxu0 %v1116_v6  ;;  %1084 = vmatpush3.bf16.msra.mxu1 %v1116_v6 }
  0x19   : > { %1034 = vmatprep.subr.bf16.mxu0 %v1117_v7  ;;  %1077 = vmatprep.subr.bf16.mxu1 %v1117_v7 }
  0x1c   : > { %1035 = vmatpush3.bf16.msra.mxu0 %v1117_v7  ;;  %1085 = vmatpush3.bf16.msra.mxu1 %v1117_v7 }
  0x1d   : > { %1036 = vmatprep.subr.bf16.mxu0 %v1118_v8  ;;  %1078 = vmatprep.subr.bf16.mxu1 %v1118_v8 }
  0x20   : > { %1037 = vmatpush3.bf16.msra.mxu0 %v1118_v8  ;;  %1086 = vmatpush3.bf16.msra.mxu1 %v1118_v8 }
  0x21   : > { %1038 = vmatprep.subr.bf16.mxu0 %v1119_v9  ;;  %1079 = vmatprep.subr.bf16.mxu1 %v1119_v9 }
  0x24   : > { %1039 = vmatpush3.bf16.msra.mxu0 %v1119_v9  ;;  %1087 = vmatpush3.bf16.msra.mxu1 %v1119_v9 }
  0x27   : > { %1041 = vmatmul.mubr.bf16.vlgmr.msra.gmra.mrb[0].mxu0 %v1122_v10  ;;  %1057 = vmatmul.mubr.bf16.vlgmr.msra.gmra.mrb[0].mxu1 %v1123_v11 }
  0x28   : > { %1044 = vmatprep.mubr.bf16.mxu0 %v1124_v12  ;;  %1060 = vmatprep.mubr.bf16.mxu1 %v1125_v13 }
  0x2f   : > { %1045 = vmatmul.mubr.bf16.gmra.mrb[4].mxu0 %v1126_v14  ;;  %1061 = vmatmul.mubr.bf16.gmra.mrb[4].mxu1 %v1127_v15 }
  0x30   : > { %1048 = vmatprep.mubr.bf16.mxu0 %v1128_v16  ;;  %1064 = vmatprep.mubr.bf16.mxu1 %v1129_v17 }
  0x37   : > { %1049 = vmatmul.mubr.bf16.gmra.mrb[8].mxu0 %v1130_v18  ;;  %1065 = vmatmul.mubr.bf16.gmra.mrb[8].mxu1 %v1131_v19 }
  0x38   : > { %1052 = vmatprep.mubr.bf16.mxu0 %v1132_v20  ;;  %1068 = vmatprep.mubr.bf16.mxu1 %v1133_v21 }
  0x3f   : > { %1053 = vmatmul.mubr.bf16.gmra.mrb[12].mxu0 %v1134_v22  ;;  %1069 = vmatmul.mubr.bf16.gmra.mrb[12].mxu1 %v1135_v23 }
  0xfa   : > { %v1042_v25 = vpop.f32.mrb[0].mxu0  ;;  %v1058_v26 = vpop.f32.mrb[0].mxu1 }
  0xfb   : > { %v789_v27 = vadd.f32 %v1042_v25, %v1250_v24  ;;  %v805_v28 = vadd.f32 %v1058_v26, %v1250_v24  ;;  %v554_v29 = vpop.f32.mrb[1].mxu0  ;;  %v618_v30 = vpop.f32.mrb[1].mxu1 }
  0xfc   : > { %v787_v31 = vadd.f32 %v1250_v24, %v554_v29  ;;  %v803_v32 = vadd.f32 %v1250_v24, %v618_v30  ;;  %v1043_v33 = vpop.f32.mrb[2].mxu0  ;;  %v1059_v34 = vpop.f32.mrb[2].mxu1 }
  0xfd   : > { %821 = vst [vmem:[%s1255_s19 + $0x10] sm:$0xff] %v789_v27  ;;  %837 = vst [vmem:[%s1255_s19 + $0x90] sm:$0xff] %v805_v28  ;;  %v790_v35 = vadd.f32 %v1043_v33, %v1250_v24  ;;  %v806_v36 = vadd.f32 %v1059_v34, %v1250_v24  ;;  %v557_v37 = vpop.f32.mrb[3].mxu0  ;;  %v621_v38 = vpop.f32.mrb[3].mxu1 }
  0xfe   : > { %819 = vst [vmem:[%s1255_s19] sm:$0xff] %v787_v31  ;;  %835 = vst [vmem:[%s1255_s19 + $0x80] sm:$0xff] %v803_v32  ;;  %v788_v39 = vadd.f32 %v1250_v24, %v557_v37  ;;  %v804_v40 = vadd.f32 %v1250_v24, %v621_v38 }
  0xff   : > { %822 = vst [vmem:[%s1255_s19 + $0x18] sm:$0xff] %v790_v35  ;;  %838 = vst [vmem:[%s1255_s19 + $0x98] sm:$0xff] %v806_v36 }
 0x100   : > { %820 = vst [vmem:[%s1255_s19 + $0x8] sm:$0xff] %v788_v39  ;;  %836 = vst [vmem:[%s1255_s19 + $0x88] sm:$0xff] %v804_v40 }
 0x102   : > { %v1046_v41 = vpop.f32.mrb[4].mxu0  ;;  %v1062_v42 = vpop.f32.mrb[4].mxu1 }
 0x103   : > { %v793_v43 = vadd.f32 %v1046_v41, %v1250_v24  ;;  %v809_v44 = vadd.f32 %v1062_v42, %v1250_v24  ;;  %v570_v45 = vpop.f32.mrb[5].mxu0  ;;  %v634_v46 = vpop.f32.mrb[5].mxu1 }
 0x104   : > { %v791_v47 = vadd.f32 %v1250_v24, %v570_v45  ;;  %v807_v48 = vadd.f32 %v1250_v24, %v634_v46  ;;  %v1047_v49 = vpop.f32.mrb[6].mxu0  ;;  %v1063_v50 = vpop.f32.mrb[6].mxu1 }
 0x105   : > { %825 = vst [vmem:[%s1255_s19 + $0x30] sm:$0xff] %v793_v43  ;;  %841 = vst [vmem:[%s1255_s19 + $0xb0] sm:$0xff] %v809_v44  ;;  %v794_v51 = vadd.f32 %v1047_v49, %v1250_v24  ;;  %v810_v52 = vadd.f32 %v1063_v50, %v1250_v24  ;;  %v573_v53 = vpop.f32.mrb[7].mxu0  ;;  %v637_v54 = vpop.f32.mrb[7].mxu1 }
 0x106   : > { %823 = vst [vmem:[%s1255_s19 + $0x20] sm:$0xff] %v791_v47  ;;  %839 = vst [vmem:[%s1255_s19 + $0xa0] sm:$0xff] %v807_v48  ;;  %v792_v55 = vadd.f32 %v1250_v24, %v573_v53  ;;  %v808_v56 = vadd.f32 %v1250_v24, %v637_v54 }
 0x107   : > { %826 = vst [vmem:[%s1255_s19 + $0x38] sm:$0xff] %v794_v51  ;;  %842 = vst [vmem:[%s1255_s19 + $0xb8] sm:$0xff] %v810_v52 }
 0x108   : > { %824 = vst [vmem:[%s1255_s19 + $0x28] sm:$0xff] %v792_v55  ;;  %840 = vst [vmem:[%s1255_s19 + $0xa8] sm:$0xff] %v808_v56 }
 0x10a   : > { %v1050_v57 = vpop.f32.mrb[8].mxu0  ;;  %v1066_v58 = vpop.f32.mrb[8].mxu1 }
 0x10b   : > { %v797_v59 = vadd.f32 %v1050_v57, %v1250_v24  ;;  %v813_v60 = vadd.f32 %v1066_v58, %v1250_v24  ;;  %v586_v61 = vpop.f32.mrb[9].mxu0  ;;  %v650_v62 = vpop.f32.mrb[9].mxu1 }
 0x10c   : > { %v795_v63 = vadd.f32 %v1250_v24, %v586_v61  ;;  %v811_v0 = vadd.f32 %v1250_v24, %v650_v62  ;;  %v1051_v1 = vpop.f32.mrb[10].mxu0  ;;  %v1067_v2 = vpop.f32.mrb[10].mxu1 }
 0x10d   : > { %829 = vst [vmem:[%s1255_s19 + $0x50] sm:$0xff] %v797_v59  ;;  %845 = vst [vmem:[%s1255_s19 + $0xd0] sm:$0xff] %v813_v60  ;;  %v798_v3 = vadd.f32 %v1051_v1, %v1250_v24  ;;  %v814_v4 = vadd.f32 %v1067_v2, %v1250_v24  ;;  %v589_v5 = vpop.f32.mrb[11].mxu0  ;;  %v653_v6 = vpop.f32.mrb[11].mxu1 }
 0x10e   : > { %827 = vst [vmem:[%s1255_s19 + $0x40] sm:$0xff] %v795_v63  ;;  %843 = vst [vmem:[%s1255_s19 + $0xc0] sm:$0xff] %v811_v0  ;;  %v796_v7 = vadd.f32 %v1250_v24, %v589_v5  ;;  %v812_v8 = vadd.f32 %v1250_v24, %v653_v6 }
 0x10f   : > { %830 = vst [vmem:[%s1255_s19 + $0x58] sm:$0xff] %v798_v3  ;;  %846 = vst [vmem:[%s1255_s19 + $0xd8] sm:$0xff] %v814_v4 }
 0x110   : > { %828 = vst [vmem:[%s1255_s19 + $0x48] sm:$0xff] %v796_v7  ;;  %844 = vst [vmem:[%s1255_s19 + $0xc8] sm:$0xff] %v812_v8 }
 0x112   : > { %v1054_v9 = vpop.f32.mrb[12].mxu0  ;;  %v1070_v10 = vpop.f32.mrb[12].mxu1 }
 0x113   : > { %v801_v11 = vadd.f32 %v1054_v9, %v1250_v24  ;;  %v817_v12 = vadd.f32 %v1070_v10, %v1250_v24  ;;  %v602_v13 = vpop.f32.mrb[13].mxu0  ;;  %v666_v14 = vpop.f32.mrb[13].mxu1 }
 0x114   : > { %v799_v15 = vadd.f32 %v1250_v24, %v602_v13  ;;  %v815_v16 = vadd.f32 %v1250_v24, %v666_v14  ;;  %v1055_v17 = vpop.f32.mrb[14].mxu0  ;;  %v1071_v18 = vpop.f32.mrb[14].mxu1 }
 0x115   : > { %833 = vst [vmem:[%s1255_s19 + $0x70] sm:$0xff] %v801_v11  ;;  %849 = vst [vmem:[%s1255_s19 + $0xf0] sm:$0xff] %v817_v12  ;;  %v802_v19 = vadd.f32 %v1055_v17, %v1250_v24  ;;  %v818_v20 = vadd.f32 %v1071_v18, %v1250_v24  ;;  %v605_v21 = vpop.f32.mrb[15].mxu0  ;;  %v669_v22 = vpop.f32.mrb[15].mxu1 }
 0x116   : > { %831 = vst [vmem:[%s1255_s19 + $0x60] sm:$0xff] %v799_v15  ;;  %847 = vst [vmem:[%s1255_s19 + $0xe0] sm:$0xff] %v815_v16  ;;  %v800_v23 = vadd.f32 %v1250_v24, %v605_v21  ;;  %v816_v25 = vadd.f32 %v1250_v24, %v669_v22 }
 0x117   : > { %834 = vst [vmem:[%s1255_s19 + $0x78] sm:$0xff] %v802_v19  ;;  %850 = vst [vmem:[%s1255_s19 + $0xf8] sm:$0xff] %v818_v20 }
 0x118   : > { %832 = vst [vmem:[%s1255_s19 + $0x68] sm:$0xff] %v800_v23  ;;  %848 = vst [vmem:[%s1255_s19 + $0xe8] sm:$0xff] %v816_v25 }
 0x119 PF: > { %s13_s14 = sadd.s32 1, %s1158_s14   ;;  %s1334_s12 = smov %s1154_s13 }
 0x11a   : > { %p10_p5 = scmp.ge.s32.totalorder %s13_s14, 4   ;;  %s1335_s13 = smov %s1337_s15 }
 0x11c   :  { %12 = sbr.rel (!%p10_p5) target bundleno = 2 (0x2), region = 76 }

// kernel: _lambda_.11
= control target key start
LH: loop header
LB: loop body
LE: loop exit
PB: predicated region body
PF: predicated region fallthrough
CT: control target
= control target key end

     0   :  { %s796_s1 = inlined_call_operand.vmem [shape: bf16[128,128], index: 1, kind: input, shape index: {}]   ;;  %s797_s0 = inlined_call_operand.vmem [shape: bf16[128,128], index: 0, kind: input, shape index: {}]   ;;  %s798_s2 = inlined_call_operand.vmem [shape: f32[1,128], index: 2, kind: input, shape index: {}]   ;;  %s799_s3 = inlined_call_operand.vmem [shape: f32[128,128], index: 3, kind: output, shape index: {}]  }
   0x1   :  { %v611_v0 = vld [vmem:[%s796_s1] sm:$0xff]   ;;  %v612_v1 = vld [vmem:[%s796_s1 + $0x8] sm:$0xff]   ;;  %v613_v2 = vld [vmem:[%s796_s1 + $0x10] sm:$0xff]  }
   0x2   :  { %563 = vmatprep.subr.bf16.mxu0 %v611_v0  ;;  %595 = vmatprep.subr.bf16.mxu1 %v611_v0  ;;  %v614_v3 = vld [vmem:[%s796_s1 + $0x18] sm:$0xff]   ;;  %v35_v4 = vld [vmem:[%s797_s0] sm:$0xf]  ;;  %v36_v5 = vld [vmem:[%s797_s0 + $0x4] sm:$0xf] }
   0x3   :  { %564 = vmatpush3.bf16.msra.mxu0 %v611_v0  ;;  %603 = vmatpush3.bf16.msra.mxu1 %v611_v0  ;;  %v43_v6 = vld [vmem:[%s797_s0 + $0x20] sm:$0xf]  ;;  %v67_v7 = vunpack.c.l.bf16 %v35_v4  ;;  %v68_v8 = vunpack.c.l.bf16 %v36_v5  ;;  %v44_v9 = vld [vmem:[%s797_s0 + $0x24] sm:$0xf]  ;;  %v666_v10 = vld [vmem:[%s797_s0 + $0x8] sm:$0xf] }
   0x4   :  { %565 = vmatprep.subr.bf16.mxu0 %v612_v1  ;;  %596 = vmatprep.subr.bf16.mxu1 %v612_v1  ;;  %v615_v11 = vld [vmem:[%s796_s1 + $0x20] sm:$0xff]   ;;  %vm51_vm0 = vcmp.ge.bf16.partialorder %v35_v4, 0  ;;  %vm52_vm1 = vcmp.ge.bf16.partialorder %v36_v5, 0  ;;  %v75_v12 = vunpack.c.l.bf16 %v43_v6  ;;  %v76_v13 = vunpack.c.l.bf16 %v44_v9  ;;  %v674_v14 = vld [vmem:[%s797_s0 + $0xc] sm:$0xf]  ;;  %v617_v46 = vld [vmem:[%s796_s1 + $0x30] sm:$0xff]  }
   0x5   :  { %v83_v15 = vmul.f32 0.2, %v67_v7  ;;  %v84_v16 = vmul.f32 0.2, %v68_v8  ;;  %v679_v17 = vld [vmem:[%s797_s0 + $0x28] sm:$0xf]  ;;  %v69_v20 = vunpack.c.l.bf16 %v666_v10  ;;  %v70_v21 = vunpack.c.l.bf16 %v674_v14 }
   0x6   :  { %v91_v18 = vmul.f32 0.2, %v75_v12  ;;  %v92_v19 = vmul.f32 0.2, %v76_v13  ;;  %v686_v22 = vld [vmem:[%s797_s0 + $0x2c] sm:$0xf]  ;;  %v77_v31 = vunpack.c.l.bf16 %v679_v17 }
   0x7   :  { %566 = vmatpush3.bf16.msra.mxu0 %v612_v1  ;;  %604 = vmatpush3.bf16.msra.mxu1 %v612_v1  ;;  %v531_v23 = vpack.c.bf16 %v83_v15, %v83_v15  ;;  %v532_v24 = vpack.c.bf16 %v84_v16, %v84_v16  ;;  %vm59_vm2 = vcmp.ge.bf16.partialorder %v43_v6, 0  ;;  %vm60_vm3 = vcmp.ge.bf16.partialorder %v44_v9, 0  ;;  %v39_v33 = vld [vmem:[%s797_s0 + $0x10] sm:$0xf]  ;;  %v40_v34 = vld [vmem:[%s797_s0 + $0x14] sm:$0xf] }
   0x8   :  { %567 = vmatprep.subr.bf16.mxu0 %v613_v2  ;;  %597 = vmatprep.subr.bf16.mxu1 %v613_v2  ;;  %v539_v25 = vpack.c.bf16 %v91_v18, %v91_v18  ;;  %v540_v26 = vpack.c.bf16 %v92_v19, %v92_v19  ;;  %v85_v27 = vmul.f32 0.2, %v69_v20  ;;  %v86_v28 = vmul.f32 0.2, %v70_v21  ;;  %v616_v35 = vld [vmem:[%s796_s1 + $0x28] sm:$0xff]   ;;  %v618_v0 = vld [vmem:[%s796_s1 + $0x38] sm:$0xff]  }
   0x9   :  { %v163_v29 = vsel %vm51_vm0, %v35_v4, %v531_v23  ;;  %v164_v30 = vsel %vm52_vm1, %v36_v5, %v532_v24  ;;  %v78_v32 = vunpack.c.l.bf16 %v686_v22  ;;  %v93_v40 = vmul.f32 0.2, %v77_v31  ;;  %v47_v44 = vld [vmem:[%s797_s0 + $0x30] sm:$0xf]  ;;  %v48_v45 = vld [vmem:[%s797_s0 + $0x34] sm:$0xf] }
   0xa   :  { %v514_v36 = vcombine.low %v163_v29, %v164_v30  ;;  %v171_v37 = vsel %vm59_vm2, %v43_v6, %v539_v25  ;;  %v172_v38 = vsel %vm60_vm3, %v44_v9, %v540_v26  ;;  %v71_v42 = vunpack.c.l.bf16 %v39_v33  ;;  %v41_v55 = vld [vmem:[%s797_s0 + $0x18] sm:$0xf]  ;;  %v42_v56 = vld [vmem:[%s797_s0 + $0x1c] sm:$0xf] }
   0xb   :  { %568 = vmatpush3.bf16.msra.mxu0 %v613_v2  ;;  %605 = vmatpush3.bf16.msra.mxu1 %v613_v2  ;;  %v518_v39 = vcombine.low %v171_v37, %v172_v38  ;;  %v94_v41 = vmul.f32 0.2, %v78_v32  ;;  %v72_v43 = vunpack.c.l.bf16 %v40_v34  ;;  %vm53_vm4 = vcmp.ge.bf16.partialorder %v666_v10, 0  ;;  %v49_v63 = vld [vmem:[%s797_s0 + $0x38] sm:$0xf] }
   0xc   :  { %569 = vmatprep.subr.bf16.mxu0 %v614_v3  ;;  %598 = vmatprep.subr.bf16.mxu1 %v614_v3  ;;  %vm54_vm5 = vcmp.ge.bf16.partialorder %v674_v14, 0  ;;  %v533_v47 = vpack.c.bf16 %v85_v27, %v85_v27  ;;  %v534_v48 = vpack.c.bf16 %v86_v28, %v86_v28  ;;  %vm61_vm6 = vcmp.ge.bf16.partialorder %v679_v17, 0  ;;  %v530_v32 = vld [vmem:[%s798_s2] ss:$0 sm:$0xff] }
   0xd   :  { %579 = vmatprep.mubr.bf16.mxu0 %v514_v36  ;;  %vm62_vm7 = vcmp.ge.bf16.partialorder %v686_v22, 0  ;;  %v87_v49 = vmul.f32 0.2, %v71_v42  ;;  %v88_v50 = vmul.f32 0.2, %v72_v43  ;;  %587 = vmatprep.mubr.bf16.mxu1 %v518_v39  ;;  %v541_v51 = vpack.c.bf16 %v93_v40, %v93_v40 }
   0xe   :  { %v542_v52 = vpack.c.bf16 %v94_v41, %v94_v41  ;;  %v79_v53 = vunpack.c.l.bf16 %v47_v44  ;;  %v80_v54 = vunpack.c.l.bf16 %v48_v45  ;;  %vm55_vm8 = vcmp.ge.bf16.partialorder %v39_v33, 0 }
   0xf   :  { %570 = vmatpush3.bf16.msra.mxu0 %v614_v3  ;;  %606 = vmatpush3.bf16.msra.mxu1 %v614_v3  ;;  %vm56_vm9 = vcmp.ge.bf16.partialorder %v40_v34, 0  ;;  %v535_v57 = vpack.c.bf16 %v87_v49, %v87_v49  ;;  %v536_v58 = vpack.c.bf16 %v88_v50, %v88_v50  ;;  %v165_v59 = vsel %vm53_vm4, %v666_v10, %v533_v47  ;;  %v50_v3 = vld [vmem:[%s797_s0 + $0x3c] sm:$0xf] }
  0x10   :  { %571 = vmatprep.subr.bf16.mxu0 %v615_v11  ;;  %599 = vmatprep.subr.bf16.mxu1 %v615_v11  ;;  %v166_v60 = vsel %vm54_vm5, %v674_v14, %v534_v48  ;;  %v95_v61 = vmul.f32 0.2, %v79_v53  ;;  %v96_v62 = vmul.f32 0.2, %v80_v54  ;;  %vm63_vm10 = vcmp.ge.bf16.partialorder %v47_v44, 0 }
  0x11   :  { %vm64_vm11 = vcmp.ge.bf16.partialorder %v48_v45, 0  ;;  %v73_v1 = vunpack.c.l.bf16 %v41_v55  ;;  %v74_v2 = vunpack.c.l.bf16 %v42_v56  ;;  %v173_v4 = vsel %vm61_vm6, %v679_v17, %v541_v51 }
  0x12   :  { %v174_v5 = vsel %vm62_vm7, %v686_v22, %v542_v52  ;;  %v543_v6 = vpack.c.bf16 %v95_v61, %v95_v61  ;;  %v544_v7 = vpack.c.bf16 %v96_v62, %v96_v62  ;;  %v167_v8 = vsel %vm55_vm8, %v39_v33, %v535_v57 }
  0x13   :  { %572 = vmatpush3.bf16.msra.mxu0 %v615_v11  ;;  %607 = vmatpush3.bf16.msra.mxu1 %v615_v11  ;;  %v168_v9 = vsel %vm56_vm9, %v40_v34, %v536_v58  ;;  %v89_v10 = vmul.f32 0.2, %v73_v1  ;;  %v81_v11 = vunpack.c.l.bf16 %v49_v63  ;;  %v90_v14 = vmul.f32 0.2, %v74_v2 }
  0x14   :  { %573 = vmatprep.subr.bf16.mxu0 %v616_v35  ;;  %600 = vmatprep.subr.bf16.mxu1 %v616_v35  ;;  %v175_v12 = vsel %vm63_vm10, %v47_v44, %v543_v6  ;;  %v176_v13 = vsel %vm64_vm11, %v48_v45, %v544_v7  ;;  %v82_v15 = vunpack.c.l.bf16 %v50_v3  ;;  %v515_v17 = vcombine.low %v165_v59, %v166_v60 }
  0x15   :  { %v97_v16 = vmul.f32 0.2, %v81_v11  ;;  %v519_v19 = vcombine.low %v173_v4, %v174_v5  ;;  %v516_v20 = vcombine.low %v167_v8, %v168_v9  ;;  %v520_v21 = vcombine.low %v175_v12, %v176_v13 }
  0x16   :  { %v98_v18 = vmul.f32 0.2, %v82_v15  ;;  %v537_v22 = vpack.c.bf16 %v89_v10, %v89_v10  ;;  %vm57_vm12 = vcmp.ge.bf16.partialorder %v41_v55, 0  ;;  %v538_v23 = vpack.c.bf16 %v90_v14, %v90_v14 }
  0x17   :  { %574 = vmatpush3.bf16.msra.mxu0 %v616_v35  ;;  %608 = vmatpush3.bf16.msra.mxu1 %v616_v35  ;;  %v545_v24 = vpack.c.bf16 %v97_v16, %v97_v16  ;;  %vm58_vm13 = vcmp.ge.bf16.partialorder %v42_v56, 0  ;;  %vm65_vm14 = vcmp.ge.bf16.partialorder %v49_v63, 0  ;;  %vm66_vm15 = vcmp.ge.bf16.partialorder %v50_v3, 0 }
  0x18   :  { %575 = vmatprep.subr.bf16.mxu0 %v617_v46  ;;  %601 = vmatprep.subr.bf16.mxu1 %v617_v46  ;;  %v546_v25 = vpack.c.bf16 %v98_v18, %v98_v18  ;;  %v169_v26 = vsel %vm57_vm12, %v41_v55, %v537_v22  ;;  %v170_v27 = vsel %vm58_vm13, %v42_v56, %v538_v23 }
  0x19   :  { %v177_v28 = vsel %vm65_vm14, %v49_v63, %v545_v24  ;;  %v517_v30 = vcombine.low %v169_v26, %v170_v27 }
  0x1a   :  { %v178_v29 = vsel %vm66_vm15, %v50_v3, %v546_v25 }
  0x1b   :  { %576 = vmatpush3.bf16.msra.mxu0 %v617_v46  ;;  %609 = vmatpush3.bf16.msra.mxu1 %v617_v46  ;;  %v521_v31 = vcombine.low %v177_v28, %v178_v29 }
  0x1c   :  { %577 = vmatprep.subr.bf16.mxu0 %v618_v0  ;;  %602 = vmatprep.subr.bf16.mxu1 %v618_v0 }
  0x1f   :  { %578 = vmatpush3.bf16.msra.mxu0 %v618_v0  ;;  %610 = vmatpush3.bf16.msra.mxu1 %v618_v0 }
  0x22   :  { %580 = vmatmul.mubr.bf16.vlgmr.msra.gmra.mrb[0].mxu0 %v515_v17  ;;  %588 = vmatmul.mubr.bf16.vlgmr.msra.gmra.mrb[0].mxu1 %v519_v19 }
  0x23   :  { %583 = vmatprep.mubr.bf16.mxu0 %v516_v20  ;;  %591 = vmatprep.mubr.bf16.mxu1 %v520_v21 }
  0x2a   :  { %584 = vmatmul.mubr.bf16.gmra.mrb[4].mxu0 %v517_v30  ;;  %592 = vmatmul.mubr.bf16.gmra.mrb[4].mxu1 %v521_v31 }
  0xf5   :  { %v581_v33 = vpop.f32.mrb[0].mxu0  ;;  %v589_v34 = vpop.f32.mrb[0].mxu1 }
  0xf6   :  { %v464_v35 = vadd.f32 %v581_v33, %v530_v32  ;;  %v472_v36 = vadd.f32 %v589_v34, %v530_v32  ;;  %v341_v37 = vpop.f32.mrb[1].mxu0  ;;  %v373_v38 = vpop.f32.mrb[1].mxu1 }
  0xf7   :  { %v462_v39 = vadd.f32 %v530_v32, %v341_v37  ;;  %v470_v40 = vadd.f32 %v530_v32, %v373_v38  ;;  %v582_v41 = vpop.f32.mrb[2].mxu0  ;;  %v590_v42 = vpop.f32.mrb[2].mxu1 }
  0xf8   :  { %480 = vst [vmem:[%s799_s3 + $0x10] sm:$0xff] %v464_v35  ;;  %488 = vst [vmem:[%s799_s3 + $0x50] sm:$0xff] %v472_v36  ;;  %v465_v43 = vadd.f32 %v582_v41, %v530_v32  ;;  %v473_v44 = vadd.f32 %v590_v42, %v530_v32  ;;  %v344_v45 = vpop.f32.mrb[3].mxu0  ;;  %v376_v46 = vpop.f32.mrb[3].mxu1 }
  0xf9   :  { %478 = vst [vmem:[%s799_s3] sm:$0xff] %v462_v39  ;;  %486 = vst [vmem:[%s799_s3 + $0x40] sm:$0xff] %v470_v40  ;;  %v463_v47 = vadd.f32 %v530_v32, %v344_v45  ;;  %v471_v48 = vadd.f32 %v530_v32, %v376_v46 }
  0xfa   :  { %481 = vst [vmem:[%s799_s3 + $0x18] sm:$0xff] %v465_v43  ;;  %489 = vst [vmem:[%s799_s3 + $0x58] sm:$0xff] %v473_v44 }
  0xfb   :  { %479 = vst [vmem:[%s799_s3 + $0x8] sm:$0xff] %v463_v47  ;;  %487 = vst [vmem:[%s799_s3 + $0x48] sm:$0xff] %v471_v48 }
  0xfd   :  { %v585_v49 = vpop.f32.mrb[4].mxu0  ;;  %v593_v50 = vpop.f32.mrb[4].mxu1 }
  0xfe   :  { %v468_v51 = vadd.f32 %v585_v49, %v530_v32  ;;  %v476_v52 = vadd.f32 %v593_v50, %v530_v32  ;;  %v357_v53 = vpop.f32.mrb[5].mxu0  ;;  %v389_v54 = vpop.f32.mrb[5].mxu1 }
  0xff   :  { %v466_v55 = vadd.f32 %v530_v32, %v357_v53  ;;  %v474_v56 = vadd.f32 %v530_v32, %v389_v54  ;;  %v586_v57 = vpop.f32.mrb[6].mxu0  ;;  %v594_v58 = vpop.f32.mrb[6].mxu1 }
 0x100   :  { %484 = vst [vmem:[%s799_s3 + $0x30] sm:$0xff] %v468_v51  ;;  %492 = vst [vmem:[%s799_s3 + $0x70] sm:$0xff] %v476_v52  ;;  %v469_v59 = vadd.f32 %v586_v57, %v530_v32  ;;  %v477_v60 = vadd.f32 %v594_v58, %v530_v32  ;;  %v360_v61 = vpop.f32.mrb[7].mxu0  ;;  %v392_v62 = vpop.f32.mrb[7].mxu1 }
 0x101   :  { %482 = vst [vmem:[%s799_s3 + $0x20] sm:$0xff] %v466_v55  ;;  %490 = vst [vmem:[%s799_s3 + $0x60] sm:$0xff] %v474_v56  ;;  %v467_v63 = vadd.f32 %v530_v32, %v360_v61  ;;  %v475_v0 = vadd.f32 %v530_v32, %v392_v62 }
 0x102   :  { %485 = vst [vmem:[%s799_s3 + $0x38] sm:$0xff] %v469_v59  ;;  %493 = vst [vmem:[%s799_s3 + $0x78] sm:$0xff] %v477_v60 }
 0x103   :  { %483 = vst [vmem:[%s799_s3 + $0x28] sm:$0xff] %v467_v63  ;;  %491 = vst [vmem:[%s799_s3 + $0x68] sm:$0xff] %v475_v0 }

// kernel: _lambda_.12
= control target key start
LH: loop header
LB: loop body
LE: loop exit
PB: predicated region body
PF: predicated region fallthrough
CT: control target
= control target key end

     0   :  { %s496_s1 = inlined_call_operand.vmem [shape: bf16[256,128], index: 1, kind: input, shape index: {}]   ;;  %s497_s0 = inlined_call_operand.vmem [shape: bf16[32,256], index: 0, kind: input, shape index: {}]   ;;  %s498_s2 = inlined_call_operand.vmem [shape: f32[1,128], index: 2, kind: input, shape index: {}]   ;;  %s499_s3 = inlined_call_operand.vmem [shape: f32[32,128], index: 3, kind: output, shape index: {}]  }
   0x1   :  { %v383_v0 = vld [vmem:[%s496_s1 + $0x40] sm:$0xff]   ;;  %v385_v2 = vld [vmem:[%s496_s1 + $0x48] sm:$0xff]   ;;  %v387_v4 = vld [vmem:[%s496_s1 + $0x50] sm:$0xff]  }
   0x2   :  { %v384_v1 = vld [vmem:[%s496_s1] sm:$0xff]   ;;  %339 = vmatprep.subr.bf16.mxu0 %v383_v0  ;;  %367 = vmatprep.subr.bf16.mxu1 %v383_v0  ;;  %v386_v3 = vld [vmem:[%s496_s1 + $0x8] sm:$0xff]   ;;  %v388_v5 = vld [vmem:[%s496_s1 + $0x10] sm:$0xff]  }
   0x3   :  { %340 = vmatpush3.bf16.msra.mxu0 %v384_v1  ;;  %375 = vmatpush3.bf16.msra.mxu1 %v384_v1  ;;  %v389_v6 = vld [vmem:[%s496_s1 + $0x58] sm:$0xff]   ;;  %v391_v8 = vld [vmem:[%s496_s1 + $0x60] sm:$0xff]   ;;  %v393_v10 = vld [vmem:[%s496_s1 + $0x68] sm:$0xff]  }
   0x4   :  { %341 = vmatprep.subr.bf16.mxu0 %v385_v2  ;;  %368 = vmatprep.subr.bf16.mxu1 %v385_v2  ;;  %v390_v7 = vld [vmem:[%s496_s1 + $0x18] sm:$0xff]   ;;  %v392_v9 = vld [vmem:[%s496_s1 + $0x20] sm:$0xff]   ;;  %v24_v12 = vld [vmem:[%s497_s0 + $0x8] sm:$0xff] }
   0x5   :  { %v23_v11 = vld [vmem:[%s497_s0] sm:$0xff]  ;;  %v25_v13 = vld [vmem:[%s497_s0 + $0x10] sm:$0xff]  ;;  %v26_v16 = vld [vmem:[%s497_s0 + $0x18] sm:$0xff]  ;;  %v33_v17 = vunpack.c.l.bf16 %v24_v12  ;;  %v34_v18 = vunpack.c.h.bf16 %v24_v12  ;;  %vm28_vm1 = vcmp.ge.bf16.partialorder %v24_v12, 0 }
   0x6   :  { %v31_v14 = vunpack.c.l.bf16 %v23_v11  ;;  %v32_v15 = vunpack.c.h.bf16 %v23_v11  ;;  %vm27_vm0 = vcmp.ge.bf16.partialorder %v23_v11, 0  ;;  %v394_v19 = vld [vmem:[%s496_s1 + $0x28] sm:$0xff]   ;;  %v35_v22 = vunpack.c.l.bf16 %v25_v13  ;;  %v395_v24 = vld [vmem:[%s496_s1 + $0x70] sm:$0xff]   ;;  %v397_v38 = vld [vmem:[%s496_s1 + $0x78] sm:$0xff]  }
   0x7   :  { %342 = vmatpush3.bf16.msra.mxu0 %v386_v3  ;;  %376 = vmatpush3.bf16.msra.mxu1 %v386_v3  ;;  %v36_v23 = vunpack.c.h.bf16 %v25_v13  ;;  %v41_v25 = vmul.f32 0.2, %v33_v17  ;;  %v42_v26 = vmul.f32 0.2, %v34_v18  ;;  %v37_v27 = vunpack.c.l.bf16 %v26_v16  ;;  %v396_v35 = vld [vmem:[%s496_s1 + $0x30] sm:$0xff]   ;;  %v398_v44 = vld [vmem:[%s496_s1 + $0x38] sm:$0xff]  }
   0x8   :  { %343 = vmatprep.subr.bf16.mxu0 %v387_v4  ;;  %369 = vmatprep.subr.bf16.mxu1 %v387_v4  ;;  %v39_v20 = vmul.f32 0.2, %v31_v14  ;;  %v40_v21 = vmul.f32 0.2, %v32_v15  ;;  %v38_v28 = vunpack.c.h.bf16 %v26_v16  ;;  %v43_v30 = vmul.f32 0.2, %v35_v22 }
   0x9   :  { %v44_v31 = vmul.f32 0.2, %v36_v23  ;;  %v336_v32 = vpack.c.bf16 %v42_v26, %v41_v25  ;;  %vm29_vm2 = vcmp.ge.bf16.partialorder %v25_v13, 0  ;;  %v45_v33 = vmul.f32 0.2, %v37_v27 }
   0xa   :  { %v335_v29 = vpack.c.bf16 %v40_v21, %v39_v20  ;;  %v46_v34 = vmul.f32 0.2, %v38_v28  ;;  %vm30_vm3 = vcmp.ge.bf16.partialorder %v26_v16, 0  ;;  %v334_v51 = vld [vmem:[%s498_s2] ss:$0 sm:$0xff] }
   0xb   :  { %344 = vmatpush3.bf16.msra.mxu0 %v388_v5  ;;  %377 = vmatpush3.bf16.msra.mxu1 %v388_v5  ;;  %v337_v37 = vpack.c.bf16 %v44_v31, %v43_v30  ;;  %v72_v39 = vsel %vm28_vm1, %v24_v12, %v336_v32 }
   0xc   :  { %345 = vmatprep.subr.bf16.mxu0 %v389_v6  ;;  %370 = vmatprep.subr.bf16.mxu1 %v389_v6  ;;  %v71_v36 = vsel %vm27_vm0, %v23_v11, %v335_v29  ;;  %v338_v40 = vpack.c.bf16 %v46_v34, %v45_v33 }
   0xd   :  { %v315_v41 = vcombine.high %v71_v36, %v72_v39  ;;  %v73_v42 = vsel %vm29_vm2, %v25_v13, %v337_v37  ;;  %v314_v46 = vcombine.low %v71_v36, %v72_v39 }
   0xe   :  { %v74_v43 = vsel %vm30_vm3, %v26_v16, %v338_v40 }
   0xf   :  { %346 = vmatpush3.bf16.msra.mxu0 %v390_v7  ;;  %378 = vmatpush3.bf16.msra.mxu1 %v390_v7  ;;  %v317_v45 = vcombine.high %v73_v42, %v74_v43  ;;  %v316_v47 = vcombine.low %v73_v42, %v74_v43 }
  0x10   :  { %347 = vmatprep.subr.bf16.mxu0 %v391_v8  ;;  %371 = vmatprep.subr.bf16.mxu1 %v391_v8 }
  0x11   :  { %259 = vmatprep.mubr.bf16.mxu0 %v315_v41  ;;  %267 = vmatprep.mubr.bf16.mxu1 %v317_v45 }
  0x13   :  { %348 = vmatpush3.bf16.msra.mxu0 %v392_v9  ;;  %379 = vmatpush3.bf16.msra.mxu1 %v392_v9 }
  0x14   :  { %349 = vmatprep.subr.bf16.mxu0 %v393_v10  ;;  %372 = vmatprep.subr.bf16.mxu1 %v393_v10 }
  0x17   :  { %350 = vmatpush3.bf16.msra.mxu0 %v394_v19  ;;  %380 = vmatpush3.bf16.msra.mxu1 %v394_v19 }
  0x18   :  { %351 = vmatprep.subr.bf16.mxu0 %v395_v24  ;;  %373 = vmatprep.subr.bf16.mxu1 %v395_v24 }
  0x1b   :  { %352 = vmatpush3.bf16.msra.mxu0 %v396_v35  ;;  %381 = vmatpush3.bf16.msra.mxu1 %v396_v35 }
  0x1c   :  { %353 = vmatprep.subr.bf16.mxu0 %v397_v38  ;;  %374 = vmatprep.subr.bf16.mxu1 %v397_v38 }
  0x1f   :  { %354 = vmatpush3.bf16.msra.mxu0 %v398_v44  ;;  %382 = vmatpush3.bf16.msra.mxu1 %v398_v44 }
  0x22   :  { %260 = vmatmul.mubr.bf16.vlgmr.msra.gmra.mrb[0].mxu0 %v314_v46  ;;  %268 = vmatmul.mubr.bf16.vlgmr.msra.gmra.mrb[0].mxu1 %v316_v47 }
  0xf5   :  { %v355_v48 = vpop.f32.mrb[0].mxu0  ;;  %v361_v49 = vpop.f32.mrb[0].mxu1 }
  0xf6   :  { %v356_v50 = vpop.f32.mrb[1].mxu0  ;;  %v362_v52 = vpop.f32.mrb[1].mxu1 }
  0xf7   :  { %v357_v53 = vadd.f32 %v356_v50, %v355_v48  ;;  %v363_v54 = vadd.f32 %v362_v52, %v361_v49  ;;  %v358_v55 = vpop.f32.mrb[2].mxu0  ;;  %v364_v56 = vpop.f32.mrb[2].mxu1 }
  0xf8   :  { %v359_v57 = vpop.f32.mrb[3].mxu0  ;;  %v365_v58 = vpop.f32.mrb[3].mxu1 }
  0xf9   :  { %v298_v59 = vadd.f32 %v357_v53, %v334_v51  ;;  %v300_v60 = vadd.f32 %v363_v54, %v334_v51  ;;  %v360_v61 = vadd.f32 %v359_v57, %v358_v55  ;;  %v366_v62 = vadd.f32 %v365_v58, %v364_v56 }
  0xfb   :  { %302 = vst [vmem:[%s499_s3] sm:$0xff] %v298_v59  ;;  %304 = vst [vmem:[%s499_s3 + $0x10] sm:$0xff] %v300_v60  ;;  %v299_v63 = vadd.f32 %v360_v61, %v334_v51  ;;  %v301_v0 = vadd.f32 %v366_v62, %v334_v51 }
  0xfd   :  { %303 = vst [vmem:[%s499_s3 + $0x8] sm:$0xff] %v299_v63  ;;  %305 = vst [vmem:[%s499_s3 + $0x18] sm:$0xff] %v301_v0 }

// kernel: _lambda_.13
= control target key start
LH: loop header
LB: loop body
LE: loop exit
PB: predicated region body
PF: predicated region fallthrough
CT: control target
= control target key end

     0   :  { %s665_s1 = inlined_call_operand.vmem [shape: bf16[512,128], index: 1, kind: input, shape index: {}]   ;;  %s666_s0 = inlined_call_operand.vmem [shape: bf16[8,512], index: 0, kind: input, shape index: {}]   ;;  %s667_s2 = inlined_call_operand.vmem [shape: f32[1,128], index: 2, kind: input, shape index: {}]   ;;  %s668_s3 = inlined_call_operand.vmem [shape: f32[8,128], index: 3, kind: output, shape index: {}]  }
   0x1   :  { %v505_v0 = vld [vmem:[%s665_s1 + $0x40] sm:$0xff]   ;;  %v509_v4 = vld [vmem:[%s665_s1 + $0x48] sm:$0xff]   ;;  %v513_v8 = vld [vmem:[%s665_s1 + $0x50] sm:$0xff]  }
   0x2   :  { %v506_v1 = vld [vmem:[%s665_s1 + $0xc0] sm:$0xff]   ;;  %461 = vmatprep.subr.bf16.mxu0 %v505_v0  ;;  %v510_v5 = vld [vmem:[%s665_s1 + $0xc8] sm:$0xff]   ;;  %v514_v9 = vld [vmem:[%s665_s1 + $0xd0] sm:$0xff]  }
   0x3   :  { %v507_v2 = vld [vmem:[%s665_s1] sm:$0xff]   ;;  %483 = vmatprep.subr.bf16.mxu1 %v506_v1  ;;  %v511_v6 = vld [vmem:[%s665_s1 + $0x8] sm:$0xff]   ;;  %v515_v10 = vld [vmem:[%s665_s1 + $0x10] sm:$0xff]  }
   0x4   :  { %v508_v3 = vld [vmem:[%s665_s1 + $0x80] sm:$0xff]   ;;  %462 = vmatpush3.bf16.msra.mxu0 %v507_v2  ;;  %v512_v7 = vld [vmem:[%s665_s1 + $0x88] sm:$0xff]   ;;  %v516_v11 = vld [vmem:[%s665_s1 + $0x90] sm:$0xff]  }
   0x5   :  { %484 = vmatpush3.bf16.msra.mxu1 %v508_v3  ;;  %463 = vmatprep.subr.bf16.mxu0 %v509_v4  ;;  %v517_v12 = vld [vmem:[%s665_s1 + $0x58] sm:$0xff]   ;;  %v521_v16 = vld [vmem:[%s665_s1 + $0x60] sm:$0xff]   ;;  %v525_v20 = vld [vmem:[%s665_s1 + $0x68] sm:$0xff]  }
   0x6   :  { %485 = vmatprep.subr.bf16.mxu1 %v510_v5  ;;  %v518_v13 = vld [vmem:[%s665_s1 + $0xd8] sm:$0xff]   ;;  %v522_v17 = vld [vmem:[%s665_s1 + $0xe0] sm:$0xff]   ;;  %v526_v21 = vld [vmem:[%s665_s1 + $0xe8] sm:$0xff]  }
   0x7   :  { %v519_v14 = vld [vmem:[%s665_s1 + $0x18] sm:$0xff]   ;;  %v523_v18 = vld [vmem:[%s665_s1 + $0x20] sm:$0xff]   ;;  %v527_v22 = vld [vmem:[%s665_s1 + $0x28] sm:$0xff]  }
   0x8   :  { %464 = vmatpush3.bf16.msra.mxu0 %v511_v6  ;;  %v520_v15 = vld [vmem:[%s665_s1 + $0x98] sm:$0xff]   ;;  %v524_v19 = vld [vmem:[%s665_s1 + $0xa0] sm:$0xff]   ;;  %v528_v23 = vld [vmem:[%s665_s1 + $0xa8] sm:$0xff]  }
   0x9   :  { %486 = vmatpush3.bf16.msra.mxu1 %v512_v7  ;;  %465 = vmatprep.subr.bf16.mxu0 %v513_v8  ;;  %v529_v24 = vld [vmem:[%s665_s1 + $0x70] sm:$0xff]   ;;  %v533_v28 = vld [vmem:[%s665_s1 + $0x78] sm:$0xff]   ;;  %v20_v32 = vld [vmem:[%s666_s0] sm:$0xff] }
   0xa   :  { %487 = vmatprep.subr.bf16.mxu1 %v514_v9  ;;  %v530_v25 = vld [vmem:[%s665_s1 + $0xf0] sm:$0xff]   ;;  %v534_v29 = vld [vmem:[%s665_s1 + $0xf8] sm:$0xff]   ;;  %v21_v33 = vld [vmem:[%s666_s0 + $0x8] sm:$0xff]  ;;  %v24_v34 = vunpack.c.l.bf16 %v20_v32  ;;  %v25_v35 = vunpack.c.h.bf16 %v20_v32  ;;  %vm22_vm0 = vcmp.ge.bf16.partialorder %v20_v32, 0 }
   0xb   :  { %v531_v26 = vld [vmem:[%s665_s1 + $0x30] sm:$0xff]   ;;  %v535_v30 = vld [vmem:[%s665_s1 + $0x38] sm:$0xff]   ;;  %v26_v36 = vunpack.c.l.bf16 %v21_v33  ;;  %v27_v37 = vunpack.c.h.bf16 %v21_v33  ;;  %vm23_vm1 = vcmp.ge.bf16.partialorder %v21_v33, 0  ;;  %v458_v59 = vld [vmem:[%s667_s2] ss:$0 sm:$0xff] }
   0xc   :  { %466 = vmatpush3.bf16.msra.mxu0 %v515_v10  ;;  %v532_v27 = vld [vmem:[%s665_s1 + $0xb0] sm:$0xff]   ;;  %v536_v31 = vld [vmem:[%s665_s1 + $0xb8] sm:$0xff]   ;;  %v28_v38 = vmul.f32 0.2, %v24_v34  ;;  %v29_v39 = vmul.f32 0.2, %v25_v35 }
   0xd   :  { %488 = vmatpush3.bf16.msra.mxu1 %v516_v11  ;;  %467 = vmatprep.subr.bf16.mxu0 %v517_v12  ;;  %v30_v40 = vmul.f32 0.2, %v26_v36  ;;  %v31_v41 = vmul.f32 0.2, %v27_v37 }
   0xe   :  { %489 = vmatprep.subr.bf16.mxu1 %v518_v13  ;;  %v459_v42 = vpack.c.bf16 %v29_v39, %v28_v38 }
   0xf   :  { %v460_v43 = vpack.c.bf16 %v31_v41, %v30_v40 }
  0x10   :  { %468 = vmatpush3.bf16.msra.mxu0 %v519_v14  ;;  %v48_v44 = vsel %vm22_vm0, %v20_v32, %v459_v42 }
  0x11   :  { %490 = vmatpush3.bf16.msra.mxu1 %v520_v15  ;;  %469 = vmatprep.subr.bf16.mxu0 %v521_v16  ;;  %v422_v45 = vcombine.low %v48_v44, %v48_v44  ;;  %v423_v46 = vcombine.high %v48_v44, %v48_v44  ;;  %v49_v47 = vsel %vm23_vm1, %v21_v33, %v460_v43 }
  0x12   :  { %491 = vmatprep.subr.bf16.mxu1 %v522_v17  ;;  %v424_v48 = vcombine.low %v49_v47, %v49_v47  ;;  %v425_v49 = vcombine.high %v49_v47, %v49_v47 }
  0x13   :  { %353 = vmatprep.mubr.bf16.mxu0 %v423_v46 }
  0x14   :  { %470 = vmatpush3.bf16.msra.mxu0 %v523_v18  ;;  %393 = vmatprep.mubr.bf16.mxu1 %v425_v49 }
  0x15   :  { %492 = vmatpush3.bf16.msra.mxu1 %v524_v19  ;;  %471 = vmatprep.subr.bf16.mxu0 %v525_v20 }
  0x16   :  { %493 = vmatprep.subr.bf16.mxu1 %v526_v21 }
  0x18   :  { %472 = vmatpush3.bf16.msra.mxu0 %v527_v22 }
  0x19   :  { %494 = vmatpush3.bf16.msra.mxu1 %v528_v23  ;;  %473 = vmatprep.subr.bf16.mxu0 %v529_v24 }
  0x1a   :  { %495 = vmatprep.subr.bf16.mxu1 %v530_v25 }
  0x1c   :  { %474 = vmatpush3.bf16.msra.mxu0 %v531_v26 }
  0x1d   :  { %496 = vmatpush3.bf16.msra.mxu1 %v532_v27  ;;  %475 = vmatprep.subr.bf16.mxu0 %v533_v28 }
  0x1e   :  { %497 = vmatprep.subr.bf16.mxu1 %v534_v29 }
  0x20   :  { %476 = vmatpush3.bf16.msra.mxu0 %v535_v30 }
  0x21   :  { %498 = vmatpush3.bf16.msra.mxu1 %v536_v31 }
  0x23   :  { %354 = vmatmul.mubr.bf16.vlgmr.msra.gmra.mrb[0].mxu0 %v422_v45 }
  0x24   :  { %394 = vmatmul.mubr.bf16.vlgmr.msra.gmra.mrb[0].mxu1 %v424_v48 }
  0xf6   :  { %v477_v50 = vpop.f32.mrb[0].mxu0 }
  0xf7   :  { %v499_v51 = vpop.f32.mrb[0].mxu1  ;;  %v478_v52 = vpop.f32.mrb[1].mxu0 }
  0xf8   :  { %v479_v53 = vadd.f32 %v478_v52, %v477_v50  ;;  %v500_v54 = vpop.f32.mrb[1].mxu1  ;;  %v480_v55 = vpop.f32.mrb[2].mxu0 }
  0xf9   :  { %v501_v56 = vadd.f32 %v500_v54, %v499_v51  ;;  %v502_v57 = vpop.f32.mrb[2].mxu1  ;;  %v481_v58 = vpop.f32.mrb[3].mxu0 }
  0xfa   :  { %v503_v60 = vpop.f32.mrb[3].mxu1 }
  0xfb   :  { %v396_v61 = vadd.f32 %v501_v56, %v479_v53 }
  0xfd   :  { %v414_v62 = vadd.f32 %v458_v59, %v396_v61 }
  0xff   :  { %415 = vst [vmem:[%s668_s3] sm:$0xff] %v414_v62 }

// kernel: _lambda_.14
= control target key start
LH: loop header
LB: loop body
LE: loop exit
PB: predicated region body
PF: predicated region fallthrough
CT: control target
= control target key end

     0   :  { %s968_s12 = smov 0   ;;  %s970_s13 = smov 0   ;;  %s1051_s0 = inlined_call_operand.vmem [shape: bf16[8,1024], index: 0, kind: input, shape index: {}]   ;;  %s1052_s1 = inlined_call_operand.vmem [shape: bf16[1024,128], index: 1, kind: input, shape index: {}]   ;;  %s1053_s2 = inlined_call_operand.vmem [shape: f32[1,128], index: 2, kind: input, shape index: {}]   ;;  %s1054_s3 = inlined_call_operand.vmem [shape: f32[8,128], index: 3, kind: output, shape index: {}]  }
   0x1   :  { %s972_s14 = smov 0  }
   0x2 LB: > { %s25_s15 = sadd.s32 1, %s941_s13  ;;  %p771_p0 = scmp.ge.s32.totalorder %s945_s14, 1  ;;  %s945_s14 = sphi %s972_s14, %s13_s14   ;;  %s941_s13 = sphi %s970_s13, %s1056_s13   ;;  %s937_s12 = sphi %s968_s12, %s1055_s12  }
   0x3   : > { %p26_p1 = scmp.ge.s32.totalorder %s25_s15, 2  ;;  %p189_p2 = scmp.lt.s32.totalorder %s945_s14, 3 }
   0x5   : > { %s1058_s15 = smov (%p26_p1, %s25_s15), 0  ;;  %p190_p3 = pnand %p771_p0, %p189_p2 }
   0x6   : > { %s772_s16 = sshll.u32 (!%p190_p3), %s937_s12, 2  ;;  %s774_s17 = sshll.u32 (!%p190_p3), %s937_s12, 6 }
   0x7   : > { %193 = sbr.rel (%p190_p3) target bundleno = 289 (0x121), region = 32  ;;  %p233_p4 = scmp.lt.s32.totalorder (!%p190_p3), %s772_s16, 7 }
   0x8   : > { %p241_p5 = scmp.lt.s32.totalorder (!%p190_p3), %s774_s17, 127  ;;  %p776_p6 = scmp.ne.s32.totalorder (!%p190_p3), %s937_s12, 0 }
   0xe   : > { %s1060_s16 = smov (!%p233_p4, %s772_s16), 7  ;;  %s1062_s17 = smov (!%p241_p5, %s774_s17), 127 }
   0xf   : > { %s773_s18 = sshll.u32 %s1060_s16, 2  ;;  %s775_s22 = sshll.u32 %s1062_s17, 2  ;;  %v947_v0 = vmov (!%p776_p6), 0.0  }
  0x10   : > { %s993_s21 = scalar_lea.vmem %s1051_s0, %s773_s18  ;;  %s998_s25 = scalar_lea.vmem %s1052_s1, %s775_s22  ;;  %264 = vst [vmem:[#allocation2] sm:$0xff] (!%p776_p6), %v947_v0 }
  0x11   : > { %263 = sbr.rel (%p776_p6) target bundleno = 24 (0x18), region = 36 }
  0x18 PF: > { %v891_v1 = vld [vmem:[%s998_s25 + $0x40] sm:$0xff]   ;;  %v895_v5 = vld [vmem:[%s998_s25 + $0x48] sm:$0xff]   ;;  %v899_v9 = vld [vmem:[%s998_s25 + $0x50] sm:$0xff]   ;;  %p815_p7 = scmp.ne.s32.totalorder %s937_s12, 1 }
  0x19   : > { %v892_v2 = vld [vmem:[%s998_s25 + $0xc0] sm:$0xff]   ;;  %822 = vmatprep.subr.bf16.mxu0 %v891_v1  ;;  %v896_v6 = vld [vmem:[%s998_s25 + $0xc8] sm:$0xff]   ;;  %v900_v10 = vld [vmem:[%s998_s25 + $0xd0] sm:$0xff]  }
  0x1a   : > { %v893_v3 = vld [vmem:[%s998_s25] sm:$0xff]   ;;  %844 = vmatprep.subr.bf16.mxu1 %v892_v2  ;;  %v897_v7 = vld [vmem:[%s998_s25 + $0x8] sm:$0xff]   ;;  %v901_v11 = vld [vmem:[%s998_s25 + $0x10] sm:$0xff]  }
  0x1b   : > { %v894_v4 = vld [vmem:[%s998_s25 + $0x80] sm:$0xff]   ;;  %823 = vmatpush3.bf16.msra.mxu0 %v893_v3  ;;  %v898_v8 = vld [vmem:[%s998_s25 + $0x88] sm:$0xff]   ;;  %v902_v12 = vld [vmem:[%s998_s25 + $0x90] sm:$0xff]  }
  0x1c   : > { %845 = vmatpush3.bf16.msra.mxu1 %v894_v4  ;;  %824 = vmatprep.subr.bf16.mxu0 %v895_v5  ;;  %v903_v13 = vld [vmem:[%s998_s25 + $0x58] sm:$0xff]   ;;  %v907_v17 = vld [vmem:[%s998_s25 + $0x60] sm:$0xff]   ;;  %v911_v21 = vld [vmem:[%s998_s25 + $0x68] sm:$0xff]  }
  0x1d   : > { %846 = vmatprep.subr.bf16.mxu1 %v896_v6  ;;  %v904_v14 = vld [vmem:[%s998_s25 + $0xd8] sm:$0xff]   ;;  %v908_v18 = vld [vmem:[%s998_s25 + $0xe0] sm:$0xff]   ;;  %v912_v22 = vld [vmem:[%s998_s25 + $0xe8] sm:$0xff]  }
  0x1e   : > { %v905_v15 = vld [vmem:[%s998_s25 + $0x18] sm:$0xff]   ;;  %v909_v19 = vld [vmem:[%s998_s25 + $0x20] sm:$0xff]   ;;  %v913_v23 = vld [vmem:[%s998_s25 + $0x28] sm:$0xff]  }
  0x1f   : > { %825 = vmatpush3.bf16.msra.mxu0 %v897_v7  ;;  %v906_v16 = vld [vmem:[%s998_s25 + $0x98] sm:$0xff]   ;;  %v910_v20 = vld [vmem:[%s998_s25 + $0xa0] sm:$0xff]   ;;  %v914_v24 = vld [vmem:[%s998_s25 + $0xa8] sm:$0xff]  }
  0x20   : > { %847 = vmatpush3.bf16.msra.mxu1 %v898_v8  ;;  %826 = vmatprep.subr.bf16.mxu0 %v899_v9  ;;  %v915_v25 = vld [vmem:[%s998_s25 + $0x70] sm:$0xff]   ;;  %v919_v29 = vld [vmem:[%s998_s25 + $0x78] sm:$0xff]   ;;  %v265_v33 = vld [vmem:[%s993_s21] sm:$0xff] }
  0x21   : > { %848 = vmatprep.subr.bf16.mxu1 %v900_v10  ;;  %v916_v26 = vld [vmem:[%s998_s25 + $0xf0] sm:$0xff]   ;;  %v920_v30 = vld [vmem:[%s998_s25 + $0xf8] sm:$0xff]   ;;  %v266_v34 = vld [vmem:[%s993_s21 + $0x8] sm:$0xff]  ;;  %v269_v35 = vunpack.c.l.bf16 %v265_v33  ;;  %v270_v36 = vunpack.c.h.bf16 %v265_v33  ;;  %vm267_vm0 = vcmp.ge.bf16.partialorder %v265_v33, 0 }
  0x22   : > { %v917_v27 = vld [vmem:[%s998_s25 + $0x30] sm:$0xff]   ;;  %v921_v31 = vld [vmem:[%s998_s25 + $0x38] sm:$0xff]   ;;  %v271_v37 = vunpack.c.l.bf16 %v266_v34  ;;  %v272_v38 = vunpack.c.h.bf16 %v266_v34  ;;  %vm268_vm1 = vcmp.ge.bf16.partialorder %v266_v34, 0  ;;  %v295_v60 = vld [vmem:[#allocation2] sm:$0xff] }
  0x23   : > { %827 = vmatpush3.bf16.msra.mxu0 %v901_v11  ;;  %v918_v28 = vld [vmem:[%s998_s25 + $0xb0] sm:$0xff]   ;;  %v922_v32 = vld [vmem:[%s998_s25 + $0xb8] sm:$0xff]   ;;  %v273_v39 = vmul.f32 0.2, %v269_v35  ;;  %v274_v40 = vmul.f32 0.2, %v270_v36 }
  0x24   : > { %849 = vmatpush3.bf16.msra.mxu1 %v902_v12  ;;  %828 = vmatprep.subr.bf16.mxu0 %v903_v13  ;;  %v275_v41 = vmul.f32 0.2, %v271_v37  ;;  %v276_v42 = vmul.f32 0.2, %v272_v38  ;;  %v816_v1 = vld [vmem:[%s1053_s2] ss:$0 sm:$0xff] (!%p815_p7) }
  0x25   : > { %850 = vmatprep.subr.bf16.mxu1 %v904_v14  ;;  %v820_v43 = vpack.c.bf16 %v274_v40, %v273_v39 }
  0x26   : > { %v821_v44 = vpack.c.bf16 %v276_v42, %v275_v41 }
  0x27   : > { %829 = vmatpush3.bf16.msra.mxu0 %v905_v15  ;;  %v293_v45 = vsel %vm267_vm0, %v265_v33, %v820_v43 }
  0x28   : > { %851 = vmatpush3.bf16.msra.mxu1 %v906_v16  ;;  %830 = vmatprep.subr.bf16.mxu0 %v907_v17  ;;  %v779_v46 = vcombine.low %v293_v45, %v293_v45  ;;  %v780_v47 = vcombine.high %v293_v45, %v293_v45  ;;  %v294_v48 = vsel %vm268_vm1, %v266_v34, %v821_v44 }
  0x29   : > { %852 = vmatprep.subr.bf16.mxu1 %v908_v18  ;;  %v781_v49 = vcombine.low %v294_v48, %v294_v48  ;;  %v782_v50 = vcombine.high %v294_v48, %v294_v48 }
  0x2a   : > { %598 = vmatprep.mubr.bf16.mxu0 %v780_v47 }
  0x2b   : > { %831 = vmatpush3.bf16.msra.mxu0 %v909_v19  ;;  %638 = vmatprep.mubr.bf16.mxu1 %v782_v50 }
  0x2c   : > { %853 = vmatpush3.bf16.msra.mxu1 %v910_v20  ;;  %832 = vmatprep.subr.bf16.mxu0 %v911_v21 }
  0x2d   : > { %854 = vmatprep.subr.bf16.mxu1 %v912_v22 }
  0x2f   : > { %833 = vmatpush3.bf16.msra.mxu0 %v913_v23 }
  0x30   : > { %855 = vmatpush3.bf16.msra.mxu1 %v914_v24  ;;  %834 = vmatprep.subr.bf16.mxu0 %v915_v25 }
  0x31   : > { %856 = vmatprep.subr.bf16.mxu1 %v916_v26 }
  0x33   : > { %835 = vmatpush3.bf16.msra.mxu0 %v917_v27 }
  0x34   : > { %857 = vmatpush3.bf16.msra.mxu1 %v918_v28  ;;  %836 = vmatprep.subr.bf16.mxu0 %v919_v29 }
  0x35   : > { %858 = vmatprep.subr.bf16.mxu1 %v920_v30 }
  0x37   : > { %837 = vmatpush3.bf16.msra.mxu0 %v921_v31 }
  0x38   : > { %859 = vmatpush3.bf16.msra.mxu1 %v922_v32 }
  0x3a   : > { %599 = vmatmul.mubr.bf16.vlgmr.msra.gmra.mrb[0].mxu0 %v779_v46 }
  0x3b   : > { %639 = vmatmul.mubr.bf16.vlgmr.msra.gmra.mrb[0].mxu1 %v781_v49 }
 0x10d   : > { %v838_v51 = vpop.f32.mrb[0].mxu0 }
 0x10e   : > { %v860_v52 = vpop.f32.mrb[0].mxu1  ;;  %v839_v53 = vpop.f32.mrb[1].mxu0 }
 0x10f   : > { %v840_v54 = vadd.f32 %v839_v53, %v838_v51  ;;  %v861_v55 = vpop.f32.mrb[1].mxu1  ;;  %v841_v56 = vpop.f32.mrb[2].mxu0 }
 0x110   : > { %v862_v57 = vadd.f32 %v861_v55, %v860_v52  ;;  %v863_v58 = vpop.f32.mrb[2].mxu1  ;;  %v842_v59 = vpop.f32.mrb[3].mxu0  ;;  %651 = sbr.rel (%p815_p7) target bundleno = 289 (0x121), region = 40 }
 0x111   : > { %v864_v61 = vpop.f32.mrb[3].mxu1 }
 0x112   : > { %v641_v62 = vadd.f32 %v862_v57, %v840_v54 }
 0x114   : > { %v646_v63 = vadd.f32 %v641_v62, %v295_v60 }
 0x116   : > { %647 = vst [vmem:[#allocation2] sm:$0xff] %v646_v63 }
 0x11d   : > { %v652_v0 = vld [vmem:[#allocation2] sm:$0xff] }
 0x11e   : > { %v660_v2 = vadd.f32 %v816_v1, %v652_v0 }
 0x120   : > { %661 = vst [vmem:[%s1054_s3] sm:$0xff] %v660_v2 }
 0x121 PF: > { %s13_s14 = sadd.s32 1, %s945_s14   ;;  %s1055_s12 = smov %s941_s13 }
 0x122   : > { %p10_p8 = scmp.ge.s32.totalorder %s13_s14, 4   ;;  %s1056_s13 = smov %s1058_s15 }
 0x124   :  { %12 = sbr.rel (!%p10_p8) target bundleno = 2 (0x2), region = 76 }

// kernel: _lambda_.15
= control target key start
LH: loop header
LB: loop body
LE: loop exit
PB: predicated region body
PF: predicated region fallthrough
CT: control target
= control target key end

     0   :  { %v377_v14 = vmov 0   ;;  %v276_v37 = vlaneseq  ;;  %s506_s1 = inlined_call_operand.vmem [shape: bf16[256,256], index: 1, kind: input, shape index: {}]   ;;  %s507_s0 = inlined_call_operand.vmem [shape: bf16[8,256], index: 0, kind: input, shape index: {}]   ;;  %s508_s2 = inlined_call_operand.vmem [shape: f32[1,256], index: 2, kind: input, shape index: {}]   ;;  %s509_s3 = inlined_call_operand.vmem [shape: f32[8,256], index: 3, kind: output, shape index: {}]  }
   0x1   :  { %v329_v0 = vld [vmem:[%s506_s1 + $0x4] ss:$8 sps:$4 sm:$0xff]   ;;  %v331_v1 = vld [vmem:[%s506_s1] ss:$8 sps:$4 sm:$0xff]   ;;  %v332_v2 = vld [vmem:[%s506_s1 + $0x14] ss:$8 sps:$4 sm:$0xff]  }
   0x2   :  { %224 = vmatprep.subr.bf16.mxu0 %v329_v0  ;;  %v334_v3 = vld [vmem:[%s506_s1 + $0x10] ss:$8 sps:$4 sm:$0xff]   ;;  %v335_v4 = vld [vmem:[%s506_s1 + $0x24] ss:$8 sps:$4 sm:$0xff]   ;;  %v337_v5 = vld [vmem:[%s506_s1 + $0x20] ss:$8 sps:$4 sm:$0xff]  }
   0x3   :  { %225 = vmatpush1.bf16.msra.mxu0 %v331_v1  ;;  %v338_v6 = vld [vmem:[%s506_s1 + $0x34] ss:$8 sps:$4 sm:$0xff]   ;;  %v340_v7 = vld [vmem:[%s506_s1 + $0x30] ss:$8 sps:$4 sm:$0xff]   ;;  %v341_v8 = vld [vmem:[%s506_s1 + $0x44] ss:$8 sps:$4 sm:$0xff]  }
   0x4   :  { %226 = vmatprep.subr.bf16.mxu0 %v332_v2  ;;  %v343_v9 = vld [vmem:[%s506_s1 + $0x40] ss:$8 sps:$4 sm:$0xff]   ;;  %v344_v10 = vld [vmem:[%s506_s1 + $0x54] ss:$8 sps:$4 sm:$0xff]   ;;  %v346_v11 = vld [vmem:[%s506_s1 + $0x50] ss:$8 sps:$4 sm:$0xff]  }
   0x5   :  { %v347_v12 = vld [vmem:[%s506_s1 + $0x64] ss:$8 sps:$4 sm:$0xff]   ;;  %v349_v16 = vld [vmem:[%s506_s1 + $0x60] ss:$8 sps:$4 sm:$0xff]   ;;  %v350_v17 = vld [vmem:[%s506_s1 + $0x74] ss:$8 sps:$4 sm:$0xff]  }
   0x6   :  { %v21_v13 = vld [vmem:[%s507_s0] sm:$0xff]  ;;  %v352_v19 = vld [vmem:[%s506_s1 + $0x70] ss:$8 sps:$4 sm:$0xff]   ;;  %v356_v22 = vld [vmem:[%s506_s1 + $0x94] ss:$8 sps:$4 sm:$0xff]   ;;  %v277_v38 = vshrl.u32 %v276_v37, 7 }
   0x7   :  { %227 = vmatpush1.bf16.msra.mxu0 %v334_v3  ;;  %v22_v15 = vmax.bf16 %v377_v14, %v21_v13  ;;  %v353_v20 = vld [vmem:[%s506_s1 + $0x84] ss:$8 sps:$4 sm:$0xff]   ;;  %v355_v21 = vld [vmem:[%s506_s1 + $0x80] ss:$8 sps:$4 sm:$0xff]   ;;  %v358_v23 = vld [vmem:[%s506_s1 + $0x90] ss:$8 sps:$4 sm:$0xff]  }
   0x8   :  { %228 = vmatprep.subr.bf16.mxu0 %v335_v4  ;;  %v359_v24 = vld [vmem:[%s506_s1 + $0xa4] ss:$8 sps:$4 sm:$0xff]   ;;  %v361_v25 = vld [vmem:[%s506_s1 + $0xa0] ss:$8 sps:$4 sm:$0xff]   ;;  %v362_v26 = vld [vmem:[%s506_s1 + $0xb4] ss:$8 sps:$4 sm:$0xff]  }
   0x9   :  { %v295_v18 = vcombine.high %v22_v15, %v22_v15  ;;  %v364_v27 = vld [vmem:[%s506_s1 + $0xb0] ss:$8 sps:$4 sm:$0xff]   ;;  %v365_v28 = vld [vmem:[%s506_s1 + $0xc4] ss:$8 sps:$4 sm:$0xff]   ;;  %v367_v29 = vld [vmem:[%s506_s1 + $0xc0] ss:$8 sps:$4 sm:$0xff]   ;;  %v294_v36 = vcombine.low %v22_v15, %v22_v15 }
   0xa   :  { %v368_v30 = vld [vmem:[%s506_s1 + $0xd4] ss:$8 sps:$4 sm:$0xff]   ;;  %v370_v31 = vld [vmem:[%s506_s1 + $0xd0] ss:$8 sps:$4 sm:$0xff]   ;;  %v371_v32 = vld [vmem:[%s506_s1 + $0xe4] ss:$8 sps:$4 sm:$0xff]  }
   0xb   :  { %229 = vmatpush1.bf16.msra.mxu0 %v337_v5  ;;  %256 = vmatprep.mubr.bf16.mxu0 %v295_v18  ;;  %v373_v33 = vld [vmem:[%s506_s1 + $0xe0] ss:$8 sps:$4 sm:$0xff]   ;;  %v374_v34 = vld [vmem:[%s506_s1 + $0xf4] ss:$8 sps:$4 sm:$0xff]   ;;  %v376_v35 = vld [vmem:[%s506_s1 + $0xf0] ss:$8 sps:$4 sm:$0xff]  }
   0xc   :  { %230 = vmatprep.subr.bf16.mxu0 %v338_v6  ;;  %v278_v39 = vsub.s32 0, %v277_v38  ;;  %v274_v40 = vld [vmem:[%s508_s2] sm:$0x3]  ;;  %v282_v41 = vsub.s32 1, %v277_v38 }
   0xe   :  { %v279_v42 = vrot.slane %v274_v40, %v278_v39  ;;  %v283_v43 = vrot.slane %v274_v40, %v282_v41 }
   0xf   :  { %231 = vmatpush1.bf16.msra.mxu0 %v340_v7 }
  0x10   :  { %232 = vmatprep.subr.bf16.mxu0 %v341_v8 }
  0x13   :  { %233 = vmatpush1.bf16.msra.mxu0 %v343_v9 }
  0x14   :  { %234 = vmatprep.subr.bf16.mxu0 %v344_v10 }
  0x17   :  { %235 = vmatpush1.bf16.msra.mxu0 %v346_v11 }
  0x18   :  { %236 = vmatprep.subr.bf16.mxu0 %v347_v12 }
  0x1b   :  { %237 = vmatpush1.bf16.msra.mxu0 %v349_v16 }
  0x1c   :  { %238 = vmatprep.subr.bf16.mxu0 %v350_v17 }
  0x1f   :  { %239 = vmatpush1.bf16.msra.mxu0 %v352_v19 }
  0x20   :  { %240 = vmatprep.subr.bf16.mxu0 %v353_v20 }
  0x23   :  { %241 = vmatpush1.bf16.msra.mxu0 %v355_v21 }
  0x24   :  { %242 = vmatprep.subr.bf16.mxu0 %v356_v22 }
  0x27   :  { %243 = vmatpush1.bf16.msra.mxu0 %v358_v23 }
  0x28   :  { %244 = vmatprep.subr.bf16.mxu0 %v359_v24 }
  0x2b   :  { %245 = vmatpush1.bf16.msra.mxu0 %v361_v25 }
  0x2c   :  { %246 = vmatprep.subr.bf16.mxu0 %v362_v26 }
  0x2f   :  { %247 = vmatpush1.bf16.msra.mxu0 %v364_v27 }
  0x30   :  { %248 = vmatprep.subr.bf16.mxu0 %v365_v28 }
  0x33   :  { %249 = vmatpush1.bf16.msra.mxu0 %v367_v29 }
  0x34   :  { %250 = vmatprep.subr.bf16.mxu0 %v368_v30 }
  0x37   :  { %251 = vmatpush1.bf16.msra.mxu0 %v370_v31 }
  0x38   :  { %252 = vmatprep.subr.bf16.mxu0 %v371_v32 }
  0x3b   :  { %253 = vmatpush1.bf16.msra.mxu0 %v373_v33 }
  0x3c   :  { %254 = vmatprep.subr.bf16.mxu0 %v374_v34 }
  0x3f   :  { %255 = vmatpush1.bf16.msra.mxu0 %v376_v35 }
  0x42   :  { %257 = vmatmul.mubr.bf16.vlgmr.msra.gmra.mrb[0].mxu0 %v294_v36 }
 0x115   :  { %v258_v44 = vpop.f32.mrb[0].mxu0 }
 0x116   :  { %v286_v45 = vadd.f32 %v279_v42, %v258_v44  ;;  %v260_v46 = vpop.f32.mrb[1].mxu0 }
 0x117   :  { %v287_v47 = vadd.f32 %v283_v43, %v260_v46  ;;  %v262_v48 = vpop.f32.mrb[2].mxu0 }
 0x118   :  { %288 = vst [vmem:[%s509_s3] sm:$0xff] %v286_v45  ;;  %v263_v49 = vpop.f32.mrb[3].mxu0 }
 0x119   :  { %289 = vst [vmem:[%s509_s3 + $0x8] sm:$0xff] %v287_v47 }

// kernel: _lambda_.16
= control target key start
LH: loop header
LB: loop body
LE: loop exit
PB: predicated region body
PF: predicated region fallthrough
CT: control target
= control target key end

     0   :  { %v582_v35 = vmov 0   ;;  %s729_s1 = inlined_call_operand.vmem [shape: bf16[512,128], index: 1, kind: input, shape index: {}]   ;;  %s730_s0 = inlined_call_operand.vmem [shape: bf16[24,512], index: 0, kind: input, shape index: {}]   ;;  %s731_s2 = inlined_call_operand.vmem [shape: f32[1,128], index: 2, kind: input, shape index: {}]   ;;  %s732_s3 = inlined_call_operand.vmem [shape: f32[24,128], index: 3, kind: output, shape index: {}]  }
   0x1   :  { %v550_v0 = vld [vmem:[%s729_s1 + $0x40] sm:$0xff]   ;;  %v554_v4 = vld [vmem:[%s729_s1 + $0x48] sm:$0xff]   ;;  %v558_v8 = vld [vmem:[%s729_s1 + $0x50] sm:$0xff]  }
   0x2   :  { %v551_v1 = vld [vmem:[%s729_s1 + $0xc0] sm:$0xff]   ;;  %493 = vmatprep.subr.bf16.mxu0 %v550_v0  ;;  %v555_v5 = vld [vmem:[%s729_s1 + $0xc8] sm:$0xff]   ;;  %v559_v9 = vld [vmem:[%s729_s1 + $0xd0] sm:$0xff]  }
   0x3   :  { %v552_v2 = vld [vmem:[%s729_s1] sm:$0xff]   ;;  %521 = vmatprep.subr.bf16.mxu1 %v551_v1  ;;  %v556_v6 = vld [vmem:[%s729_s1 + $0x8] sm:$0xff]   ;;  %v560_v10 = vld [vmem:[%s729_s1 + $0x10] sm:$0xff]  }
   0x4   :  { %v553_v3 = vld [vmem:[%s729_s1 + $0x80] sm:$0xff]   ;;  %494 = vmatpush3.bf16.msra.mxu0 %v552_v2  ;;  %v557_v7 = vld [vmem:[%s729_s1 + $0x88] sm:$0xff]   ;;  %v561_v11 = vld [vmem:[%s729_s1 + $0x90] sm:$0xff]  }
   0x5   :  { %522 = vmatpush3.bf16.msra.mxu1 %v553_v3  ;;  %495 = vmatprep.subr.bf16.mxu0 %v554_v4  ;;  %v562_v12 = vld [vmem:[%s729_s1 + $0x58] sm:$0xff]   ;;  %v566_v16 = vld [vmem:[%s729_s1 + $0x60] sm:$0xff]   ;;  %v570_v20 = vld [vmem:[%s729_s1 + $0x68] sm:$0xff]  }
   0x6   :  { %523 = vmatprep.subr.bf16.mxu1 %v555_v5  ;;  %v563_v13 = vld [vmem:[%s729_s1 + $0xd8] sm:$0xff]   ;;  %v567_v17 = vld [vmem:[%s729_s1 + $0xe0] sm:$0xff]   ;;  %v571_v21 = vld [vmem:[%s729_s1 + $0xe8] sm:$0xff]  }
   0x7   :  { %v564_v14 = vld [vmem:[%s729_s1 + $0x18] sm:$0xff]   ;;  %v568_v18 = vld [vmem:[%s729_s1 + $0x20] sm:$0xff]   ;;  %v572_v22 = vld [vmem:[%s729_s1 + $0x28] sm:$0xff]  }
   0x8   :  { %496 = vmatpush3.bf16.msra.mxu0 %v556_v6  ;;  %v565_v15 = vld [vmem:[%s729_s1 + $0x98] sm:$0xff]   ;;  %v569_v19 = vld [vmem:[%s729_s1 + $0xa0] sm:$0xff]   ;;  %v573_v23 = vld [vmem:[%s729_s1 + $0xa8] sm:$0xff]  }
   0x9   :  { %524 = vmatpush3.bf16.msra.mxu1 %v557_v7  ;;  %497 = vmatprep.subr.bf16.mxu0 %v558_v8  ;;  %v574_v24 = vld [vmem:[%s729_s1 + $0x70] sm:$0xff]   ;;  %v578_v28 = vld [vmem:[%s729_s1 + $0x78] sm:$0xff]   ;;  %v22_v32 = vld [vmem:[%s730_s0] sm:$0xff] }
   0xa   :  { %525 = vmatprep.subr.bf16.mxu1 %v559_v9  ;;  %v575_v25 = vld [vmem:[%s729_s1 + $0xf0] sm:$0xff]   ;;  %v579_v29 = vld [vmem:[%s729_s1 + $0xf8] sm:$0xff]   ;;  %v23_v34 = vld [vmem:[%s730_s0 + $0x8] sm:$0xff]  ;;  %v28_v36 = vmax.bf16 %v582_v35, %v22_v32 }
   0xb   :  { %v576_v26 = vld [vmem:[%s729_s1 + $0x30] sm:$0xff]   ;;  %v580_v30 = vld [vmem:[%s729_s1 + $0x38] sm:$0xff]   ;;  %v29_v39 = vmax.bf16 %v582_v35, %v23_v34  ;;  %v26_v40 = vld [vmem:[%s730_s0 + $0x20] sm:$0xff] }
   0xc   :  { %498 = vmatpush3.bf16.msra.mxu0 %v560_v10  ;;  %v577_v27 = vld [vmem:[%s729_s1 + $0xb0] sm:$0xff]   ;;  %v581_v31 = vld [vmem:[%s729_s1 + $0xb8] sm:$0xff]   ;;  %v27_v41 = vld [vmem:[%s730_s0 + $0x28] sm:$0xff]  ;;  %v32_v43 = vmax.bf16 %v582_v35, %v26_v40 }
   0xd   :  { %526 = vmatpush3.bf16.msra.mxu1 %v561_v11  ;;  %499 = vmatprep.subr.bf16.mxu0 %v562_v12  ;;  %v24_v33 = vld [vmem:[%s730_s0 + $0x10] sm:$0xff]  ;;  %v25_v38 = vld [vmem:[%s730_s0 + $0x18] sm:$0xff]  ;;  %v33_v44 = vmax.bf16 %v582_v35, %v27_v41  ;;  %v492_v62 = vld [vmem:[%s731_s2] ss:$0 sm:$0xff] }
   0xe   :  { %527 = vmatprep.subr.bf16.mxu1 %v563_v13  ;;  %v30_v37 = vmax.bf16 %v582_v35, %v24_v33  ;;  %v31_v42 = vmax.bf16 %v582_v35, %v25_v38  ;;  %v457_v49 = vcombine.high %v32_v43, %v32_v43  ;;  %v456_v51 = vcombine.low %v32_v43, %v32_v43 }
   0xf   :  { %v459_v50 = vcombine.high %v33_v44, %v33_v44  ;;  %v458_v52 = vcombine.low %v33_v44, %v33_v44 }
  0x10   :  { %500 = vmatpush3.bf16.msra.mxu0 %v564_v14  ;;  %v453_v45 = vcombine.high %v28_v36, %v30_v37  ;;  %v452_v46 = vcombine.low %v28_v36, %v30_v37  ;;  %v455_v47 = vcombine.high %v29_v39, %v31_v42  ;;  %v454_v48 = vcombine.low %v29_v39, %v31_v42 }
  0x11   :  { %528 = vmatpush3.bf16.msra.mxu1 %v565_v15  ;;  %501 = vmatprep.subr.bf16.mxu0 %v566_v16 }
  0x12   :  { %529 = vmatprep.subr.bf16.mxu1 %v567_v17  ;;  %359 = vmatprep.mubr.bf16.mxu0 %v453_v45 }
  0x13   :  { %407 = vmatprep.mubr.bf16.mxu1 %v455_v47 }
  0x14   :  { %502 = vmatpush3.bf16.msra.mxu0 %v568_v18 }
  0x15   :  { %530 = vmatpush3.bf16.msra.mxu1 %v569_v19  ;;  %503 = vmatprep.subr.bf16.mxu0 %v570_v20 }
  0x16   :  { %531 = vmatprep.subr.bf16.mxu1 %v571_v21 }
  0x18   :  { %504 = vmatpush3.bf16.msra.mxu0 %v572_v22 }
  0x19   :  { %532 = vmatpush3.bf16.msra.mxu1 %v573_v23  ;;  %505 = vmatprep.subr.bf16.mxu0 %v574_v24 }
  0x1a   :  { %533 = vmatprep.subr.bf16.mxu1 %v575_v25 }
  0x1c   :  { %506 = vmatpush3.bf16.msra.mxu0 %v576_v26 }
  0x1d   :  { %534 = vmatpush3.bf16.msra.mxu1 %v577_v27  ;;  %507 = vmatprep.subr.bf16.mxu0 %v578_v28 }
  0x1e   :  { %535 = vmatprep.subr.bf16.mxu1 %v579_v29 }
  0x20   :  { %508 = vmatpush3.bf16.msra.mxu0 %v580_v30 }
  0x21   :  { %536 = vmatpush3.bf16.msra.mxu1 %v581_v31 }
  0x23   :  { %360 = vmatmul.mubr.bf16.vlgmr.msra.gmra.mrb[0].mxu0 %v452_v46 }
  0x24   :  { %408 = vmatmul.mubr.bf16.vlgmr.msra.gmra.mrb[0].mxu1 %v454_v48  ;;  %367 = vmatprep.mubr.bf16.mxu0 %v457_v49 }
  0x25   :  { %415 = vmatprep.mubr.bf16.mxu1 %v459_v50 }
  0x2b   :  { %368 = vmatmul.mubr.bf16.gmra.mrb[4].mxu0 %v456_v51 }
  0x2c   :  { %416 = vmatmul.mubr.bf16.gmra.mrb[4].mxu1 %v458_v52 }
  0xf6   :  { %v509_v53 = vpop.f32.mrb[0].mxu0 }
  0xf7   :  { %v537_v54 = vpop.f32.mrb[0].mxu1  ;;  %v510_v55 = vpop.f32.mrb[1].mxu0 }
  0xf8   :  { %v511_v56 = vadd.f32 %v510_v55, %v509_v53  ;;  %v538_v57 = vpop.f32.mrb[1].mxu1  ;;  %v512_v58 = vpop.f32.mrb[2].mxu0 }
  0xf9   :  { %v539_v59 = vadd.f32 %v538_v57, %v537_v54  ;;  %v540_v60 = vpop.f32.mrb[2].mxu1  ;;  %v513_v61 = vpop.f32.mrb[3].mxu0 }
  0xfa   :  { %v514_v63 = vadd.f32 %v513_v61, %v512_v58  ;;  %v541_v0 = vpop.f32.mrb[3].mxu1 }
  0xfb   :  { %v410_v1 = vadd.f32 %v539_v59, %v511_v56  ;;  %v542_v2 = vadd.f32 %v541_v0, %v540_v60 }
  0xfd   :  { %v442_v3 = vadd.f32 %v492_v62, %v410_v1  ;;  %v413_v4 = vadd.f32 %v542_v2, %v514_v63 }
  0xfe   :  { %v515_v5 = vpop.f32.mrb[4].mxu0 }
  0xff   :  { %445 = vst [vmem:[%s732_s3] sm:$0xff] %v442_v3  ;;  %v443_v6 = vadd.f32 %v492_v62, %v413_v4  ;;  %v543_v7 = vpop.f32.mrb[4].mxu1  ;;  %v516_v8 = vpop.f32.mrb[5].mxu0 }
 0x100   :  { %v517_v9 = vadd.f32 %v516_v8, %v515_v5  ;;  %v544_v10 = vpop.f32.mrb[5].mxu1  ;;  %v518_v11 = vpop.f32.mrb[6].mxu0 }
 0x101   :  { %446 = vst [vmem:[%s732_s3 + $0x8] sm:$0xff] %v443_v6  ;;  %v545_v12 = vadd.f32 %v544_v10, %v543_v7  ;;  %v546_v13 = vpop.f32.mrb[6].mxu1  ;;  %v519_v14 = vpop.f32.mrb[7].mxu0 }
 0x102   :  { %v547_v15 = vpop.f32.mrb[7].mxu1 }
 0x103   :  { %v418_v16 = vadd.f32 %v545_v12, %v517_v9 }
 0x105   :  { %v444_v17 = vadd.f32 %v492_v62, %v418_v16 }
 0x107   :  { %447 = vst [vmem:[%s732_s3 + $0x10] sm:$0xff] %v444_v17 }

// kernel: _lambda_.17
= control target key start
LH: loop header
LB: loop body
LE: loop exit
PB: predicated region body
PF: predicated region fallthrough
CT: control target
= control target key end

     0   :  { %v423_v14 = vmov 0   ;;  %s537_s1 = inlined_call_operand.vmem [shape: bf16[256,128], index: 1, kind: input, shape index: {}]   ;;  %s538_s0 = inlined_call_operand.vmem [shape: bf16[56,256], index: 0, kind: input, shape index: {}]   ;;  %s539_s2 = inlined_call_operand.vmem [shape: f32[1,128], index: 2, kind: input, shape index: {}]   ;;  %s540_s3 = inlined_call_operand.vmem [shape: f32[56,128], index: 3, kind: output, shape index: {}]  }
   0x1   :  { %v407_v0 = vld [vmem:[%s537_s1 + $0x40] sm:$0xff]   ;;  %v409_v2 = vld [vmem:[%s537_s1 + $0x48] sm:$0xff]   ;;  %v411_v4 = vld [vmem:[%s537_s1 + $0x50] sm:$0xff]  }
   0x2   :  { %v408_v1 = vld [vmem:[%s537_s1] sm:$0xff]   ;;  %350 = vmatprep.subr.bf16.mxu0 %v407_v0  ;;  %390 = vmatprep.subr.bf16.mxu1 %v407_v0  ;;  %v410_v3 = vld [vmem:[%s537_s1 + $0x8] sm:$0xff]   ;;  %v412_v5 = vld [vmem:[%s537_s1 + $0x10] sm:$0xff]  }
   0x3   :  { %351 = vmatpush3.bf16.msra.mxu0 %v408_v1  ;;  %398 = vmatpush3.bf16.msra.mxu1 %v408_v1  ;;  %v413_v6 = vld [vmem:[%s537_s1 + $0x58] sm:$0xff]   ;;  %v415_v8 = vld [vmem:[%s537_s1 + $0x60] sm:$0xff]   ;;  %v417_v10 = vld [vmem:[%s537_s1 + $0x68] sm:$0xff]  }
   0x4   :  { %352 = vmatprep.subr.bf16.mxu0 %v409_v2  ;;  %391 = vmatprep.subr.bf16.mxu1 %v409_v2  ;;  %v414_v7 = vld [vmem:[%s537_s1 + $0x18] sm:$0xff]   ;;  %v416_v9 = vld [vmem:[%s537_s1 + $0x20] sm:$0xff]   ;;  %v27_v12 = vld [vmem:[%s538_s0 + $0x8] sm:$0xff] }
   0x5   :  { %v26_v11 = vld [vmem:[%s538_s0] sm:$0xff]  ;;  %v34_v16 = vmax.bf16 %v423_v14, %v27_v12  ;;  %v31_v17 = vld [vmem:[%s538_s0 + $0x28] sm:$0xff]  ;;  %v419_v22 = vld [vmem:[%s537_s1 + $0x70] sm:$0xff]  }
   0x6   :  { %v30_v13 = vld [vmem:[%s538_s0 + $0x20] sm:$0xff]  ;;  %v33_v15 = vmax.bf16 %v423_v14, %v26_v11  ;;  %v38_v19 = vmax.bf16 %v423_v14, %v31_v17  ;;  %v418_v20 = vld [vmem:[%s537_s1 + $0x28] sm:$0xff]   ;;  %v420_v24 = vld [vmem:[%s537_s1 + $0x30] sm:$0xff]  }
   0x7   :  { %353 = vmatpush3.bf16.msra.mxu0 %v410_v3  ;;  %399 = vmatpush3.bf16.msra.mxu1 %v410_v3  ;;  %v37_v18 = vmax.bf16 %v423_v14, %v30_v13  ;;  %v421_v25 = vld [vmem:[%s537_s1 + $0x78] sm:$0xff]   ;;  %v28_v26 = vld [vmem:[%s538_s0 + $0x10] sm:$0xff]  ;;  %v349_v42 = vld [vmem:[%s539_s2] ss:$0 sm:$0xff] }
   0x8   :  { %354 = vmatprep.subr.bf16.mxu0 %v411_v4  ;;  %392 = vmatprep.subr.bf16.mxu1 %v411_v4  ;;  %v326_v21 = vcombine.high %v33_v15, %v34_v16  ;;  %v29_v27 = vld [vmem:[%s538_s0 + $0x18] sm:$0xff]  ;;  %v32_v28 = vld [vmem:[%s538_s0 + $0x30] sm:$0xff]  ;;  %v35_v30 = vmax.bf16 %v423_v14, %v28_v26  ;;  %v325_v33 = vcombine.low %v33_v15, %v34_v16 }
   0x9   :  { %v330_v23 = vcombine.high %v37_v18, %v38_v19  ;;  %v422_v29 = vld [vmem:[%s537_s1 + $0x38] sm:$0xff]   ;;  %v36_v31 = vmax.bf16 %v423_v14, %v29_v27  ;;  %v39_v32 = vmax.bf16 %v423_v14, %v32_v28  ;;  %v329_v34 = vcombine.low %v37_v18, %v38_v19 }
   0xa   :  { %244 = vmatprep.mubr.bf16.mxu0 %v326_v21 }
   0xb   :  { %355 = vmatpush3.bf16.msra.mxu0 %v412_v5  ;;  %400 = vmatpush3.bf16.msra.mxu1 %v412_v5  ;;  %v328_v35 = vcombine.high %v35_v30, %v36_v31  ;;  %v332_v36 = vcombine.high %v39_v32, %v39_v32  ;;  %v327_v37 = vcombine.low %v35_v30, %v36_v31 }
   0xc   :  { %356 = vmatprep.subr.bf16.mxu0 %v413_v6  ;;  %393 = vmatprep.subr.bf16.mxu1 %v413_v6  ;;  %v331_v38 = vcombine.low %v39_v32, %v39_v32 }
   0xd   :  { %260 = vmatprep.mubr.bf16.mxu1 %v330_v23 }
   0xf   :  { %357 = vmatpush3.bf16.msra.mxu0 %v414_v7  ;;  %401 = vmatpush3.bf16.msra.mxu1 %v414_v7 }
  0x10   :  { %358 = vmatprep.subr.bf16.mxu0 %v415_v8  ;;  %394 = vmatprep.subr.bf16.mxu1 %v415_v8 }
  0x13   :  { %359 = vmatpush3.bf16.msra.mxu0 %v416_v9  ;;  %402 = vmatpush3.bf16.msra.mxu1 %v416_v9 }
  0x14   :  { %360 = vmatprep.subr.bf16.mxu0 %v417_v10  ;;  %395 = vmatprep.subr.bf16.mxu1 %v417_v10 }
  0x17   :  { %361 = vmatpush3.bf16.msra.mxu0 %v418_v20  ;;  %403 = vmatpush3.bf16.msra.mxu1 %v418_v20 }
  0x18   :  { %362 = vmatprep.subr.bf16.mxu0 %v419_v22  ;;  %396 = vmatprep.subr.bf16.mxu1 %v419_v22 }
  0x1b   :  { %363 = vmatpush3.bf16.msra.mxu0 %v420_v24  ;;  %404 = vmatpush3.bf16.msra.mxu1 %v420_v24 }
  0x1c   :  { %364 = vmatprep.subr.bf16.mxu0 %v421_v25  ;;  %397 = vmatprep.subr.bf16.mxu1 %v421_v25 }
  0x1f   :  { %365 = vmatpush3.bf16.msra.mxu0 %v422_v29  ;;  %405 = vmatpush3.bf16.msra.mxu1 %v422_v29 }
  0x22   :  { %245 = vmatmul.mubr.bf16.vlgmr.msra.gmra.mrb[0].mxu0 %v325_v33  ;;  %261 = vmatmul.mubr.bf16.vlgmr.msra.gmra.mrb[0].mxu1 %v329_v34 }
  0x23   :  { %252 = vmatprep.mubr.bf16.mxu0 %v328_v35  ;;  %268 = vmatprep.mubr.bf16.mxu1 %v332_v36 }
  0x2a   :  { %253 = vmatmul.mubr.bf16.gmra.mrb[4].mxu0 %v327_v37  ;;  %269 = vmatmul.mubr.bf16.gmra.mrb[4].mxu1 %v331_v38 }
  0xf5   :  { %v366_v39 = vpop.f32.mrb[0].mxu0  ;;  %v378_v40 = vpop.f32.mrb[0].mxu1 }
  0xf6   :  { %v367_v41 = vpop.f32.mrb[1].mxu0  ;;  %v379_v43 = vpop.f32.mrb[1].mxu1 }
  0xf7   :  { %v368_v44 = vadd.f32 %v367_v41, %v366_v39  ;;  %v380_v45 = vadd.f32 %v379_v43, %v378_v40  ;;  %v369_v46 = vpop.f32.mrb[2].mxu0  ;;  %v381_v47 = vpop.f32.mrb[2].mxu1 }
  0xf8   :  { %v370_v48 = vpop.f32.mrb[3].mxu0  ;;  %v382_v49 = vpop.f32.mrb[3].mxu1 }
  0xf9   :  { %v307_v50 = vadd.f32 %v368_v44, %v349_v42  ;;  %v311_v51 = vadd.f32 %v380_v45, %v349_v42  ;;  %v371_v52 = vadd.f32 %v370_v48, %v369_v46  ;;  %v383_v53 = vadd.f32 %v382_v49, %v381_v47 }
  0xfb   :  { %314 = vst [vmem:[%s540_s3] sm:$0xff] %v307_v50  ;;  %318 = vst [vmem:[%s540_s3 + $0x20] sm:$0xff] %v311_v51  ;;  %v308_v54 = vadd.f32 %v371_v52, %v349_v42  ;;  %v312_v55 = vadd.f32 %v383_v53, %v349_v42 }
  0xfd   :  { %315 = vst [vmem:[%s540_s3 + $0x8] sm:$0xff] %v308_v54  ;;  %319 = vst [vmem:[%s540_s3 + $0x28] sm:$0xff] %v312_v55  ;;  %v372_v56 = vpop.f32.mrb[4].mxu0  ;;  %v384_v57 = vpop.f32.mrb[4].mxu1 }
  0xfe   :  { %v373_v58 = vpop.f32.mrb[5].mxu0  ;;  %v385_v59 = vpop.f32.mrb[5].mxu1 }
  0xff   :  { %v374_v60 = vadd.f32 %v373_v58, %v372_v56  ;;  %v386_v61 = vadd.f32 %v385_v59, %v384_v57  ;;  %v375_v62 = vpop.f32.mrb[6].mxu0  ;;  %v387_v63 = vpop.f32.mrb[6].mxu1 }
 0x100   :  { %v376_v0 = vpop.f32.mrb[7].mxu0  ;;  %v388_v1 = vpop.f32.mrb[7].mxu1 }
 0x101   :  { %v309_v2 = vadd.f32 %v374_v60, %v349_v42  ;;  %v313_v3 = vadd.f32 %v386_v61, %v349_v42  ;;  %v377_v4 = vadd.f32 %v376_v0, %v375_v62 }
 0x103   :  { %316 = vst [vmem:[%s540_s3 + $0x10] sm:$0xff] %v309_v2  ;;  %320 = vst [vmem:[%s540_s3 + $0x30] sm:$0xff] %v313_v3  ;;  %v310_v5 = vadd.f32 %v377_v4, %v349_v42 }
 0x105   :  { %317 = vst [vmem:[%s540_s3 + $0x18] sm:$0xff] %v310_v5 }

// kernel: _lambda_.18
= control target key start
LH: loop header
LB: loop body
LE: loop exit
PB: predicated region body
PF: predicated region fallthrough
CT: control target
= control target key end

     0   :  { %v596_v0 = vmov 0.0   ;;  %vm597_vm0 = vmmov 0   ;;  %v598_v12 = vmov 0   ;;  %s854_s1 = inlined_call_operand.vmem [shape: bf16[128,128], index: 1, kind: input, shape index: {}]   ;;  %s855_s0 = inlined_call_operand.vmem [shape: bf16[168,128], index: 0, kind: input, shape index: {}]   ;;  %s856_s2 = inlined_call_operand.vmem [shape: f32[1,128], index: 2, kind: input, shape index: {}]   ;;  %s857_s3 = inlined_call_operand.vmem [shape: f32[168,128], index: 3, kind: output, shape index: {}]  }
   0x1   :  { %509 = vmatprep.subr.bf16.mxu0 %v596_v0  ;;  %v588_v1 = vld [vmem:[%s854_s1] sm:$0xff]   ;;  %569 = vmatprep.subr.bf16.mxu1 %v596_v0  ;;  %v589_v2 = vld [vmem:[%s854_s1 + $0x8] sm:$0xff]   ;;  %v590_v3 = vld [vmem:[%s854_s1 + $0x10] sm:$0xff]  }
   0x2   :  { %525 = vmatprep.mubr.msk.bf16.mxu0 %vm597_vm0, %v596_v0  ;;  %549 = vmatprep.mubr.msk.bf16.mxu1 %vm597_vm0, %v596_v0  ;;  %v591_v4 = vld [vmem:[%s854_s1 + $0x18] sm:$0xff]   ;;  %v592_v5 = vld [vmem:[%s854_s1 + $0x20] sm:$0xff]   ;;  %v593_v6 = vld [vmem:[%s854_s1 + $0x28] sm:$0xff]  }
   0x3   :  { %510 = vmatpush3.bf16.msra.mxu0 %v588_v1  ;;  %577 = vmatpush3.bf16.msra.mxu1 %v588_v1  ;;  %v594_v7 = vld [vmem:[%s854_s1 + $0x30] sm:$0xff]   ;;  %v40_v8 = vld [vmem:[%s855_s0] sm:$0xf]  ;;  %v41_v9 = vld [vmem:[%s855_s0 + $0x4] sm:$0xf] }
   0x4   :  { %511 = vmatprep.subr.bf16.mxu0 %v596_v0  ;;  %570 = vmatprep.subr.bf16.mxu1 %v596_v0  ;;  %v52_v10 = vld [vmem:[%s855_s0 + $0x30] sm:$0xf]  ;;  %v53_v11 = vld [vmem:[%s855_s0 + $0x34] sm:$0xf]  ;;  %v61_v13 = vmax.bf16 %v598_v12, %v40_v8  ;;  %v62_v14 = vmax.bf16 %v598_v12, %v41_v9  ;;  %v595_v17 = vld [vmem:[%s854_s1 + $0x38] sm:$0xff]  }
   0x5   :  { %v73_v15 = vmax.bf16 %v598_v12, %v52_v10  ;;  %v74_v16 = vmax.bf16 %v598_v12, %v53_v11  ;;  %v42_v20 = vld [vmem:[%s855_s0 + $0x8] sm:$0xf]  ;;  %v43_v21 = vld [vmem:[%s855_s0 + $0xc] sm:$0xf]  ;;  %v54_v22 = vld [vmem:[%s855_s0 + $0x38] sm:$0xf] }
   0x6   :  { %v470_v18 = vcombine.low %v61_v13, %v62_v14  ;;  %v55_v23 = vld [vmem:[%s855_s0 + $0x3c] sm:$0xf]  ;;  %v63_v24 = vmax.bf16 %v598_v12, %v42_v20  ;;  %v64_v25 = vmax.bf16 %v598_v12, %v43_v21  ;;  %v75_v26 = vmax.bf16 %v598_v12, %v54_v22  ;;  %v44_v30 = vld [vmem:[%s855_s0 + $0x10] sm:$0xf]  ;;  %v45_v31 = vld [vmem:[%s855_s0 + $0x14] sm:$0xf] }
   0x7   :  { %512 = vmatpush3.bf16.msra.mxu0 %v589_v2  ;;  %578 = vmatpush3.bf16.msra.mxu1 %v589_v2  ;;  %v476_v19 = vcombine.low %v73_v15, %v74_v16  ;;  %v76_v27 = vmax.bf16 %v598_v12, %v55_v23  ;;  %v56_v32 = vld [vmem:[%s855_s0 + $0x40] sm:$0xf]  ;;  %v57_v33 = vld [vmem:[%s855_s0 + $0x44] sm:$0xf]  ;;  %v65_v34 = vmax.bf16 %v598_v12, %v44_v30  ;;  %v46_v40 = vld [vmem:[%s855_s0 + $0x18] sm:$0xf] }
   0x8   :  { %513 = vmatprep.subr.bf16.mxu0 %v596_v0  ;;  %571 = vmatprep.subr.bf16.mxu1 %v596_v0  ;;  %v471_v28 = vcombine.low %v63_v24, %v64_v25  ;;  %v66_v35 = vmax.bf16 %v598_v12, %v45_v31  ;;  %v77_v36 = vmax.bf16 %v598_v12, %v56_v32  ;;  %v47_v41 = vld [vmem:[%s855_s0 + $0x1c] sm:$0xf]  ;;  %v58_v42 = vld [vmem:[%s855_s0 + $0x48] sm:$0xf]  ;;  %v59_v43 = vld [vmem:[%s855_s0 + $0x4c] sm:$0xf] }
   0x9   :  { %v477_v29 = vcombine.low %v75_v26, %v76_v27  ;;  %v78_v37 = vmax.bf16 %v598_v12, %v57_v33  ;;  %v67_v44 = vmax.bf16 %v598_v12, %v46_v40  ;;  %v68_v45 = vmax.bf16 %v598_v12, %v47_v41  ;;  %v48_v50 = vld [vmem:[%s855_s0 + $0x20] sm:$0xf]  ;;  %v49_v51 = vld [vmem:[%s855_s0 + $0x24] sm:$0xf]  ;;  %v60_v52 = vld [vmem:[%s855_s0 + $0x50] sm:$0xf] }
   0xa   :  { %v472_v38 = vcombine.low %v65_v34, %v66_v35  ;;  %v79_v46 = vmax.bf16 %v598_v12, %v58_v42  ;;  %v80_v47 = vmax.bf16 %v598_v12, %v59_v43  ;;  %v69_v53 = vmax.bf16 %v598_v12, %v48_v50  ;;  %v50_v58 = vld [vmem:[%s855_s0 + $0x28] sm:$0xf]  ;;  %v51_v59 = vld [vmem:[%s855_s0 + $0x2c] sm:$0xf]  ;;  %v768_v63 = vld [vmem:[%s856_s2] ss:$0 sm:$0xff] }
   0xb   :  { %514 = vmatpush3.bf16.msra.mxu0 %v590_v3  ;;  %579 = vmatpush3.bf16.msra.mxu1 %v590_v3  ;;  %v478_v39 = vcombine.low %v77_v36, %v78_v37  ;;  %v473_v48 = vcombine.low %v67_v44, %v68_v45  ;;  %v70_v54 = vmax.bf16 %v598_v12, %v49_v51 }
   0xc   :  { %515 = vmatprep.subr.bf16.mxu0 %v596_v0  ;;  %572 = vmatprep.subr.bf16.mxu1 %v596_v0  ;;  %v479_v49 = vcombine.low %v79_v46, %v80_v47  ;;  %v81_v55 = vmax.bf16 %v598_v12, %v60_v52  ;;  %v71_v60 = vmax.bf16 %v598_v12, %v50_v58 }
   0xd   :  { %v474_v56 = vcombine.low %v69_v53, %v70_v54  ;;  %v72_v61 = vmax.bf16 %v598_v12, %v51_v59 }
   0xe   :  { %v480_v57 = vcombine.low %v81_v55, %v81_v55 }
   0xf   :  { %516 = vmatpush3.bf16.msra.mxu0 %v591_v4  ;;  %580 = vmatpush3.bf16.msra.mxu1 %v591_v4  ;;  %v475_v62 = vcombine.low %v71_v60, %v72_v61 }
  0x10   :  { %517 = vmatprep.subr.bf16.mxu0 %v596_v0  ;;  %573 = vmatprep.subr.bf16.mxu1 %v596_v0 }
  0x13   :  { %518 = vmatpush3.bf16.msra.mxu0 %v592_v5  ;;  %581 = vmatpush3.bf16.msra.mxu1 %v592_v5 }
  0x14   :  { %519 = vmatprep.subr.bf16.mxu0 %v596_v0  ;;  %574 = vmatprep.subr.bf16.mxu1 %v596_v0 }
  0x17   :  { %520 = vmatpush3.bf16.msra.mxu0 %v593_v6  ;;  %582 = vmatpush3.bf16.msra.mxu1 %v593_v6 }
  0x18   :  { %521 = vmatprep.subr.bf16.mxu0 %v596_v0  ;;  %575 = vmatprep.subr.bf16.mxu1 %v596_v0 }
  0x1b   :  { %522 = vmatpush3.bf16.msra.mxu0 %v594_v7  ;;  %583 = vmatpush3.bf16.msra.mxu1 %v594_v7 }
  0x1c   :  { %523 = vmatprep.subr.bf16.mxu0 %v596_v0  ;;  %576 = vmatprep.subr.bf16.mxu1 %v596_v0 }
  0x1f   :  { %524 = vmatpush3.bf16.msra.mxu0 %v595_v17  ;;  %584 = vmatpush3.bf16.msra.mxu1 %v595_v17 }
  0x22   :  { %526 = vmatmul.mubr.bf16.vlgmr.msra.gmra.mrb[0].mxu0 %v470_v18  ;;  %550 = vmatmul.mubr.bf16.vlgmr.msra.gmra.mrb[0].mxu1 %v476_v19 }
  0x23   :  { %529 = vmatprep.mubr.msk.bf16.mxu0 %vm597_vm0, %v596_v0  ;;  %553 = vmatprep.mubr.msk.bf16.mxu1 %vm597_vm0, %v596_v0 }
  0x2a   :  { %530 = vmatmul.mubr.bf16.gmra.mrb[4].mxu0 %v471_v28  ;;  %554 = vmatmul.mubr.bf16.gmra.mrb[4].mxu1 %v477_v29 }
  0x2b   :  { %533 = vmatprep.mubr.msk.bf16.mxu0 %vm597_vm0, %v596_v0  ;;  %557 = vmatprep.mubr.msk.bf16.mxu1 %vm597_vm0, %v596_v0 }
  0x32   :  { %534 = vmatmul.mubr.bf16.gmra.mrb[8].mxu0 %v472_v38  ;;  %558 = vmatmul.mubr.bf16.gmra.mrb[8].mxu1 %v478_v39 }
  0x33   :  { %537 = vmatprep.mubr.msk.bf16.mxu0 %vm597_vm0, %v596_v0  ;;  %561 = vmatprep.mubr.msk.bf16.mxu1 %vm597_vm0, %v596_v0 }
  0x3a   :  { %538 = vmatmul.mubr.bf16.gmra.mrb[12].mxu0 %v473_v48  ;;  %562 = vmatmul.mubr.bf16.gmra.mrb[12].mxu1 %v479_v49 }
  0x3b   :  { %541 = vmatprep.mubr.msk.bf16.mxu0 %vm597_vm0, %v596_v0  ;;  %565 = vmatprep.mubr.msk.bf16.mxu1 %vm597_vm0, %v596_v0 }
  0x42   :  { %542 = vmatmul.mubr.bf16.gmra.mrb[16].mxu0 %v474_v56  ;;  %566 = vmatmul.mubr.bf16.gmra.mrb[16].mxu1 %v480_v57 }
  0x43   :  { %545 = vmatprep.mubr.msk.bf16.mxu0 %vm597_vm0, %v596_v0 }
  0x4a   :  { %546 = vmatmul.mubr.bf16.gmra.mrb[20].mxu0 %v475_v62 }
  0xf5   :  { %v265_v1 = vpop.f32.mrb[0].mxu0  ;;  %v313_v2 = vpop.f32.mrb[0].mxu1 }
  0xf6   :  { %v424_v3 = vadd.f32 %v768_v63, %v265_v1  ;;  %v527_v4 = vpop.f32.mrb[1].mxu0  ;;  %v436_v5 = vadd.f32 %v768_v63, %v313_v2  ;;  %v551_v6 = vpop.f32.mrb[1].mxu1 }
  0xf7   :  { %v268_v7 = vpop.f32.mrb[2].mxu0  ;;  %v316_v8 = vpop.f32.mrb[2].mxu1 }
  0xf8   :  { %445 = vst [vmem:[%s857_s3] sm:$0xff] %v424_v3  ;;  %v425_v0 = vadd.f32 %v768_v63, %v268_v7  ;;  %v528_v9 = vpop.f32.mrb[3].mxu0  ;;  %457 = vst [vmem:[%s857_s3 + $0x60] sm:$0xff] %v436_v5  ;;  %v437_v10 = vadd.f32 %v768_v63, %v316_v8  ;;  %v552_v11 = vpop.f32.mrb[3].mxu1 }
  0xfa   :  { %446 = vst [vmem:[%s857_s3 + $0x8] sm:$0xff] %v425_v0  ;;  %458 = vst [vmem:[%s857_s3 + $0x68] sm:$0xff] %v437_v10 }
  0xfd   :  { %v273_v12 = vpop.f32.mrb[4].mxu0  ;;  %v321_v13 = vpop.f32.mrb[4].mxu1 }
  0xfe   :  { %v426_v14 = vadd.f32 %v768_v63, %v273_v12  ;;  %v531_v15 = vpop.f32.mrb[5].mxu0  ;;  %v438_v16 = vadd.f32 %v768_v63, %v321_v13  ;;  %v555_v17 = vpop.f32.mrb[5].mxu1 }
  0xff   :  { %v276_v18 = vpop.f32.mrb[6].mxu0  ;;  %v324_v19 = vpop.f32.mrb[6].mxu1 }
 0x100   :  { %447 = vst [vmem:[%s857_s3 + $0x10] sm:$0xff] %v426_v14  ;;  %v427_v20 = vadd.f32 %v768_v63, %v276_v18  ;;  %v532_v21 = vpop.f32.mrb[7].mxu0  ;;  %459 = vst [vmem:[%s857_s3 + $0x70] sm:$0xff] %v438_v16  ;;  %v439_v22 = vadd.f32 %v768_v63, %v324_v19  ;;  %v556_v23 = vpop.f32.mrb[7].mxu1 }
 0x102   :  { %448 = vst [vmem:[%s857_s3 + $0x18] sm:$0xff] %v427_v20  ;;  %460 = vst [vmem:[%s857_s3 + $0x78] sm:$0xff] %v439_v22 }
 0x105   :  { %v281_v24 = vpop.f32.mrb[8].mxu0  ;;  %v329_v25 = vpop.f32.mrb[8].mxu1 }
 0x106   :  { %v428_v26 = vadd.f32 %v768_v63, %v281_v24  ;;  %v535_v27 = vpop.f32.mrb[9].mxu0  ;;  %v440_v28 = vadd.f32 %v768_v63, %v329_v25  ;;  %v559_v29 = vpop.f32.mrb[9].mxu1 }
 0x107   :  { %v284_v30 = vpop.f32.mrb[10].mxu0  ;;  %v332_v31 = vpop.f32.mrb[10].mxu1 }
 0x108   :  { %449 = vst [vmem:[%s857_s3 + $0x20] sm:$0xff] %v428_v26  ;;  %v429_v32 = vadd.f32 %v768_v63, %v284_v30  ;;  %v536_v33 = vpop.f32.mrb[11].mxu0  ;;  %461 = vst [vmem:[%s857_s3 + $0x80] sm:$0xff] %v440_v28  ;;  %v441_v34 = vadd.f32 %v768_v63, %v332_v31  ;;  %v560_v35 = vpop.f32.mrb[11].mxu1 }
 0x10a   :  { %450 = vst [vmem:[%s857_s3 + $0x28] sm:$0xff] %v429_v32  ;;  %462 = vst [vmem:[%s857_s3 + $0x88] sm:$0xff] %v441_v34 }
 0x10d   :  { %v289_v36 = vpop.f32.mrb[12].mxu0  ;;  %v337_v37 = vpop.f32.mrb[12].mxu1 }
 0x10e   :  { %v430_v38 = vadd.f32 %v768_v63, %v289_v36  ;;  %v539_v39 = vpop.f32.mrb[13].mxu0  ;;  %v442_v40 = vadd.f32 %v768_v63, %v337_v37  ;;  %v563_v41 = vpop.f32.mrb[13].mxu1 }
 0x10f   :  { %v292_v42 = vpop.f32.mrb[14].mxu0  ;;  %v340_v43 = vpop.f32.mrb[14].mxu1 }
 0x110   :  { %451 = vst [vmem:[%s857_s3 + $0x30] sm:$0xff] %v430_v38  ;;  %v431_v44 = vadd.f32 %v768_v63, %v292_v42  ;;  %v540_v45 = vpop.f32.mrb[15].mxu0  ;;  %463 = vst [vmem:[%s857_s3 + $0x90] sm:$0xff] %v442_v40  ;;  %v443_v46 = vadd.f32 %v768_v63, %v340_v43  ;;  %v564_v47 = vpop.f32.mrb[15].mxu1 }
 0x112   :  { %452 = vst [vmem:[%s857_s3 + $0x38] sm:$0xff] %v431_v44  ;;  %464 = vst [vmem:[%s857_s3 + $0x98] sm:$0xff] %v443_v46 }
 0x115   :  { %v297_v48 = vpop.f32.mrb[16].mxu0  ;;  %v345_v49 = vpop.f32.mrb[16].mxu1 }
 0x116   :  { %v432_v50 = vadd.f32 %v768_v63, %v297_v48  ;;  %v543_v51 = vpop.f32.mrb[17].mxu0  ;;  %v444_v52 = vadd.f32 %v768_v63, %v345_v49  ;;  %v567_v53 = vpop.f32.mrb[17].mxu1 }
 0x117   :  { %v300_v54 = vpop.f32.mrb[18].mxu0  ;;  %v348_v55 = vpop.f32.mrb[18].mxu1 }
 0x118   :  { %453 = vst [vmem:[%s857_s3 + $0x40] sm:$0xff] %v432_v50  ;;  %v433_v56 = vadd.f32 %v768_v63, %v300_v54  ;;  %v544_v57 = vpop.f32.mrb[19].mxu0  ;;  %465 = vst [vmem:[%s857_s3 + $0xa0] sm:$0xff] %v444_v52  ;;  %v568_v58 = vpop.f32.mrb[19].mxu1 }
 0x11a   :  { %454 = vst [vmem:[%s857_s3 + $0x48] sm:$0xff] %v433_v56 }
 0x11d   :  { %v305_v59 = vpop.f32.mrb[20].mxu0 }
 0x11e   :  { %v434_v60 = vadd.f32 %v768_v63, %v305_v59  ;;  %v547_v61 = vpop.f32.mrb[21].mxu0 }
 0x11f   :  { %v308_v62 = vpop.f32.mrb[22].mxu0 }
 0x120   :  { %455 = vst [vmem:[%s857_s3 + $0x50] sm:$0xff] %v434_v60  ;;  %v435_v1 = vadd.f32 %v768_v63, %v308_v62  ;;  %v548_v2 = vpop.f32.mrb[23].mxu0 }
 0x122   :  { %456 = vst [vmem:[%s857_s3 + $0x58] sm:$0xff] %v435_v1 }

// kernel: _lambda_.19
= control target key start
LH: loop header
LB: loop body
LE: loop exit
PB: predicated region body
PF: predicated region fallthrough
CT: control target
= control target key end

     0   :  { %s1294_s12 = smov 0   ;;  %s1296_s13 = smov 0   ;;  %s1492_s0 = inlined_call_operand.vmem [shape: bf16[768,128], index: 0, kind: input, shape index: {}]   ;;  %s1493_s1 = inlined_call_operand.vmem [shape: bf16[128,128], index: 1, kind: input, shape index: {}]   ;;  %s1494_s2 = inlined_call_operand.vmem [shape: f32[1,128], index: 2, kind: input, shape index: {}]   ;;  %s1495_s3 = inlined_call_operand.vmem [shape: f32[768,128], index: 3, kind: output, shape index: {}]  }
   0x1   :  { %s1298_s14 = smov 0  }
   0x2 LB: > { %s32_s15 = sadd.s32 1, %s1267_s13  ;;  %p1032_p0 = scmp.ge.s32.totalorder %s1271_s14, 1  ;;  %s1271_s14 = sphi %s1298_s14, %s13_s14   ;;  %s1267_s13 = sphi %s1296_s13, %s1497_s13   ;;  %s1263_s12 = sphi %s1294_s12, %s1496_s12  }
   0x3   : > { %p34_p1 = scmp.ge.s32.totalorder %s32_s15, 3  ;;  %p188_p2 = scmp.lt.s32.totalorder %s1271_s14, 4 }
   0x5   : > { %s1499_s15 = smov (%p34_p1, %s32_s15), 0  ;;  %p189_p3 = pnand %p1032_p0, %p188_p2 }
   0x6   : > { %v1177_v0 = vld [vmem:[%s1493_s1] sm:$0xff] (!%p189_p3)   ;;  %s1033_s18 = sshll.u32 (!%p189_p3), %s1263_s12, 5  ;;  %v1178_v1 = vld [vmem:[%s1493_s1 + $0x8] sm:$0xff] (!%p189_p3)   ;;  %v1179_v2 = vld [vmem:[%s1493_s1 + $0x10] sm:$0xff] (!%p189_p3)   ;;  %v1273_v7 = vmov (!%p189_p3), 0  }
   0x7   : > { %192 = sbr.rel (%p189_p3) target bundleno = 299 (0x12b), region = 32  ;;  %p230_p4 = scmp.lt.s32.totalorder (!%p189_p3), %s1033_s18, 95  ;;  %1088 = vmatprep.subr.bf16.mxu0 (!%p189_p3), %v1177_v0  ;;  %1136 = vmatprep.subr.bf16.mxu1 (!%p189_p3), %v1177_v0  ;;  %v1180_v3 = vld [vmem:[%s1493_s1 + $0x18] sm:$0xff] (!%p189_p3)   ;;  %v1181_v14 = vld [vmem:[%s1493_s1 + $0x20] sm:$0xff] (!%p189_p3)   ;;  %v1182_v16 = vld [vmem:[%s1493_s1 + $0x28] sm:$0xff] (!%p189_p3)  }
   0x8   : > { %1089 = vmatpush3.bf16.msra.mxu0 (!%p189_p3), %v1177_v0  ;;  %1144 = vmatpush3.bf16.msra.mxu1 (!%p189_p3), %v1177_v0  ;;  %v1183_v17 = vld [vmem:[%s1493_s1 + $0x30] sm:$0xff] (!%p189_p3)   ;;  %v1184_v18 = vld [vmem:[%s1493_s1 + $0x38] sm:$0xff] (!%p189_p3)  }
   0x9   : > { %1090 = vmatprep.subr.bf16.mxu0 (!%p189_p3), %v1178_v1  ;;  %1137 = vmatprep.subr.bf16.mxu1 (!%p189_p3), %v1178_v1 }
   0xc   : > { %1091 = vmatpush3.bf16.msra.mxu0 (!%p189_p3), %v1178_v1  ;;  %1145 = vmatpush3.bf16.msra.mxu1 (!%p189_p3), %v1178_v1 }
   0xd   : > { %1092 = vmatprep.subr.bf16.mxu0 (!%p189_p3), %v1179_v2  ;;  %1138 = vmatprep.subr.bf16.mxu1 (!%p189_p3), %v1179_v2 }
   0xe   : > { %s1501_s18 = smov (!%p230_p4, %s1033_s18), 95 }
   0xf   : > { %s1034_s23 = sshll.u32 %s1501_s18, 2  ;;  %s1036_s12 = sshll.u32 %s1501_s18, 3 }
  0x10   : > { %s1327_s26 = scalar_lea.vmem %s1492_s0, %s1034_s23  ;;  %1093 = vmatpush3.bf16.msra.mxu0 %v1179_v2  ;;  %1146 = vmatpush3.bf16.msra.mxu1 %v1179_v2  ;;  %s1429_s18 = scalar_lea.vmem %s1495_s3, %s1036_s12 }
  0x11   : > { %v296_v4 = vld [vmem:[%s1327_s26] sm:$0xf]  ;;  %v297_v5 = vld [vmem:[%s1327_s26 + $0x4] sm:$0xf]  ;;  %1094 = vmatprep.subr.bf16.mxu0 %v1180_v3  ;;  %1139 = vmatprep.subr.bf16.mxu1 %v1180_v3  ;;  %v298_v19 = vld [vmem:[%s1327_s26 + $0x8] sm:$0xf] }
  0x12   : > { %v312_v6 = vld [vmem:[%s1327_s26 + $0x40] sm:$0xf]  ;;  %v328_v8 = vmax.bf16 %v1273_v7, %v296_v4  ;;  %v329_v9 = vmax.bf16 %v1273_v7, %v297_v5  ;;  %v313_v10 = vld [vmem:[%s1327_s26 + $0x44] sm:$0xf]  ;;  %v299_v20 = vld [vmem:[%s1327_s26 + $0xc] sm:$0xf]  ;;  %v330_v27 = vmax.bf16 %v1273_v7, %v298_v19 }
  0x13   : > { %v344_v11 = vmax.bf16 %v1273_v7, %v312_v6  ;;  %v345_v12 = vmax.bf16 %v1273_v7, %v313_v10  ;;  %v314_v21 = vld [vmem:[%s1327_s26 + $0x48] sm:$0xf]  ;;  %v315_v22 = vld [vmem:[%s1327_s26 + $0x4c] sm:$0xf]  ;;  %v300_v23 = vld [vmem:[%s1327_s26 + $0x10] sm:$0xf]  ;;  %v331_v28 = vmax.bf16 %v1273_v7, %v299_v20 }
  0x14   : > { %v1037_v13 = vcombine.low %v328_v8, %v329_v9  ;;  %1095 = vmatpush3.bf16.msra.mxu0 %v1180_v3  ;;  %1147 = vmatpush3.bf16.msra.mxu1 %v1180_v3  ;;  %v301_v24 = vld [vmem:[%s1327_s26 + $0x14] sm:$0xf]  ;;  %v316_v25 = vld [vmem:[%s1327_s26 + $0x50] sm:$0xf]  ;;  %v346_v29 = vmax.bf16 %v1273_v7, %v314_v21  ;;  %v347_v30 = vmax.bf16 %v1273_v7, %v315_v22  ;;  %v302_v37 = vld [vmem:[%s1327_s26 + $0x18] sm:$0xf] }
  0x15   : > { %v1045_v15 = vcombine.low %v344_v11, %v345_v12  ;;  %1096 = vmatprep.subr.bf16.mxu0 %v1181_v14  ;;  %1140 = vmatprep.subr.bf16.mxu1 %v1181_v14  ;;  %v317_v26 = vld [vmem:[%s1327_s26 + $0x54] sm:$0xf]  ;;  %v332_v31 = vmax.bf16 %v1273_v7, %v300_v23  ;;  %v333_v32 = vmax.bf16 %v1273_v7, %v301_v24  ;;  %v303_v38 = vld [vmem:[%s1327_s26 + $0x1c] sm:$0xf]  ;;  %v318_v41 = vld [vmem:[%s1327_s26 + $0x58] sm:$0xf] }
  0x16   : > { %1104 = vmatprep.mubr.bf16.mxu0 %v1037_v13  ;;  %v348_v33 = vmax.bf16 %v1273_v7, %v316_v25  ;;  %v349_v34 = vmax.bf16 %v1273_v7, %v317_v26  ;;  %v1038_v35 = vcombine.low %v330_v27, %v331_v28  ;;  %v1046_v36 = vcombine.low %v346_v29, %v347_v30  ;;  %v319_v42 = vld [vmem:[%s1327_s26 + $0x5c] sm:$0xf]  ;;  %v304_v43 = vld [vmem:[%s1327_s26 + $0x20] sm:$0xf]  ;;  %v305_v44 = vld [vmem:[%s1327_s26 + $0x24] sm:$0xf] }
  0x17   : > { %1120 = vmatprep.mubr.bf16.mxu1 %v1045_v15  ;;  %v1039_v39 = vcombine.low %v332_v31, %v333_v32  ;;  %v320_v45 = vld [vmem:[%s1327_s26 + $0x60] sm:$0xf]  ;;  %v321_v46 = vld [vmem:[%s1327_s26 + $0x64] sm:$0xf]  ;;  %v334_v47 = vmax.bf16 %v1273_v7, %v302_v37  ;;  %v335_v48 = vmax.bf16 %v1273_v7, %v303_v38  ;;  %v350_v49 = vmax.bf16 %v1273_v7, %v318_v41  ;;  %v306_v57 = vld [vmem:[%s1327_s26 + $0x28] sm:$0xf] }
  0x18   : > { %1097 = vmatpush3.bf16.msra.mxu0 %v1181_v14  ;;  %1148 = vmatpush3.bf16.msra.mxu1 %v1181_v14  ;;  %v1047_v40 = vcombine.low %v348_v33, %v349_v34  ;;  %v351_v50 = vmax.bf16 %v1273_v7, %v319_v42  ;;  %v336_v51 = vmax.bf16 %v1273_v7, %v304_v43  ;;  %v307_v58 = vld [vmem:[%s1327_s26 + $0x2c] sm:$0xf]  ;;  %v322_v61 = vld [vmem:[%s1327_s26 + $0x68] sm:$0xf]  ;;  %v308_v63 = vld [vmem:[%s1327_s26 + $0x30] sm:$0xf] }
  0x19   : > { %1098 = vmatprep.subr.bf16.mxu0 %v1182_v16  ;;  %1141 = vmatprep.subr.bf16.mxu1 %v1182_v16  ;;  %v337_v52 = vmax.bf16 %v1273_v7, %v305_v44  ;;  %v352_v53 = vmax.bf16 %v1273_v7, %v320_v45  ;;  %v353_v54 = vmax.bf16 %v1273_v7, %v321_v46  ;;  %v323_v62 = vld [vmem:[%s1327_s26 + $0x6c] sm:$0xf]  ;;  %v309_v0 = vld [vmem:[%s1327_s26 + $0x34] sm:$0xf]  ;;  %v324_v1 = vld [vmem:[%s1327_s26 + $0x70] sm:$0xf] }
  0x1a   : > { %v1040_v55 = vcombine.low %v334_v47, %v335_v48  ;;  %v1048_v56 = vcombine.low %v350_v49, %v351_v50  ;;  %v325_v2 = vld [vmem:[%s1327_s26 + $0x74] sm:$0xf]  ;;  %v338_v3 = vmax.bf16 %v1273_v7, %v306_v57  ;;  %v339_v4 = vmax.bf16 %v1273_v7, %v307_v58  ;;  %v310_v14 = vld [vmem:[%s1327_s26 + $0x38] sm:$0xf]  ;;  %v327_v19 = vld [vmem:[%s1327_s26 + $0x7c] sm:$0xf] }
  0x1b   : > { %v1041_v59 = vcombine.low %v336_v51, %v337_v52  ;;  %v1049_v60 = vcombine.low %v352_v53, %v353_v54  ;;  %v354_v5 = vmax.bf16 %v1273_v7, %v322_v61  ;;  %v355_v6 = vmax.bf16 %v1273_v7, %v323_v62  ;;  %v1411_v26 = vld [vmem:[%s1494_s2] ss:$0 sm:$0xff] }
  0x1c   : > { %1099 = vmatpush3.bf16.msra.mxu0 %v1182_v16  ;;  %1149 = vmatpush3.bf16.msra.mxu1 %v1182_v16  ;;  %v340_v8 = vmax.bf16 %v1273_v7, %v308_v63  ;;  %v341_v9 = vmax.bf16 %v1273_v7, %v309_v0  ;;  %v356_v10 = vmax.bf16 %v1273_v7, %v324_v1 }
  0x1d   : > { %1100 = vmatprep.subr.bf16.mxu0 %v1183_v17  ;;  %1142 = vmatprep.subr.bf16.mxu1 %v1183_v17  ;;  %v357_v11 = vmax.bf16 %v1273_v7, %v325_v2  ;;  %v1042_v12 = vcombine.low %v338_v3, %v339_v4  ;;  %v1050_v13 = vcombine.low %v354_v5, %v355_v6 }
  0x1e   : > { %v1043_v15 = vcombine.low %v340_v8, %v341_v9  ;;  %v342_v20 = vmax.bf16 %v1273_v7, %v310_v14  ;;  %v359_v23 = vmax.bf16 %v1273_v7, %v327_v19 }
  0x1f   : > { %v1051_v16 = vcombine.low %v356_v10, %v357_v11 }
  0x20   : > { %1101 = vmatpush3.bf16.msra.mxu0 %v1183_v17  ;;  %1150 = vmatpush3.bf16.msra.mxu1 %v1183_v17  ;;  %v311_v17 = vld [vmem:[%s1327_s26 + $0x3c] sm:$0xf] }
  0x21   : > { %1102 = vmatprep.subr.bf16.mxu0 %v1184_v18  ;;  %1143 = vmatprep.subr.bf16.mxu1 %v1184_v18  ;;  %v343_v21 = vmax.bf16 %v1273_v7, %v311_v17 }
  0x23   : > { %v1044_v24 = vcombine.low %v342_v20, %v343_v21 }
  0x24   : > { %1103 = vmatpush3.bf16.msra.mxu0 %v1184_v18  ;;  %1151 = vmatpush3.bf16.msra.mxu1 %v1184_v18  ;;  %v326_v18 = vld [vmem:[%s1327_s26 + $0x78] sm:$0xf] }
  0x25   : > { %v358_v22 = vmax.bf16 %v1273_v7, %v326_v18 }
  0x27   : > { %1105 = vmatmul.mubr.bf16.vlgmr.msra.gmra.mrb[0].mxu0 %v1038_v35  ;;  %1121 = vmatmul.mubr.bf16.vlgmr.msra.gmra.mrb[0].mxu1 %v1046_v36  ;;  %v1052_v25 = vcombine.low %v358_v22, %v359_v23 }
  0x28   : > { %1108 = vmatprep.mubr.bf16.mxu0 %v1039_v39  ;;  %1124 = vmatprep.mubr.bf16.mxu1 %v1047_v40 }
  0x2f   : > { %1109 = vmatmul.mubr.bf16.gmra.mrb[4].mxu0 %v1040_v55  ;;  %1125 = vmatmul.mubr.bf16.gmra.mrb[4].mxu1 %v1048_v56 }
  0x30   : > { %1112 = vmatprep.mubr.bf16.mxu0 %v1041_v59  ;;  %1128 = vmatprep.mubr.bf16.mxu1 %v1049_v60 }
  0x37   : > { %1113 = vmatmul.mubr.bf16.gmra.mrb[8].mxu0 %v1042_v12  ;;  %1129 = vmatmul.mubr.bf16.gmra.mrb[8].mxu1 %v1050_v13 }
  0x38   : > { %1116 = vmatprep.mubr.bf16.mxu0 %v1043_v15  ;;  %1132 = vmatprep.mubr.bf16.mxu1 %v1051_v16 }
  0x3f   : > { %1117 = vmatmul.mubr.bf16.gmra.mrb[12].mxu0 %v1044_v24  ;;  %1133 = vmatmul.mubr.bf16.gmra.mrb[12].mxu1 %v1052_v25 }
  0xfa   : > { %v1106_v27 = vpop.f32.mrb[0].mxu0  ;;  %v1122_v28 = vpop.f32.mrb[0].mxu1 }
  0xfb   : > { %v821_v29 = vadd.f32 %v1106_v27, %v1411_v26  ;;  %v837_v30 = vadd.f32 %v1122_v28, %v1411_v26  ;;  %v586_v31 = vpop.f32.mrb[1].mxu0  ;;  %v650_v32 = vpop.f32.mrb[1].mxu1 }
  0xfc   : > { %v819_v7 = vadd.f32 %v1411_v26, %v586_v31  ;;  %v835_v33 = vadd.f32 %v1411_v26, %v650_v32  ;;  %v1107_v34 = vpop.f32.mrb[2].mxu0  ;;  %v1123_v35 = vpop.f32.mrb[2].mxu1 }
  0xfd   : > { %1185 = vtanh.f32 %v821_v29  ;;  %v822_v36 = vadd.f32 %v1107_v34, %v1411_v26  ;;  %v589_v37 = vpop.f32.mrb[3].mxu0  ;;  %v653_v38 = vpop.f32.mrb[3].mxu1  ;;  %v838_v39 = vadd.f32 %v1123_v35, %v1411_v26 }
  0xfe   : > { %1187 = vtanh.f32 %v837_v30  ;;  %v820_v40 = vadd.f32 %v1411_v26, %v589_v37  ;;  %v836_v41 = vadd.f32 %v1411_v26, %v653_v38 }
  0xff   : > { %1189 = vtanh.f32 %v819_v7 }
 0x100   : > { %1191 = vtanh.f32 %v835_v33 }
 0x101   : > { %1193 = vtanh.f32 %v822_v36 }
 0x102   : > { %1195 = vtanh.f32 %v838_v39  ;;  %v1110_v42 = vpop.f32.mrb[4].mxu0  ;;  %v1126_v43 = vpop.f32.mrb[4].mxu1 }
 0x103   : > { %1197 = vtanh.f32 %v820_v40  ;;  %v825_v44 = vadd.f32 %v1110_v42, %v1411_v26  ;;  %v841_v45 = vadd.f32 %v1126_v43, %v1411_v26  ;;  %v602_v46 = vpop.f32.mrb[5].mxu0  ;;  %v666_v47 = vpop.f32.mrb[5].mxu1 }
 0x104   : > { %1199 = vtanh.f32 %v836_v41  ;;  %v823_v48 = vadd.f32 %v1411_v26, %v602_v46  ;;  %v839_v49 = vadd.f32 %v1411_v26, %v666_v47  ;;  %v1111_v50 = vpop.f32.mrb[6].mxu0  ;;  %v1127_v51 = vpop.f32.mrb[6].mxu1 }
 0x105   : > { %1201 = vtanh.f32 %v825_v44  ;;  %v826_v52 = vadd.f32 %v1111_v50, %v1411_v26  ;;  %v605_v53 = vpop.f32.mrb[7].mxu0  ;;  %v669_v54 = vpop.f32.mrb[7].mxu1  ;;  %v842_v55 = vadd.f32 %v1127_v51, %v1411_v26 }
 0x106   : > { %1203 = vtanh.f32 %v841_v45  ;;  %v824_v57 = vadd.f32 %v1411_v26, %v605_v53  ;;  %v840_v59 = vadd.f32 %v1411_v26, %v669_v54 }
 0x107   : > { %v1186_v56 = vpop.eup %1185  ;;  %1205 = vtanh.f32 %v823_v48 }
 0x108   : > { %v1188_v58 = vpop.eup %1187  ;;  %885 = vst [vmem:[%s1429_s18 + $0x10] sm:$0xff] %v1186_v56  ;;  %1207 = vtanh.f32 %v839_v49 }
 0x109   : > { %v1190_v60 = vpop.eup %1189  ;;  %901 = vst [vmem:[%s1429_s18 + $0x90] sm:$0xff] %v1188_v58  ;;  %1209 = vtanh.f32 %v826_v52 }
 0x10a   : > { %v1192_v61 = vpop.eup %1191  ;;  %883 = vst [vmem:[%s1429_s18] sm:$0xff] %v1190_v60  ;;  %1211 = vtanh.f32 %v842_v55  ;;  %v1114_v62 = vpop.f32.mrb[8].mxu0 }
 0x10b   : > { %v1130_v63 = vpop.f32.mrb[8].mxu1  ;;  %v1194_v0 = vpop.eup %1193  ;;  %899 = vst [vmem:[%s1429_s18 + $0x80] sm:$0xff] %v1192_v61  ;;  %1213 = vtanh.f32 %v824_v57  ;;  %v829_v1 = vadd.f32 %v1114_v62, %v1411_v26 }
 0x10c   : > { %v845_v2 = vadd.f32 %v1130_v63, %v1411_v26  ;;  %v618_v3 = vpop.f32.mrb[9].mxu0  ;;  %v682_v4 = vpop.f32.mrb[9].mxu1  ;;  %886 = vst [vmem:[%s1429_s18 + $0x18] sm:$0xff] %v1194_v0  ;;  %1215 = vtanh.f32 %v840_v59 }
 0x10d   : > { %v1196_v5 = vpop.eup %1195  ;;  %v827_v6 = vadd.f32 %v1411_v26, %v618_v3  ;;  %v843_v8 = vadd.f32 %v1411_v26, %v682_v4  ;;  %v1115_v9 = vpop.f32.mrb[10].mxu0  ;;  %1217 = vtanh.f32 %v829_v1 }
 0x10e   : > { %v1131_v10 = vpop.f32.mrb[10].mxu1  ;;  %v1198_v11 = vpop.eup %1197  ;;  %902 = vst [vmem:[%s1429_s18 + $0x98] sm:$0xff] %v1196_v5  ;;  %v830_v12 = vadd.f32 %v1115_v9, %v1411_v26  ;;  %1219 = vtanh.f32 %v845_v2 }
 0x10f   : > { %v621_v13 = vpop.f32.mrb[11].mxu0  ;;  %v685_v14 = vpop.f32.mrb[11].mxu1  ;;  %884 = vst [vmem:[%s1429_s18 + $0x8] sm:$0xff] %v1198_v11  ;;  %v846_v16 = vadd.f32 %v1131_v10, %v1411_v26  ;;  %1221 = vtanh.f32 %v827_v6 }
 0x110   : > { %v1200_v15 = vpop.eup %1199  ;;  %v828_v18 = vadd.f32 %v1411_v26, %v621_v13  ;;  %1223 = vtanh.f32 %v843_v8  ;;  %v844_v20 = vadd.f32 %v1411_v26, %v685_v14 }
 0x111   : > { %v1202_v17 = vpop.eup %1201  ;;  %900 = vst [vmem:[%s1429_s18 + $0x88] sm:$0xff] %v1200_v15  ;;  %1225 = vtanh.f32 %v830_v12 }
 0x112   : > { %v1204_v19 = vpop.eup %1203  ;;  %889 = vst [vmem:[%s1429_s18 + $0x30] sm:$0xff] %v1202_v17  ;;  %1227 = vtanh.f32 %v846_v16  ;;  %v1118_v23 = vpop.f32.mrb[12].mxu0 }
 0x113   : > { %v1206_v21 = vpop.eup %1205  ;;  %905 = vst [vmem:[%s1429_s18 + $0xb0] sm:$0xff] %v1204_v19  ;;  %v1134_v24 = vpop.f32.mrb[12].mxu1  ;;  %1229 = vtanh.f32 %v828_v18  ;;  %v833_v27 = vadd.f32 %v1118_v23, %v1411_v26 }
 0x114   : > { %v1208_v22 = vpop.eup %1207  ;;  %887 = vst [vmem:[%s1429_s18 + $0x20] sm:$0xff] %v1206_v21  ;;  %v849_v28 = vadd.f32 %v1134_v24, %v1411_v26  ;;  %v634_v29 = vpop.f32.mrb[13].mxu0  ;;  %1231 = vtanh.f32 %v844_v20 }
 0x115   : > { %v1210_v25 = vpop.eup %1209  ;;  %903 = vst [vmem:[%s1429_s18 + $0xa0] sm:$0xff] %v1208_v22  ;;  %v698_v30 = vpop.f32.mrb[13].mxu1  ;;  %v831_v32 = vadd.f32 %v1411_v26, %v634_v29  ;;  %1233 = vtanh.f32 %v833_v27 }
 0x116   : > { %v1212_v31 = vpop.eup %1211  ;;  %890 = vst [vmem:[%s1429_s18 + $0x38] sm:$0xff] %v1210_v25  ;;  %v847_v7 = vadd.f32 %v1411_v26, %v698_v30  ;;  %v1119_v33 = vpop.f32.mrb[14].mxu0  ;;  %1235 = vtanh.f32 %v849_v28 }
 0x117   : > { %v1135_v34 = vpop.f32.mrb[14].mxu1  ;;  %v1214_v35 = vpop.eup %1213  ;;  %906 = vst [vmem:[%s1429_s18 + $0xb8] sm:$0xff] %v1212_v31  ;;  %v834_v36 = vadd.f32 %v1119_v33, %v1411_v26  ;;  %1237 = vtanh.f32 %v831_v32 }
 0x118   : > { %v637_v37 = vpop.f32.mrb[15].mxu0  ;;  %v701_v38 = vpop.f32.mrb[15].mxu1  ;;  %888 = vst [vmem:[%s1429_s18 + $0x28] sm:$0xff] %v1214_v35  ;;  %v850_v40 = vadd.f32 %v1135_v34, %v1411_v26  ;;  %1239 = vtanh.f32 %v847_v7 }
 0x119   : > { %v1216_v39 = vpop.eup %1215  ;;  %v832_v42 = vadd.f32 %v1411_v26, %v637_v37  ;;  %v848_v44 = vadd.f32 %v1411_v26, %v701_v38  ;;  %1241 = vtanh.f32 %v834_v36 }
 0x11a   : > { %v1218_v41 = vpop.eup %1217  ;;  %904 = vst [vmem:[%s1429_s18 + $0xa8] sm:$0xff] %v1216_v39  ;;  %1243 = vtanh.f32 %v850_v40 }
 0x11b   : > { %v1220_v43 = vpop.eup %1219  ;;  %893 = vst [vmem:[%s1429_s18 + $0x50] sm:$0xff] %v1218_v41  ;;  %1245 = vtanh.f32 %v832_v42 }
 0x11c   : > { %v1222_v45 = vpop.eup %1221  ;;  %909 = vst [vmem:[%s1429_s18 + $0xd0] sm:$0xff] %v1220_v43  ;;  %1247 = vtanh.f32 %v848_v44 }
 0x11d   : > { %v1224_v46 = vpop.eup %1223  ;;  %891 = vst [vmem:[%s1429_s18 + $0x40] sm:$0xff] %v1222_v45 }
 0x11e   : > { %v1226_v47 = vpop.eup %1225  ;;  %907 = vst [vmem:[%s1429_s18 + $0xc0] sm:$0xff] %v1224_v46 }
 0x11f   : > { %v1228_v48 = vpop.eup %1227  ;;  %894 = vst [vmem:[%s1429_s18 + $0x58] sm:$0xff] %v1226_v47 }
 0x120   : > { %v1230_v26 = vpop.eup %1229  ;;  %910 = vst [vmem:[%s1429_s18 + $0xd8] sm:$0xff] %v1228_v48 }
 0x121   : > { %v1232_v49 = vpop.eup %1231  ;;  %892 = vst [vmem:[%s1429_s18 + $0x48] sm:$0xff] %v1230_v26 }
 0x122   : > { %v1234_v50 = vpop.eup %1233  ;;  %908 = vst [vmem:[%s1429_s18 + $0xc8] sm:$0xff] %v1232_v49 }
 0x123   : > { %v1236_v51 = vpop.eup %1235  ;;  %897 = vst [vmem:[%s1429_s18 + $0x70] sm:$0xff] %v1234_v50 }
 0x124   : > { %v1238_v52 = vpop.eup %1237  ;;  %913 = vst [vmem:[%s1429_s18 + $0xf0] sm:$0xff] %v1236_v51 }
 0x125   : > { %v1240_v53 = vpop.eup %1239  ;;  %895 = vst [vmem:[%s1429_s18 + $0x60] sm:$0xff] %v1238_v52 }
 0x126   : > { %v1242_v54 = vpop.eup %1241  ;;  %911 = vst [vmem:[%s1429_s18 + $0xe0] sm:$0xff] %v1240_v53 }
 0x127   : > { %v1244_v55 = vpop.eup %1243  ;;  %898 = vst [vmem:[%s1429_s18 + $0x78] sm:$0xff] %v1242_v54 }
 0x128   : > { %v1246_v56 = vpop.eup %1245  ;;  %914 = vst [vmem:[%s1429_s18 + $0xf8] sm:$0xff] %v1244_v55 }
 0x129   : > { %v1248_v57 = vpop.eup %1247  ;;  %896 = vst [vmem:[%s1429_s18 + $0x68] sm:$0xff] %v1246_v56 }
 0x12a   : > { %912 = vst [vmem:[%s1429_s18 + $0xe8] sm:$0xff] %v1248_v57 }
 0x12b PF: > { %s13_s14 = sadd.s32 1, %s1271_s14   ;;  %s1496_s12 = smov %s1267_s13 }
 0x12c   : > { %p10_p5 = scmp.ge.s32.totalorder %s13_s14, 5   ;;  %s1497_s13 = smov %s1499_s15 }
 0x12e   :  { %12 = sbr.rel (!%p10_p5) target bundleno = 2 (0x2), region = 76 }

</bundles_post_ra>
